<compile_context>
chip_gen: v7x
topology: tpu7x:2x2x1
jax: 0.10.0
libtpu: 0.0.40
codegen_flags: <defaults>
</compile_context>

<pallas_src>
import functools
import math

import jax
import jax.numpy as jnp
from jax.experimental import pallas as pl
from jax.experimental.pallas import tpu as pltpu


# ----------------------------------------------------------------------------
# Fused whole-forward kernel: ONE grid step, batch folded into the row axis.
# ----------------------------------------------------------------------------
def _decoder_kernel(
    tok_ref, pos_ref, mem_ref, tbias_ref, sbias_ref, emb_ref,
    ln_g_ref, ln_b_ref,
    wqkv_ref, bqkv_ref, wo1_ref, bo1_ref,
    wq2_ref, bq2_ref, wkv2_ref, bkv2_ref, wo2_ref, bo2_ref,
    ffw1_ref, ffb1_ref, ffw2_ref, ffb2_ref,
    outw_ref, outb_ref, ng_ref, nb_ref,
    o_ref, *, n_layers, n_heads, batch, eps):
    BS = tok_ref.shape[0]                     # B * S_trg (folded rows)
    S, D = pos_ref.shape
    V = emb_ref.shape[0]
    H = n_heads
    dk = D // H
    scale = 1.0 / math.sqrt(dk)
    bf16 = jnp.bfloat16

    def layernorm(z, g, bvec):
        zf = z.astype(jnp.float32)
        mu = jnp.mean(zf, axis=-1, keepdims=True)
        var = jnp.mean((zf - mu) ** 2, axis=-1, keepdims=True)
        return (zf - mu) * jax.lax.rsqrt(var + eps) * g + bvec

    def split_heads(t):
        # (rows, D) bf16 -> (H, rows, dk): heads stacked on a leading batch dim.
        return jnp.stack([t[:, h * dk:(h + 1) * dk] for h in range(H)], axis=0)

    def attention(q, k, v, bias):
        # q: (Sq, D), k/v: (Sk, D) f32; bias: (Sq, Sk) additive (0 or -1e9).
        qh = split_heads(q.astype(bf16))      # (H, Sq, dk)
        kh = split_heads(k.astype(bf16))      # (H, Sk, dk)
        vh = split_heads(v.astype(bf16))      # (H, Sk, dk)
        # Head-batched score matmul (no per-head transposes).
        s = jnp.einsum('hqd,hkd->hqk', qh, kh,
                       preferred_element_type=jnp.float32) * scale
        s = s + bias[None, :, :]
        # One softmax over the stacked (H, Sq, Sk) scores.
        s = s - jnp.max(s, axis=-1, keepdims=True)
        p = jnp.exp(s)
        p = p * pl.reciprocal(jnp.sum(p, axis=-1, keepdims=True), approx=False)
        o = jnp.einsum('hqk,hkd->hqd', p.astype(bf16), vh,
                       preferred_element_type=jnp.float32)   # (H, Sq, dk)
        return jnp.concatenate([o[h] for h in range(H)], axis=-1)  # (Sq, D)

    # --- embedding lookup (one-hot matmul, no HBM gather) + positional embed
    tok = tok_ref[...]                                          # (BS, 1) int32
    vocab_iota = jax.lax.broadcasted_iota(jnp.int32, (BS, V), 1)
    one_hot = (tok == vocab_iota).astype(bf16)                  # (BS, V)
    x = jnp.dot(one_hot, emb_ref[...],
                preferred_element_type=jnp.float32)             # (BS, D) f32
    x = x + jnp.tile(pos_ref[...], (batch, 1))                  # per-batch pos add
    # TODO(synk): nn.Dropout omitted (inference / p effectively 0) — identity.

    mem = mem_ref[...].astype(bf16)                             # (B*S_src, D)
    tbias = tbias_ref[...]                                      # (BS, BS)
    sbias = sbias_ref[...]                                      # (BS, B*S_src)

    for n in range(n_layers):
        g = ln_g_ref[n]                                         # (3, D)
        bvec = ln_b_ref[n]

        # ---- residual 0: self-attention (fused QKV projection)
        h0 = layernorm(x, g[0:1, :], bvec[0:1, :])
        qkv = jnp.dot(h0.astype(bf16), wqkv_ref[n],
                      preferred_element_type=jnp.float32) + bqkv_ref[n]
        q, k, v = qkv[:, :D], qkv[:, D:2 * D], qkv[:, 2 * D:]
        a = attention(q, k, v, tbias)
        a = jnp.dot(a.astype(bf16), wo1_ref[n],
                    preferred_element_type=jnp.float32) + bo1_ref[n]
        x = x + a

        # ---- residual 1: cross-attention on memory (fused KV projection)
        h1 = layernorm(x, g[1:2, :], bvec[1:2, :])
        q = jnp.dot(h1.astype(bf16), wq2_ref[n],
                    preferred_element_type=jnp.float32) + bq2_ref[n]
        kv = jnp.dot(mem, wkv2_ref[n],
                     preferred_element_type=jnp.float32) + bkv2_ref[n]
        k, v = kv[:, :D], kv[:, D:]
        a = attention(q, k, v, sbias)
        a = jnp.dot(a.astype(bf16), wo2_ref[n],
                    preferred_element_type=jnp.float32) + bo2_ref[n]
        x = x + a

        # ---- residual 2: feed-forward
        h2 = layernorm(x, g[2:3, :], bvec[2:3, :])
        f = jnp.dot(h2.astype(bf16), ffw1_ref[n],
                    preferred_element_type=jnp.float32) + ffb1_ref[n]
        f = jnp.maximum(f, 0.0)
        f = jnp.dot(f.astype(bf16), ffw2_ref[n],
                    preferred_element_type=jnp.float32) + ffb2_ref[n]
        x = x + f

    # ---- final Linear(d_embed -> vocab) then LayerNorm (reference ordering)
    y = jnp.dot(x.astype(bf16), outw_ref[...],
                preferred_element_type=jnp.float32) + outb_ref[...]
    y = layernorm(y, ng_ref[...], nb_ref[...])
    o_ref[...] = y.astype(o_ref.dtype)


# ----------------------------------------------------------------------------
# Wrapper: batch folding, mask -> block-diagonal additive biases, one call.
# ----------------------------------------------------------------------------
def decoder_forward(params, memory, src_mask, trg_tokens, trg_mask, h):
    B, S = trg_tokens.shape
    S_src = memory.shape[1]
    D = params["embedding"].shape[1]
    V = params["out_w"].shape[1]
    n_layers = params["wqkv"].shape[0]
    BS = B * S

    tok = trg_tokens.astype(jnp.int32).reshape(BS, 1)
    pos = params["pos_embed"][0, :S, :]                         # (S, D)
    mem = memory.reshape(B * S_src, D).astype(jnp.float32)      # folded memory

    # Block-diagonal additive biases (forbid cross-batch attention); built once,
    # DMA'd once (single grid step, full-spec blocks).
    eye = jnp.eye(B, dtype=bool)
    tm = trg_mask[:, 0].astype(bool)                            # (B, S, S)
    tallow = eye[:, None, :, None] & tm[:, :, None, :]          # (B, S, B, S)
    tbias = jnp.where(tallow.reshape(BS, BS), 0.0, -1e9).astype(jnp.float32)
    sm = src_mask[:, 0, 0].astype(bool)                         # (B, S_src)
    sallow = jnp.broadcast_to(eye[:, None, :, None] & sm[None, None, :, :],
                              (B, S, B, S_src))
    sbias = jnp.where(sallow.reshape(BS, B * S_src), 0.0, -1e9).astype(jnp.float32)

    def full_spec(a):
        nd = a.ndim
        return pl.BlockSpec(a.shape, lambda i, nd=nd: (0,) * nd)

    args = (
        tok, pos, mem, tbias, sbias,
        params["embedding"],
        params["ln_g"], params["ln_b"],
        params["wqkv"], params["bqkv"], params["wo1"], params["bo1"],
        params["wq2"], params["bq2"], params["wkv2"], params["bkv2"],
        params["wo2"], params["bo2"],
        params["ff_w1"], params["ff_b1"], params["ff_w2"], params["ff_b2"],
        params["out_w"], params["out_b"], params["norm_g"], params["norm_b"],
    )
    in_specs = [full_spec(a) for a in args]

    kern = functools.partial(_decoder_kernel, n_layers=n_layers, n_heads=h,
                             batch=B, eps=1e-5)
    out = pl.pallas_call(
        kern,
        out_shape=jax.ShapeDtypeStruct((BS, V), jnp.float32),
        grid=(1,),
        in_specs=in_specs,
        out_specs=pl.BlockSpec((BS, V), lambda i: (0, 0)),
        compiler_params=pltpu.CompilerParams(
            dimension_semantics=("arbitrary",),
            vmem_limit_bytes=32 * 1024 * 1024),
    )(*args)
    return out.reshape(B, S, V)


# ----------------------------------------------------------------------------
# Deterministic parameter init (synthetic weights, not a checkpoint).
# Per-layer weights are stacked on a leading N_decoder axis; QKV (self-attn)
# and KV (cross-attn) projections are pre-concatenated; matmul weights bf16.
# ----------------------------------------------------------------------------
def init_linear(key, din, dout):
    k1, k2 = jax.random.split(key)
    w = jax.random.normal(k1, (din, dout), jnp.float32) * (1.0 / math.sqrt(din))
    b = jax.random.normal(k2, (dout,), jnp.float32) * 0.01
    return w, b


def init_params(key, cfg):
    d, d_ff = cfg["d_embed"], cfg["d_ff"]
    vocab, n_layers = cfg["decoder_vocab_size"], cfg["N_decoder"]
    keys = jax.random.split(key, 2 + n_layers)
    bf16 = jnp.bfloat16

    params = {
        "embedding": jax.random.normal(keys[0], (vocab, d), jnp.float32).astype(bf16),
        "pos_embed": jnp.zeros((1, cfg["max_seq_len"], d), jnp.float32),
        "norm_g": jnp.ones((1, vocab), jnp.float32),
        "norm_b": jnp.zeros((1, vocab), jnp.float32),
    }
    ow, ob = init_linear(keys[1], d, vocab)
    params["out_w"], params["out_b"] = ow.astype(bf16), ob.reshape(1, vocab)

    wqkv, bqkv, wo1, bo1 = [], [], [], []
    wq2, bq2, wkv2, bkv2, wo2, bo2 = [], [], [], [], [], []
    ffw1, ffb1, ffw2, ffb2 = [], [], [], []
    lng, lnb = [], []
    for li in range(n_layers):
        lk = jax.random.split(keys[2 + li], 10)
        # self-attention (fused QKV)
        wq, bq = init_linear(lk[0], d, d)
        wk, bk = init_linear(lk[1], d, d)
        wv, bv = init_linear(lk[2], d, d)
        wo, bo = init_linear(lk[3], d, d)
        wqkv.append(jnp.concatenate([wq, wk, wv], axis=1))
        bqkv.append(jnp.concatenate([bq, bk, bv]).reshape(1, 3 * d))
        wo1.append(wo); bo1.append(bo.reshape(1, d))
        # cross-attention (Q separate, fused KV)
        wq, bq = init_linear(lk[4], d, d)
        wk, bk = init_linear(lk[5], d, d)
        wv, bv = init_linear(lk[6], d, d)
        wo, bo = init_linear(lk[7], d, d)
        wq2.append(wq); bq2.append(bq.reshape(1, d))
        wkv2.append(jnp.concatenate([wk, wv], axis=1))
        bkv2.append(jnp.concatenate([bk, bv]).reshape(1, 2 * d))
        wo2.append(wo); bo2.append(bo.reshape(1, d))
        # feed-forward
        w1, b1 = init_linear(lk[8], d, d_ff)
        w2, b2 = init_linear(lk[9], d_ff, d)
        ffw1.append(w1); ffb1.append(b1.reshape(1, d_ff))
        ffw2.append(w2); ffb2.append(b2.reshape(1, d))
        # layernorms (3 per block)
        lng.append(jnp.ones((3, d), jnp.float32))
        lnb.append(jnp.zeros((3, d), jnp.float32))

    params.update(
        ln_g=jnp.stack(lng), ln_b=jnp.stack(lnb),
        wqkv=jnp.stack(wqkv).astype(bf16), bqkv=jnp.stack(bqkv),
        wo1=jnp.stack(wo1).astype(bf16), bo1=jnp.stack(bo1),
        wq2=jnp.stack(wq2).astype(bf16), bq2=jnp.stack(bq2),
        wkv2=jnp.stack(wkv2).astype(bf16), bkv2=jnp.stack(bkv2),
        wo2=jnp.stack(wo2).astype(bf16), bo2=jnp.stack(bo2),
        ff_w1=jnp.stack(ffw1).astype(bf16), ff_b1=jnp.stack(ffb1),
        ff_w2=jnp.stack(ffw2).astype(bf16), ff_b2=jnp.stack(ffb2),
    )
    return params


# ----------------------------------------------------------------------------
if __name__ == "__main__":
    config = dict(
        h=4,
        d_embed=32,
        d_ff=64,
        dropout=0.0,
        decoder_vocab_size=32,   # == d_embed so the reference final norm(linear(x)) is valid
        max_seq_len=16,
        N_decoder=2,
    )
    B, S_trg, S_src = 2, 8, 8

    root = jax.random.PRNGKey(0)
    k_par, k_mem, k_tok = jax.random.split(root, 3)

    params = init_params(k_par, config)
    memory = jax.random.normal(k_mem, (B, S_src, config["d_embed"]), jnp.float32)
    trg_tokens = jax.random.randint(
        k_tok, (B, S_trg), 0, config["decoder_vocab_size"], jnp.int32)

    # causal target mask (B, 1, S_trg, S_trg) and full source mask (B, 1, 1, S_src)
    causal = jnp.tril(jnp.ones((S_trg, S_trg), jnp.bool_))
    trg_mask = jnp.broadcast_to(causal, (B, 1, S_trg, S_trg))
    src_mask = jnp.ones((B, 1, 1, S_src), jnp.bool_)

    fwd = jax.jit(functools.partial(decoder_forward, h=config["h"]))
    out = fwd(params, memory, src_mask, trg_tokens, trg_mask)
    out = jax.block_until_ready(out)

    assert out.shape == (B, S_trg, config["decoder_vocab_size"])
    assert bool(jnp.all(jnp.isfinite(out)))
    print("KERNEL_OK")
</pallas_src>

<mosaic_0001>
module attributes {stable_mosaic.version = 11 : i64} {
  func.func @_decoder_kernel(%arg0: i32, %arg1: memref<16x1xi32, #tpu.memory_space<vmem>>, %arg2: memref<8x32xf32, #tpu.memory_space<vmem>>, %arg3: memref<16x32xf32, #tpu.memory_space<vmem>>, %arg4: memref<16x16xf32, #tpu.memory_space<vmem>>, %arg5: memref<16x16xf32, #tpu.memory_space<vmem>>, %arg6: memref<32x32xbf16, #tpu.memory_space<vmem>>, %arg7: memref<2x3x32xf32, #tpu.memory_space<vmem>>, %arg8: memref<2x3x32xf32, #tpu.memory_space<vmem>>, %arg9: memref<2x32x96xbf16, #tpu.memory_space<vmem>>, %arg10: memref<2x1x96xf32, #tpu.memory_space<vmem>>, %arg11: memref<2x32x32xbf16, #tpu.memory_space<vmem>>, %arg12: memref<2x1x32xf32, #tpu.memory_space<vmem>>, %arg13: memref<2x32x32xbf16, #tpu.memory_space<vmem>>, %arg14: memref<2x1x32xf32, #tpu.memory_space<vmem>>, %arg15: memref<2x32x64xbf16, #tpu.memory_space<vmem>>, %arg16: memref<2x1x64xf32, #tpu.memory_space<vmem>>, %arg17: memref<2x32x32xbf16, #tpu.memory_space<vmem>>, %arg18: memref<2x1x32xf32, #tpu.memory_space<vmem>>, %arg19: memref<2x32x64xbf16, #tpu.memory_space<vmem>>, %arg20: memref<2x1x64xf32, #tpu.memory_space<vmem>>, %arg21: memref<2x64x32xbf16, #tpu.memory_space<vmem>>, %arg22: memref<2x1x32xf32, #tpu.memory_space<vmem>>, %arg23: memref<32x32xbf16, #tpu.memory_space<vmem>>, %arg24: memref<1x32xf32, #tpu.memory_space<vmem>>, %arg25: memref<1x32xf32, #tpu.memory_space<vmem>>, %arg26: memref<1x32xf32, #tpu.memory_space<vmem>>, %arg27: memref<16x32xf32, #tpu.memory_space<vmem>>) attributes {dimension_semantics = [#tpu.dimension_semantics<arbitrary>], iteration_bounds = array<i64: 1>, scalar_prefetch = 0 : i64, scratch_operands = 0 : i64, tpu.core_type = #tpu.core_type<tc>, window_params = [{pipeline_mode = #tpu.pipeline_mode<synchronous>, transform_indices = @transform_0, window_bounds = array<i64: 16, 1>}, {pipeline_mode = #tpu.pipeline_mode<synchronous>, transform_indices = @transform_1, window_bounds = array<i64: 8, 32>}, {pipeline_mode = #tpu.pipeline_mode<synchronous>, transform_indices = @transform_2, window_bounds = array<i64: 16, 32>}, {pipeline_mode = #tpu.pipeline_mode<synchronous>, transform_indices = @transform_3, window_bounds = array<i64: 16, 16>}, {pipeline_mode = #tpu.pipeline_mode<synchronous>, transform_indices = @transform_4, window_bounds = array<i64: 16, 16>}, {pipeline_mode = #tpu.pipeline_mode<synchronous>, transform_indices = @transform_5, window_bounds = array<i64: 32, 32>}, {pipeline_mode = #tpu.pipeline_mode<synchronous>, transform_indices = @transform_6, window_bounds = array<i64: 2, 3, 32>}, {pipeline_mode = #tpu.pipeline_mode<synchronous>, transform_indices = @transform_7, window_bounds = array<i64: 2, 3, 32>}, {pipeline_mode = #tpu.pipeline_mode<synchronous>, transform_indices = @transform_8, window_bounds = array<i64: 2, 32, 96>}, {pipeline_mode = #tpu.pipeline_mode<synchronous>, transform_indices = @transform_9, window_bounds = array<i64: 2, 1, 96>}, {pipeline_mode = #tpu.pipeline_mode<synchronous>, transform_indices = @transform_10, window_bounds = array<i64: 2, 32, 32>}, {pipeline_mode = #tpu.pipeline_mode<synchronous>, transform_indices = @transform_11, window_bounds = array<i64: 2, 1, 32>}, {pipeline_mode = #tpu.pipeline_mode<synchronous>, transform_indices = @transform_12, window_bounds = array<i64: 2, 32, 32>}, {pipeline_mode = #tpu.pipeline_mode<synchronous>, transform_indices = @transform_13, window_bounds = array<i64: 2, 1, 32>}, {pipeline_mode = #tpu.pipeline_mode<synchronous>, transform_indices = @transform_14, window_bounds = array<i64: 2, 32, 64>}, {pipeline_mode = #tpu.pipeline_mode<synchronous>, transform_indices = @transform_15, window_bounds = array<i64: 2, 1, 64>}, {pipeline_mode = #tpu.pipeline_mode<synchronous>, transform_indices = @transform_16, window_bounds = array<i64: 2, 32, 32>}, {pipeline_mode = #tpu.pipeline_mode<synchronous>, transform_indices = @transform_17, window_bounds = array<i64: 2, 1, 32>}, {pipeline_mode = #tpu.pipeline_mode<synchronous>, transform_indices = @transform_18, window_bounds = array<i64: 2, 32, 64>}, {pipeline_mode = #tpu.pipeline_mode<synchronous>, transform_indices = @transform_19, window_bounds = array<i64: 2, 1, 64>}, {pipeline_mode = #tpu.pipeline_mode<synchronous>, transform_indices = @transform_20, window_bounds = array<i64: 2, 64, 32>}, {pipeline_mode = #tpu.pipeline_mode<synchronous>, transform_indices = @transform_21, window_bounds = array<i64: 2, 1, 32>}, {pipeline_mode = #tpu.pipeline_mode<synchronous>, transform_indices = @transform_22, window_bounds = array<i64: 32, 32>}, {pipeline_mode = #tpu.pipeline_mode<synchronous>, transform_indices = @transform_23, window_bounds = array<i64: 1, 32>}, {pipeline_mode = #tpu.pipeline_mode<synchronous>, transform_indices = @transform_24, window_bounds = array<i64: 1, 32>}, {pipeline_mode = #tpu.pipeline_mode<synchronous>, transform_indices = @transform_25, window_bounds = array<i64: 1, 32>}, {pipeline_mode = #tpu.pipeline_mode<synchronous>, transform_indices = @transform_26, window_bounds = array<i64: 16, 32>}]} {
    %c0 = arith.constant 0 : index
    %c0_0 = arith.constant 0 : index
    %0 = vector.load %arg1[%c0, %c0_0] : memref<16x1xi32, #tpu.memory_space<vmem>>, vector<16x1xi32>
    %1 = tpu.iota {dimensions = array<i32: 1>} : vector<16x32xi32>
    %2 = vector.broadcast %0 : vector<16x1xi32> to vector<16x32xi32>
    %3 = arith.cmpi eq, %2, %1 : vector<16x32xi32>
    %4 = arith.extui %3 : vector<16x32xi1> to vector<16x32xi32>
    %5 = arith.sitofp %4 : vector<16x32xi32> to vector<16x32xf32>
    %6 = arith.truncf %5 : vector<16x32xf32> to vector<16x32xbf16>
    %c0_1 = arith.constant 0 : index
    %c0_2 = arith.constant 0 : index
    %7 = vector.load %arg6[%c0_1, %c0_2] : memref<32x32xbf16, #tpu.memory_space<vmem>>, vector<32x32xbf16>
    %cst = arith.constant dense<0.000000e+00> : vector<16x32xf32>
    %8 = tpu.matmul %6, %7, %cst {dimension_numbers = #tpu.dot_dimension_numbers<[1], [0], [0], [1], [0, 0, 1, 1], [], []>} : vector<16x32xbf16>, vector<32x32xbf16>, vector<16x32xf32> -> vector<16x32xf32>
    %c0_3 = arith.constant 0 : index
    %c0_4 = arith.constant 0 : index
    %9 = vector.load %arg2[%c0_3, %c0_4] : memref<8x32xf32, #tpu.memory_space<vmem>>, vector<8x32xf32>
    %10 = tpu.concatenate %9, %9 in 0 : vector<8x32xf32>, vector<8x32xf32> -> vector<16x32xf32>
    %11 = arith.addf %8, %10 : vector<16x32xf32>
    %c0_5 = arith.constant 0 : index
    %c0_6 = arith.constant 0 : index
    %12 = vector.load %arg3[%c0_5, %c0_6] : memref<16x32xf32, #tpu.memory_space<vmem>>, vector<16x32xf32>
    %13 = arith.truncf %12 : vector<16x32xf32> to vector<16x32xbf16>
    %c0_7 = arith.constant 0 : index
    %c0_8 = arith.constant 0 : index
    %14 = vector.load %arg4[%c0_7, %c0_8] : memref<16x16xf32, #tpu.memory_space<vmem>>, vector<16x16xf32>
    %c0_9 = arith.constant 0 : index
    %c0_10 = arith.constant 0 : index
    %15 = vector.load %arg5[%c0_9, %c0_10] : memref<16x16xf32, #tpu.memory_space<vmem>>, vector<16x16xf32>
    %c0_11 = arith.constant 0 : index
    %c0_12 = arith.constant 0 : index
    %c0_13 = arith.constant 0 : index
    %16 = vector.load %arg7[%c0_11, %c0_12, %c0_13] : memref<2x3x32xf32, #tpu.memory_space<vmem>>, vector<1x3x32xf32>
    %17 = vector.shape_cast %16 : vector<1x3x32xf32> to vector<3x32xf32>
    %c0_14 = arith.constant 0 : index
    %c0_15 = arith.constant 0 : index
    %c0_16 = arith.constant 0 : index
    %18 = vector.load %arg8[%c0_14, %c0_15, %c0_16] : memref<2x3x32xf32, #tpu.memory_space<vmem>>, vector<1x3x32xf32>
    %19 = vector.shape_cast %18 : vector<1x3x32xf32> to vector<3x32xf32>
    %20 = vector.extract_strided_slice %17 {offsets = [0, 0], sizes = [1, 32], strides = [1, 1]} : vector<3x32xf32> to vector<1x32xf32>
    %21 = vector.extract_strided_slice %19 {offsets = [0, 0], sizes = [1, 32], strides = [1, 1]} : vector<3x32xf32> to vector<1x32xf32>
    %cst_17 = arith.constant dense<0.000000e+00> : vector<16xf32>
    %22 = vector.multi_reduction <add>, %11, %cst_17 [1] : vector<16x32xf32> to vector<16xf32>
    %23 = vector.shape_cast %22 : vector<16xf32> to vector<16x1xf32>
    %cst_18 = arith.constant 3.200000e+01 : f32
    %24 = vector.broadcast %cst_18 : f32 to vector<16x1xf32>
    %25 = arith.divf %23, %24 : vector<16x1xf32>
    %26 = vector.broadcast %25 : vector<16x1xf32> to vector<16x32xf32>
    %27 = arith.subf %11, %26 : vector<16x32xf32>
    %28 = arith.mulf %27, %27 : vector<16x32xf32>
    %cst_19 = arith.constant dense<0.000000e+00> : vector<16xf32>
    %29 = vector.multi_reduction <add>, %28, %cst_19 [1] : vector<16x32xf32> to vector<16xf32>
    %30 = vector.shape_cast %29 : vector<16xf32> to vector<16x1xf32>
    %cst_20 = arith.constant 3.200000e+01 : f32
    %31 = vector.broadcast %cst_20 : f32 to vector<16x1xf32>
    %32 = arith.divf %30, %31 : vector<16x1xf32>
    %33 = vector.broadcast %25 : vector<16x1xf32> to vector<16x32xf32>
    %34 = arith.subf %11, %33 : vector<16x32xf32>
    %cst_21 = arith.constant 9.99999974E-6 : f32
    %35 = vector.broadcast %cst_21 : f32 to vector<16x1xf32>
    %36 = arith.addf %32, %35 : vector<16x1xf32>
    %37 = math.rsqrt %36 : vector<16x1xf32>
    %38 = vector.broadcast %37 : vector<16x1xf32> to vector<16x32xf32>
    %39 = arith.mulf %34, %38 : vector<16x32xf32>
    %40 = vector.broadcast %20 : vector<1x32xf32> to vector<16x32xf32>
    %41 = arith.mulf %39, %40 : vector<16x32xf32>
    %42 = vector.broadcast %21 : vector<1x32xf32> to vector<16x32xf32>
    %43 = arith.addf %41, %42 : vector<16x32xf32>
    %44 = arith.truncf %43 : vector<16x32xf32> to vector<16x32xbf16>
    %c0_22 = arith.constant 0 : index
    %c0_23 = arith.constant 0 : index
    %c0_24 = arith.constant 0 : index
    %45 = vector.load %arg9[%c0_22, %c0_23, %c0_24] : memref<2x32x96xbf16, #tpu.memory_space<vmem>>, vector<1x32x96xbf16>
    %46 = vector.shape_cast %45 : vector<1x32x96xbf16> to vector<32x96xbf16>
    %cst_25 = arith.constant dense<0.000000e+00> : vector<16x96xf32>
    %47 = tpu.matmul %44, %46, %cst_25 {dimension_numbers = #tpu.dot_dimension_numbers<[1], [0], [0], [1], [0, 0, 1, 1], [], []>} : vector<16x32xbf16>, vector<32x96xbf16>, vector<16x96xf32> -> vector<16x96xf32>
    %c0_26 = arith.constant 0 : index
    %c0_27 = arith.constant 0 : index
    %c0_28 = arith.constant 0 : index
    %48 = vector.load %arg10[%c0_26, %c0_27, %c0_28] : memref<2x1x96xf32, #tpu.memory_space<vmem>>, vector<1x1x96xf32>
    %49 = vector.shape_cast %48 : vector<1x1x96xf32> to vector<1x96xf32>
    %50 = vector.broadcast %49 : vector<1x96xf32> to vector<16x96xf32>
    %51 = arith.addf %47, %50 : vector<16x96xf32>
    %52 = vector.extract_strided_slice %51 {offsets = [0, 0], sizes = [16, 32], strides = [1, 1]} : vector<16x96xf32> to vector<16x32xf32>
    %53 = vector.extract_strided_slice %51 {offsets = [0, 32], sizes = [16, 32], strides = [1, 1]} : vector<16x96xf32> to vector<16x32xf32>
    %54 = vector.extract_strided_slice %51 {offsets = [0, 64], sizes = [16, 32], strides = [1, 1]} : vector<16x96xf32> to vector<16x32xf32>
    %55 = arith.truncf %52 : vector<16x32xf32> to vector<16x32xbf16>
    %56 = vector.extract_strided_slice %55 {offsets = [0, 0], sizes = [16, 8], strides = [1, 1]} : vector<16x32xbf16> to vector<16x8xbf16>
    %57 = vector.extract_strided_slice %55 {offsets = [0, 8], sizes = [16, 8], strides = [1, 1]} : vector<16x32xbf16> to vector<16x8xbf16>
    %58 = vector.extract_strided_slice %55 {offsets = [0, 16], sizes = [16, 8], strides = [1, 1]} : vector<16x32xbf16> to vector<16x8xbf16>
    %59 = vector.extract_strided_slice %55 {offsets = [0, 24], sizes = [16, 8], strides = [1, 1]} : vector<16x32xbf16> to vector<16x8xbf16>
    %60 = vector.shape_cast %56 : vector<16x8xbf16> to vector<1x16x8xbf16>
    %61 = vector.shape_cast %57 : vector<16x8xbf16> to vector<1x16x8xbf16>
    %62 = vector.shape_cast %58 : vector<16x8xbf16> to vector<1x16x8xbf16>
    %63 = vector.shape_cast %59 : vector<16x8xbf16> to vector<1x16x8xbf16>
    %64 = tpu.concatenate %60, %61, %62, %63 in 0 : vector<1x16x8xbf16>, vector<1x16x8xbf16>, vector<1x16x8xbf16>, vector<1x16x8xbf16> -> vector<4x16x8xbf16>
    %65 = arith.truncf %53 : vector<16x32xf32> to vector<16x32xbf16>
    %66 = vector.extract_strided_slice %65 {offsets = [0, 0], sizes = [16, 8], strides = [1, 1]} : vector<16x32xbf16> to vector<16x8xbf16>
    %67 = vector.extract_strided_slice %65 {offsets = [0, 8], sizes = [16, 8], strides = [1, 1]} : vector<16x32xbf16> to vector<16x8xbf16>
    %68 = vector.extract_strided_slice %65 {offsets = [0, 16], sizes = [16, 8], strides = [1, 1]} : vector<16x32xbf16> to vector<16x8xbf16>
    %69 = vector.extract_strided_slice %65 {offsets = [0, 24], sizes = [16, 8], strides = [1, 1]} : vector<16x32xbf16> to vector<16x8xbf16>
    %70 = vector.shape_cast %66 : vector<16x8xbf16> to vector<1x16x8xbf16>
    %71 = vector.shape_cast %67 : vector<16x8xbf16> to vector<1x16x8xbf16>
    %72 = vector.shape_cast %68 : vector<16x8xbf16> to vector<1x16x8xbf16>
    %73 = vector.shape_cast %69 : vector<16x8xbf16> to vector<1x16x8xbf16>
    %74 = tpu.concatenate %70, %71, %72, %73 in 0 : vector<1x16x8xbf16>, vector<1x16x8xbf16>, vector<1x16x8xbf16>, vector<1x16x8xbf16> -> vector<4x16x8xbf16>
    %75 = arith.truncf %54 : vector<16x32xf32> to vector<16x32xbf16>
    %76 = vector.extract_strided_slice %75 {offsets = [0, 0], sizes = [16, 8], strides = [1, 1]} : vector<16x32xbf16> to vector<16x8xbf16>
    %77 = vector.extract_strided_slice %75 {offsets = [0, 8], sizes = [16, 8], strides = [1, 1]} : vector<16x32xbf16> to vector<16x8xbf16>
    %78 = vector.extract_strided_slice %75 {offsets = [0, 16], sizes = [16, 8], strides = [1, 1]} : vector<16x32xbf16> to vector<16x8xbf16>
    %79 = vector.extract_strided_slice %75 {offsets = [0, 24], sizes = [16, 8], strides = [1, 1]} : vector<16x32xbf16> to vector<16x8xbf16>
    %80 = vector.shape_cast %76 : vector<16x8xbf16> to vector<1x16x8xbf16>
    %81 = vector.shape_cast %77 : vector<16x8xbf16> to vector<1x16x8xbf16>
    %82 = vector.shape_cast %78 : vector<16x8xbf16> to vector<1x16x8xbf16>
    %83 = vector.shape_cast %79 : vector<16x8xbf16> to vector<1x16x8xbf16>
    %84 = tpu.concatenate %80, %81, %82, %83 in 0 : vector<1x16x8xbf16>, vector<1x16x8xbf16>, vector<1x16x8xbf16>, vector<1x16x8xbf16> -> vector<4x16x8xbf16>
    "tpu.trace_start"() <{level = 10 : i32, message = "hqd,hkd->hqk"}> : () -> ()
    %cst_29 = arith.constant dense<0.000000e+00> : vector<4x16x16xf32>
    %85 = tpu.matmul %64, %74, %cst_29 {dimension_numbers = #tpu.dot_dimension_numbers<[2], [2], [1], [1], [0, 0, 0, 1, 1, 1], [0], [0]>} : vector<4x16x8xbf16>, vector<4x16x8xbf16>, vector<4x16x16xf32> -> vector<4x16x16xf32>
    "tpu.trace_stop"() : () -> ()
    %cst_30 = arith.constant 0.353553385 : f32
    %86 = vector.broadcast %cst_30 : f32 to vector<4x16x16xf32>
    %87 = arith.mulf %85, %86 : vector<4x16x16xf32>
    %88 = vector.shape_cast %14 : vector<16x16xf32> to vector<1x16x16xf32>
    %89 = vector.broadcast %88 : vector<1x16x16xf32> to vector<4x16x16xf32>
    %90 = arith.addf %87, %89 : vector<4x16x16xf32>
    %cst_31 = arith.constant dense<0xFF800000> : vector<4x16xf32>
    %91 = vector.multi_reduction <maximumf>, %90, %cst_31 [2] : vector<4x16x16xf32> to vector<4x16xf32>
    %92 = vector.shape_cast %91 : vector<4x16xf32> to vector<4x16x1xf32>
    %93 = vector.broadcast %92 : vector<4x16x1xf32> to vector<4x16x16xf32>
    %94 = arith.subf %90, %93 : vector<4x16x16xf32>
    %95 = math.exp %94 : vector<4x16x16xf32>
    %cst_32 = arith.constant dense<0.000000e+00> : vector<4x16xf32>
    %96 = vector.multi_reduction <add>, %95, %cst_32 [2] : vector<4x16x16xf32> to vector<4x16xf32>
    %97 = vector.shape_cast %96 : vector<4x16xf32> to vector<4x16x1xf32>
    %98 = tpu.reciprocal %97 : vector<4x16x1xf32> -> vector<4x16x1xf32>
    %99 = vector.broadcast %98 : vector<4x16x1xf32> to vector<4x16x16xf32>
    %100 = arith.mulf %95, %99 : vector<4x16x16xf32>
    %101 = arith.truncf %100 : vector<4x16x16xf32> to vector<4x16x16xbf16>
    "tpu.trace_start"() <{level = 10 : i32, message = "hqk,hkd->hqd"}> : () -> ()
    %cst_33 = arith.constant dense<0.000000e+00> : vector<4x16x8xf32>
    %102 = tpu.matmul %101, %84, %cst_33 {dimension_numbers = #tpu.dot_dimension_numbers<[2], [1], [1], [2], [0, 0, 0, 1, 1, 2], [0], [0]>} : vector<4x16x16xbf16>, vector<4x16x8xbf16>, vector<4x16x8xf32> -> vector<4x16x8xf32>
    "tpu.trace_stop"() : () -> ()
    %103 = vector.extract_strided_slice %102 {offsets = [0, 0, 0], sizes = [1, 16, 8], strides = [1, 1, 1]} : vector<4x16x8xf32> to vector<1x16x8xf32>
    %104 = vector.shape_cast %103 : vector<1x16x8xf32> to vector<16x8xf32>
    %105 = vector.extract_strided_slice %102 {offsets = [1, 0, 0], sizes = [1, 16, 8], strides = [1, 1, 1]} : vector<4x16x8xf32> to vector<1x16x8xf32>
    %106 = vector.shape_cast %105 : vector<1x16x8xf32> to vector<16x8xf32>
    %107 = vector.extract_strided_slice %102 {offsets = [2, 0, 0], sizes = [1, 16, 8], strides = [1, 1, 1]} : vector<4x16x8xf32> to vector<1x16x8xf32>
    %108 = vector.shape_cast %107 : vector<1x16x8xf32> to vector<16x8xf32>
    %109 = vector.extract_strided_slice %102 {offsets = [3, 0, 0], sizes = [1, 16, 8], strides = [1, 1, 1]} : vector<4x16x8xf32> to vector<1x16x8xf32>
    %110 = vector.shape_cast %109 : vector<1x16x8xf32> to vector<16x8xf32>
    %111 = tpu.concatenate %104, %106, %108, %110 in 1 : vector<16x8xf32>, vector<16x8xf32>, vector<16x8xf32>, vector<16x8xf32> -> vector<16x32xf32>
    %112 = arith.truncf %111 : vector<16x32xf32> to vector<16x32xbf16>
    %c0_34 = arith.constant 0 : index
    %c0_35 = arith.constant 0 : index
    %c0_36 = arith.constant 0 : index
    %113 = vector.load %arg11[%c0_34, %c0_35, %c0_36] : memref<2x32x32xbf16, #tpu.memory_space<vmem>>, vector<1x32x32xbf16>
    %114 = vector.shape_cast %113 : vector<1x32x32xbf16> to vector<32x32xbf16>
    %cst_37 = arith.constant dense<0.000000e+00> : vector<16x32xf32>
    %115 = tpu.matmul %112, %114, %cst_37 {dimension_numbers = #tpu.dot_dimension_numbers<[1], [0], [0], [1], [0, 0, 1, 1], [], []>} : vector<16x32xbf16>, vector<32x32xbf16>, vector<16x32xf32> -> vector<16x32xf32>
    %c0_38 = arith.constant 0 : index
    %c0_39 = arith.constant 0 : index
    %c0_40 = arith.constant 0 : index
    %116 = vector.load %arg12[%c0_38, %c0_39, %c0_40] : memref<2x1x32xf32, #tpu.memory_space<vmem>>, vector<1x1x32xf32>
    %117 = vector.shape_cast %116 : vector<1x1x32xf32> to vector<1x32xf32>
    %118 = vector.broadcast %117 : vector<1x32xf32> to vector<16x32xf32>
    %119 = arith.addf %115, %118 : vector<16x32xf32>
    %120 = arith.addf %11, %119 : vector<16x32xf32>
    %121 = vector.extract_strided_slice %17 {offsets = [1, 0], sizes = [1, 32], strides = [1, 1]} : vector<3x32xf32> to vector<1x32xf32>
    %122 = vector.extract_strided_slice %19 {offsets = [1, 0], sizes = [1, 32], strides = [1, 1]} : vector<3x32xf32> to vector<1x32xf32>
    %cst_41 = arith.constant dense<0.000000e+00> : vector<16xf32>
    %123 = vector.multi_reduction <add>, %120, %cst_41 [1] : vector<16x32xf32> to vector<16xf32>
    %124 = vector.shape_cast %123 : vector<16xf32> to vector<16x1xf32>
    %cst_42 = arith.constant 3.200000e+01 : f32
    %125 = vector.broadcast %cst_42 : f32 to vector<16x1xf32>
    %126 = arith.divf %124, %125 : vector<16x1xf32>
    %127 = vector.broadcast %126 : vector<16x1xf32> to vector<16x32xf32>
    %128 = arith.subf %120, %127 : vector<16x32xf32>
    %129 = arith.mulf %128, %128 : vector<16x32xf32>
    %cst_43 = arith.constant dense<0.000000e+00> : vector<16xf32>
    %130 = vector.multi_reduction <add>, %129, %cst_43 [1] : vector<16x32xf32> to vector<16xf32>
    %131 = vector.shape_cast %130 : vector<16xf32> to vector<16x1xf32>
    %cst_44 = arith.constant 3.200000e+01 : f32
    %132 = vector.broadcast %cst_44 : f32 to vector<16x1xf32>
    %133 = arith.divf %131, %132 : vector<16x1xf32>
    %134 = vector.broadcast %126 : vector<16x1xf32> to vector<16x32xf32>
    %135 = arith.subf %120, %134 : vector<16x32xf32>
    %cst_45 = arith.constant 9.99999974E-6 : f32
    %136 = vector.broadcast %cst_45 : f32 to vector<16x1xf32>
    %137 = arith.addf %133, %136 : vector<16x1xf32>
    %138 = math.rsqrt %137 : vector<16x1xf32>
    %139 = vector.broadcast %138 : vector<16x1xf32> to vector<16x32xf32>
    %140 = arith.mulf %135, %139 : vector<16x32xf32>
    %141 = vector.broadcast %121 : vector<1x32xf32> to vector<16x32xf32>
    %142 = arith.mulf %140, %141 : vector<16x32xf32>
    %143 = vector.broadcast %122 : vector<1x32xf32> to vector<16x32xf32>
    %144 = arith.addf %142, %143 : vector<16x32xf32>
    %145 = arith.truncf %144 : vector<16x32xf32> to vector<16x32xbf16>
    %c0_46 = arith.constant 0 : index
    %c0_47 = arith.constant 0 : index
    %c0_48 = arith.constant 0 : index
    %146 = vector.load %arg13[%c0_46, %c0_47, %c0_48] : memref<2x32x32xbf16, #tpu.memory_space<vmem>>, vector<1x32x32xbf16>
    %147 = vector.shape_cast %146 : vector<1x32x32xbf16> to vector<32x32xbf16>
    %cst_49 = arith.constant dense<0.000000e+00> : vector<16x32xf32>
    %148 = tpu.matmul %145, %147, %cst_49 {dimension_numbers = #tpu.dot_dimension_numbers<[1], [0], [0], [1], [0, 0, 1, 1], [], []>} : vector<16x32xbf16>, vector<32x32xbf16>, vector<16x32xf32> -> vector<16x32xf32>
    %c0_50 = arith.constant 0 : index
    %c0_51 = arith.constant 0 : index
    %c0_52 = arith.constant 0 : index
    %149 = vector.load %arg14[%c0_50, %c0_51, %c0_52] : memref<2x1x32xf32, #tpu.memory_space<vmem>>, vector<1x1x32xf32>
    %150 = vector.shape_cast %149 : vector<1x1x32xf32> to vector<1x32xf32>
    %151 = vector.broadcast %150 : vector<1x32xf32> to vector<16x32xf32>
    %152 = arith.addf %148, %151 : vector<16x32xf32>
    %c0_53 = arith.constant 0 : index
    %c0_54 = arith.constant 0 : index
    %c0_55 = arith.constant 0 : index
    %153 = vector.load %arg15[%c0_53, %c0_54, %c0_55] : memref<2x32x64xbf16, #tpu.memory_space<vmem>>, vector<1x32x64xbf16>
    %154 = vector.shape_cast %153 : vector<1x32x64xbf16> to vector<32x64xbf16>
    %cst_56 = arith.constant dense<0.000000e+00> : vector<16x64xf32>
    %155 = tpu.matmul %13, %154, %cst_56 {dimension_numbers = #tpu.dot_dimension_numbers<[1], [0], [0], [1], [0, 0, 1, 1], [], []>} : vector<16x32xbf16>, vector<32x64xbf16>, vector<16x64xf32> -> vector<16x64xf32>
    %c0_57 = arith.constant 0 : index
    %c0_58 = arith.constant 0 : index
    %c0_59 = arith.constant 0 : index
    %156 = vector.load %arg16[%c0_57, %c0_58, %c0_59] : memref<2x1x64xf32, #tpu.memory_space<vmem>>, vector<1x1x64xf32>
    %157 = vector.shape_cast %156 : vector<1x1x64xf32> to vector<1x64xf32>
    %158 = vector.broadcast %157 : vector<1x64xf32> to vector<16x64xf32>
    %159 = arith.addf %155, %158 : vector<16x64xf32>
    %160 = vector.extract_strided_slice %159 {offsets = [0, 0], sizes = [16, 32], strides = [1, 1]} : vector<16x64xf32> to vector<16x32xf32>
    %161 = vector.extract_strided_slice %159 {offsets = [0, 32], sizes = [16, 32], strides = [1, 1]} : vector<16x64xf32> to vector<16x32xf32>
    %162 = arith.truncf %152 : vector<16x32xf32> to vector<16x32xbf16>
    %163 = vector.extract_strided_slice %162 {offsets = [0, 0], sizes = [16, 8], strides = [1, 1]} : vector<16x32xbf16> to vector<16x8xbf16>
    %164 = vector.extract_strided_slice %162 {offsets = [0, 8], sizes = [16, 8], strides = [1, 1]} : vector<16x32xbf16> to vector<16x8xbf16>
    %165 = vector.extract_strided_slice %162 {offsets = [0, 16], sizes = [16, 8], strides = [1, 1]} : vector<16x32xbf16> to vector<16x8xbf16>
    %166 = vector.extract_strided_slice %162 {offsets = [0, 24], sizes = [16, 8], strides = [1, 1]} : vector<16x32xbf16> to vector<16x8xbf16>
    %167 = vector.shape_cast %163 : vector<16x8xbf16> to vector<1x16x8xbf16>
    %168 = vector.shape_cast %164 : vector<16x8xbf16> to vector<1x16x8xbf16>
    %169 = vector.shape_cast %165 : vector<16x8xbf16> to vector<1x16x8xbf16>
    %170 = vector.shape_cast %166 : vector<16x8xbf16> to vector<1x16x8xbf16>
    %171 = tpu.concatenate %167, %168, %169, %170 in 0 : vector<1x16x8xbf16>, vector<1x16x8xbf16>, vector<1x16x8xbf16>, vector<1x16x8xbf16> -> vector<4x16x8xbf16>
    %172 = arith.truncf %160 : vector<16x32xf32> to vector<16x32xbf16>
    %173 = vector.extract_strided_slice %172 {offsets = [0, 0], sizes = [16, 8], strides = [1, 1]} : vector<16x32xbf16> to vector<16x8xbf16>
    %174 = vector.extract_strided_slice %172 {offsets = [0, 8], sizes = [16, 8], strides = [1, 1]} : vector<16x32xbf16> to vector<16x8xbf16>
    %175 = vector.extract_strided_slice %172 {offsets = [0, 16], sizes = [16, 8], strides = [1, 1]} : vector<16x32xbf16> to vector<16x8xbf16>
    %176 = vector.extract_strided_slice %172 {offsets = [0, 24], sizes = [16, 8], strides = [1, 1]} : vector<16x32xbf16> to vector<16x8xbf16>
    %177 = vector.shape_cast %173 : vector<16x8xbf16> to vector<1x16x8xbf16>
    %178 = vector.shape_cast %174 : vector<16x8xbf16> to vector<1x16x8xbf16>
    %179 = vector.shape_cast %175 : vector<16x8xbf16> to vector<1x16x8xbf16>
    %180 = vector.shape_cast %176 : vector<16x8xbf16> to vector<1x16x8xbf16>
    %181 = tpu.concatenate %177, %178, %179, %180 in 0 : vector<1x16x8xbf16>, vector<1x16x8xbf16>, vector<1x16x8xbf16>, vector<1x16x8xbf16> -> vector<4x16x8xbf16>
    %182 = arith.truncf %161 : vector<16x32xf32> to vector<16x32xbf16>
    %183 = vector.extract_strided_slice %182 {offsets = [0, 0], sizes = [16, 8], strides = [1, 1]} : vector<16x32xbf16> to vector<16x8xbf16>
    %184 = vector.extract_strided_slice %182 {offsets = [0, 8], sizes = [16, 8], strides = [1, 1]} : vector<16x32xbf16> to vector<16x8xbf16>
    %185 = vector.extract_strided_slice %182 {offsets = [0, 16], sizes = [16, 8], strides = [1, 1]} : vector<16x32xbf16> to vector<16x8xbf16>
    %186 = vector.extract_strided_slice %182 {offsets = [0, 24], sizes = [16, 8], strides = [1, 1]} : vector<16x32xbf16> to vector<16x8xbf16>
    %187 = vector.shape_cast %183 : vector<16x8xbf16> to vector<1x16x8xbf16>
    %188 = vector.shape_cast %184 : vector<16x8xbf16> to vector<1x16x8xbf16>
    %189 = vector.shape_cast %185 : vector<16x8xbf16> to vector<1x16x8xbf16>
    %190 = vector.shape_cast %186 : vector<16x8xbf16> to vector<1x16x8xbf16>
    %191 = tpu.concatenate %187, %188, %189, %190 in 0 : vector<1x16x8xbf16>, vector<1x16x8xbf16>, vector<1x16x8xbf16>, vector<1x16x8xbf16> -> vector<4x16x8xbf16>
    "tpu.trace_start"() <{level = 10 : i32, message = "hqd,hkd->hqk"}> : () -> ()
    %cst_60 = arith.constant dense<0.000000e+00> : vector<4x16x16xf32>
    %192 = tpu.matmul %171, %181, %cst_60 {dimension_numbers = #tpu.dot_dimension_numbers<[2], [2], [1], [1], [0, 0, 0, 1, 1, 1], [0], [0]>} : vector<4x16x8xbf16>, vector<4x16x8xbf16>, vector<4x16x16xf32> -> vector<4x16x16xf32>
    "tpu.trace_stop"() : () -> ()
    %cst_61 = arith.constant 0.353553385 : f32
    %193 = vector.broadcast %cst_61 : f32 to vector<4x16x16xf32>
    %194 = arith.mulf %192, %193 : vector<4x16x16xf32>
    %195 = vector.shape_cast %15 : vector<16x16xf32> to vector<1x16x16xf32>
    %196 = vector.broadcast %195 : vector<1x16x16xf32> to vector<4x16x16xf32>
    %197 = arith.addf %194, %196 : vector<4x16x16xf32>
    %cst_62 = arith.constant dense<0xFF800000> : vector<4x16xf32>
    %198 = vector.multi_reduction <maximumf>, %197, %cst_62 [2] : vector<4x16x16xf32> to vector<4x16xf32>
    %199 = vector.shape_cast %198 : vector<4x16xf32> to vector<4x16x1xf32>
    %200 = vector.broadcast %199 : vector<4x16x1xf32> to vector<4x16x16xf32>
    %201 = arith.subf %197, %200 : vector<4x16x16xf32>
    %202 = math.exp %201 : vector<4x16x16xf32>
    %cst_63 = arith.constant dense<0.000000e+00> : vector<4x16xf32>
    %203 = vector.multi_reduction <add>, %202, %cst_63 [2] : vector<4x16x16xf32> to vector<4x16xf32>
    %204 = vector.shape_cast %203 : vector<4x16xf32> to vector<4x16x1xf32>
    %205 = tpu.reciprocal %204 : vector<4x16x1xf32> -> vector<4x16x1xf32>
    %206 = vector.broadcast %205 : vector<4x16x1xf32> to vector<4x16x16xf32>
    %207 = arith.mulf %202, %206 : vector<4x16x16xf32>
    %208 = arith.truncf %207 : vector<4x16x16xf32> to vector<4x16x16xbf16>
    "tpu.trace_start"() <{level = 10 : i32, message = "hqk,hkd->hqd"}> : () -> ()
    %cst_64 = arith.constant dense<0.000000e+00> : vector<4x16x8xf32>
    %209 = tpu.matmul %208, %191, %cst_64 {dimension_numbers = #tpu.dot_dimension_numbers<[2], [1], [1], [2], [0, 0, 0, 1, 1, 2], [0], [0]>} : vector<4x16x16xbf16>, vector<4x16x8xbf16>, vector<4x16x8xf32> -> vector<4x16x8xf32>
    "tpu.trace_stop"() : () -> ()
    %210 = vector.extract_strided_slice %209 {offsets = [0, 0, 0], sizes = [1, 16, 8], strides = [1, 1, 1]} : vector<4x16x8xf32> to vector<1x16x8xf32>
    %211 = vector.shape_cast %210 : vector<1x16x8xf32> to vector<16x8xf32>
    %212 = vector.extract_strided_slice %209 {offsets = [1, 0, 0], sizes = [1, 16, 8], strides = [1, 1, 1]} : vector<4x16x8xf32> to vector<1x16x8xf32>
    %213 = vector.shape_cast %212 : vector<1x16x8xf32> to vector<16x8xf32>
    %214 = vector.extract_strided_slice %209 {offsets = [2, 0, 0], sizes = [1, 16, 8], strides = [1, 1, 1]} : vector<4x16x8xf32> to vector<1x16x8xf32>
    %215 = vector.shape_cast %214 : vector<1x16x8xf32> to vector<16x8xf32>
    %216 = vector.extract_strided_slice %209 {offsets = [3, 0, 0], sizes = [1, 16, 8], strides = [1, 1, 1]} : vector<4x16x8xf32> to vector<1x16x8xf32>
    %217 = vector.shape_cast %216 : vector<1x16x8xf32> to vector<16x8xf32>
    %218 = tpu.concatenate %211, %213, %215, %217 in 1 : vector<16x8xf32>, vector<16x8xf32>, vector<16x8xf32>, vector<16x8xf32> -> vector<16x32xf32>
    %219 = arith.truncf %218 : vector<16x32xf32> to vector<16x32xbf16>
    %c0_65 = arith.constant 0 : index
    %c0_66 = arith.constant 0 : index
    %c0_67 = arith.constant 0 : index
    %220 = vector.load %arg17[%c0_65, %c0_66, %c0_67] : memref<2x32x32xbf16, #tpu.memory_space<vmem>>, vector<1x32x32xbf16>
    %221 = vector.shape_cast %220 : vector<1x32x32xbf16> to vector<32x32xbf16>
    %cst_68 = arith.constant dense<0.000000e+00> : vector<16x32xf32>
    %222 = tpu.matmul %219, %221, %cst_68 {dimension_numbers = #tpu.dot_dimension_numbers<[1], [0], [0], [1], [0, 0, 1, 1], [], []>} : vector<16x32xbf16>, vector<32x32xbf16>, vector<16x32xf32> -> vector<16x32xf32>
    %c0_69 = arith.constant 0 : index
    %c0_70 = arith.constant 0 : index
    %c0_71 = arith.constant 0 : index
    %223 = vector.load %arg18[%c0_69, %c0_70, %c0_71] : memref<2x1x32xf32, #tpu.memory_space<vmem>>, vector<1x1x32xf32>
    %224 = vector.shape_cast %223 : vector<1x1x32xf32> to vector<1x32xf32>
    %225 = vector.broadcast %224 : vector<1x32xf32> to vector<16x32xf32>
    %226 = arith.addf %222, %225 : vector<16x32xf32>
    %227 = arith.addf %120, %226 : vector<16x32xf32>
    %228 = vector.extract_strided_slice %17 {offsets = [2, 0], sizes = [1, 32], strides = [1, 1]} : vector<3x32xf32> to vector<1x32xf32>
    %229 = vector.extract_strided_slice %19 {offsets = [2, 0], sizes = [1, 32], strides = [1, 1]} : vector<3x32xf32> to vector<1x32xf32>
    %cst_72 = arith.constant dense<0.000000e+00> : vector<16xf32>
    %230 = vector.multi_reduction <add>, %227, %cst_72 [1] : vector<16x32xf32> to vector<16xf32>
    %231 = vector.shape_cast %230 : vector<16xf32> to vector<16x1xf32>
    %cst_73 = arith.constant 3.200000e+01 : f32
    %232 = vector.broadcast %cst_73 : f32 to vector<16x1xf32>
    %233 = arith.divf %231, %232 : vector<16x1xf32>
    %234 = vector.broadcast %233 : vector<16x1xf32> to vector<16x32xf32>
    %235 = arith.subf %227, %234 : vector<16x32xf32>
    %236 = arith.mulf %235, %235 : vector<16x32xf32>
    %cst_74 = arith.constant dense<0.000000e+00> : vector<16xf32>
    %237 = vector.multi_reduction <add>, %236, %cst_74 [1] : vector<16x32xf32> to vector<16xf32>
    %238 = vector.shape_cast %237 : vector<16xf32> to vector<16x1xf32>
    %cst_75 = arith.constant 3.200000e+01 : f32
    %239 = vector.broadcast %cst_75 : f32 to vector<16x1xf32>
    %240 = arith.divf %238, %239 : vector<16x1xf32>
    %241 = vector.broadcast %233 : vector<16x1xf32> to vector<16x32xf32>
    %242 = arith.subf %227, %241 : vector<16x32xf32>
    %cst_76 = arith.constant 9.99999974E-6 : f32
    %243 = vector.broadcast %cst_76 : f32 to vector<16x1xf32>
    %244 = arith.addf %240, %243 : vector<16x1xf32>
    %245 = math.rsqrt %244 : vector<16x1xf32>
    %246 = vector.broadcast %245 : vector<16x1xf32> to vector<16x32xf32>
    %247 = arith.mulf %242, %246 : vector<16x32xf32>
    %248 = vector.broadcast %228 : vector<1x32xf32> to vector<16x32xf32>
    %249 = arith.mulf %247, %248 : vector<16x32xf32>
    %250 = vector.broadcast %229 : vector<1x32xf32> to vector<16x32xf32>
    %251 = arith.addf %249, %250 : vector<16x32xf32>
    %252 = arith.truncf %251 : vector<16x32xf32> to vector<16x32xbf16>
    %c0_77 = arith.constant 0 : index
    %c0_78 = arith.constant 0 : index
    %c0_79 = arith.constant 0 : index
    %253 = vector.load %arg19[%c0_77, %c0_78, %c0_79] : memref<2x32x64xbf16, #tpu.memory_space<vmem>>, vector<1x32x64xbf16>
    %254 = vector.shape_cast %253 : vector<1x32x64xbf16> to vector<32x64xbf16>
    %cst_80 = arith.constant dense<0.000000e+00> : vector<16x64xf32>
    %255 = tpu.matmul %252, %254, %cst_80 {dimension_numbers = #tpu.dot_dimension_numbers<[1], [0], [0], [1], [0, 0, 1, 1], [], []>} : vector<16x32xbf16>, vector<32x64xbf16>, vector<16x64xf32> -> vector<16x64xf32>
    %c0_81 = arith.constant 0 : index
    %c0_82 = arith.constant 0 : index
    %c0_83 = arith.constant 0 : index
    %256 = vector.load %arg20[%c0_81, %c0_82, %c0_83] : memref<2x1x64xf32, #tpu.memory_space<vmem>>, vector<1x1x64xf32>
    %257 = vector.shape_cast %256 : vector<1x1x64xf32> to vector<1x64xf32>
    %258 = vector.broadcast %257 : vector<1x64xf32> to vector<16x64xf32>
    %259 = arith.addf %255, %258 : vector<16x64xf32>
    %cst_84 = arith.constant 0.000000e+00 : f32
    %260 = vector.broadcast %cst_84 : f32 to vector<16x64xf32>
    %261 = arith.maximumf %259, %260 : vector<16x64xf32>
    %262 = arith.truncf %261 : vector<16x64xf32> to vector<16x64xbf16>
    %c0_85 = arith.constant 0 : index
    %c0_86 = arith.constant 0 : index
    %c0_87 = arith.constant 0 : index
    %263 = vector.load %arg21[%c0_85, %c0_86, %c0_87] : memref<2x64x32xbf16, #tpu.memory_space<vmem>>, vector<1x64x32xbf16>
    %264 = vector.shape_cast %263 : vector<1x64x32xbf16> to vector<64x32xbf16>
    %cst_88 = arith.constant dense<0.000000e+00> : vector<16x32xf32>
    %265 = tpu.matmul %262, %264, %cst_88 {dimension_numbers = #tpu.dot_dimension_numbers<[1], [0], [0], [1], [0, 0, 1, 1], [], []>} : vector<16x64xbf16>, vector<64x32xbf16>, vector<16x32xf32> -> vector<16x32xf32>
    %c0_89 = arith.constant 0 : index
    %c0_90 = arith.constant 0 : index
    %c0_91 = arith.constant 0 : index
    %266 = vector.load %arg22[%c0_89, %c0_90, %c0_91] : memref<2x1x32xf32, #tpu.memory_space<vmem>>, vector<1x1x32xf32>
    %267 = vector.shape_cast %266 : vector<1x1x32xf32> to vector<1x32xf32>
    %268 = vector.broadcast %267 : vector<1x32xf32> to vector<16x32xf32>
    %269 = arith.addf %265, %268 : vector<16x32xf32>
    %270 = arith.addf %227, %269 : vector<16x32xf32>
    %c1 = arith.constant 1 : index
    %c0_92 = arith.constant 0 : index
    %c0_93 = arith.constant 0 : index
    %271 = vector.load %arg7[%c1, %c0_92, %c0_93] : memref<2x3x32xf32, #tpu.memory_space<vmem>>, vector<1x3x32xf32>
    %272 = vector.shape_cast %271 : vector<1x3x32xf32> to vector<3x32xf32>
    %c1_94 = arith.constant 1 : index
    %c0_95 = arith.constant 0 : index
    %c0_96 = arith.constant 0 : index
    %273 = vector.load %arg8[%c1_94, %c0_95, %c0_96] : memref<2x3x32xf32, #tpu.memory_space<vmem>>, vector<1x3x32xf32>
    %274 = vector.shape_cast %273 : vector<1x3x32xf32> to vector<3x32xf32>
    %275 = vector.extract_strided_slice %272 {offsets = [0, 0], sizes = [1, 32], strides = [1, 1]} : vector<3x32xf32> to vector<1x32xf32>
    %276 = vector.extract_strided_slice %274 {offsets = [0, 0], sizes = [1, 32], strides = [1, 1]} : vector<3x32xf32> to vector<1x32xf32>
    %cst_97 = arith.constant dense<0.000000e+00> : vector<16xf32>
    %277 = vector.multi_reduction <add>, %270, %cst_97 [1] : vector<16x32xf32> to vector<16xf32>
    %278 = vector.shape_cast %277 : vector<16xf32> to vector<16x1xf32>
    %cst_98 = arith.constant 3.200000e+01 : f32
    %279 = vector.broadcast %cst_98 : f32 to vector<16x1xf32>
    %280 = arith.divf %278, %279 : vector<16x1xf32>
    %281 = vector.broadcast %280 : vector<16x1xf32> to vector<16x32xf32>
    %282 = arith.subf %270, %281 : vector<16x32xf32>
    %283 = arith.mulf %282, %282 : vector<16x32xf32>
    %cst_99 = arith.constant dense<0.000000e+00> : vector<16xf32>
    %284 = vector.multi_reduction <add>, %283, %cst_99 [1] : vector<16x32xf32> to vector<16xf32>
    %285 = vector.shape_cast %284 : vector<16xf32> to vector<16x1xf32>
    %cst_100 = arith.constant 3.200000e+01 : f32
    %286 = vector.broadcast %cst_100 : f32 to vector<16x1xf32>
    %287 = arith.divf %285, %286 : vector<16x1xf32>
    %288 = vector.broadcast %280 : vector<16x1xf32> to vector<16x32xf32>
    %289 = arith.subf %270, %288 : vector<16x32xf32>
    %cst_101 = arith.constant 9.99999974E-6 : f32
    %290 = vector.broadcast %cst_101 : f32 to vector<16x1xf32>
    %291 = arith.addf %287, %290 : vector<16x1xf32>
    %292 = math.rsqrt %291 : vector<16x1xf32>
    %293 = vector.broadcast %292 : vector<16x1xf32> to vector<16x32xf32>
    %294 = arith.mulf %289, %293 : vector<16x32xf32>
    %295 = vector.broadcast %275 : vector<1x32xf32> to vector<16x32xf32>
    %296 = arith.mulf %294, %295 : vector<16x32xf32>
    %297 = vector.broadcast %276 : vector<1x32xf32> to vector<16x32xf32>
    %298 = arith.addf %296, %297 : vector<16x32xf32>
    %299 = arith.truncf %298 : vector<16x32xf32> to vector<16x32xbf16>
    %c1_102 = arith.constant 1 : index
    %c0_103 = arith.constant 0 : index
    %c0_104 = arith.constant 0 : index
    %300 = vector.load %arg9[%c1_102, %c0_103, %c0_104] : memref<2x32x96xbf16, #tpu.memory_space<vmem>>, vector<1x32x96xbf16>
    %301 = vector.shape_cast %300 : vector<1x32x96xbf16> to vector<32x96xbf16>
    %cst_105 = arith.constant dense<0.000000e+00> : vector<16x96xf32>
    %302 = tpu.matmul %299, %301, %cst_105 {dimension_numbers = #tpu.dot_dimension_numbers<[1], [0], [0], [1], [0, 0, 1, 1], [], []>} : vector<16x32xbf16>, vector<32x96xbf16>, vector<16x96xf32> -> vector<16x96xf32>
    %c1_106 = arith.constant 1 : index
    %c0_107 = arith.constant 0 : index
    %c0_108 = arith.constant 0 : index
    %303 = vector.load %arg10[%c1_106, %c0_107, %c0_108] : memref<2x1x96xf32, #tpu.memory_space<vmem>>, vector<1x1x96xf32>
    %304 = vector.shape_cast %303 : vector<1x1x96xf32> to vector<1x96xf32>
    %305 = vector.broadcast %304 : vector<1x96xf32> to vector<16x96xf32>
    %306 = arith.addf %302, %305 : vector<16x96xf32>
    %307 = vector.extract_strided_slice %306 {offsets = [0, 0], sizes = [16, 32], strides = [1, 1]} : vector<16x96xf32> to vector<16x32xf32>
    %308 = vector.extract_strided_slice %306 {offsets = [0, 32], sizes = [16, 32], strides = [1, 1]} : vector<16x96xf32> to vector<16x32xf32>
    %309 = vector.extract_strided_slice %306 {offsets = [0, 64], sizes = [16, 32], strides = [1, 1]} : vector<16x96xf32> to vector<16x32xf32>
    %310 = arith.truncf %307 : vector<16x32xf32> to vector<16x32xbf16>
    %311 = vector.extract_strided_slice %310 {offsets = [0, 0], sizes = [16, 8], strides = [1, 1]} : vector<16x32xbf16> to vector<16x8xbf16>
    %312 = vector.extract_strided_slice %310 {offsets = [0, 8], sizes = [16, 8], strides = [1, 1]} : vector<16x32xbf16> to vector<16x8xbf16>
    %313 = vector.extract_strided_slice %310 {offsets = [0, 16], sizes = [16, 8], strides = [1, 1]} : vector<16x32xbf16> to vector<16x8xbf16>
    %314 = vector.extract_strided_slice %310 {offsets = [0, 24], sizes = [16, 8], strides = [1, 1]} : vector<16x32xbf16> to vector<16x8xbf16>
    %315 = vector.shape_cast %311 : vector<16x8xbf16> to vector<1x16x8xbf16>
    %316 = vector.shape_cast %312 : vector<16x8xbf16> to vector<1x16x8xbf16>
    %317 = vector.shape_cast %313 : vector<16x8xbf16> to vector<1x16x8xbf16>
    %318 = vector.shape_cast %314 : vector<16x8xbf16> to vector<1x16x8xbf16>
    %319 = tpu.concatenate %315, %316, %317, %318 in 0 : vector<1x16x8xbf16>, vector<1x16x8xbf16>, vector<1x16x8xbf16>, vector<1x16x8xbf16> -> vector<4x16x8xbf16>
    %320 = arith.truncf %308 : vector<16x32xf32> to vector<16x32xbf16>
    %321 = vector.extract_strided_slice %320 {offsets = [0, 0], sizes = [16, 8], strides = [1, 1]} : vector<16x32xbf16> to vector<16x8xbf16>
    %322 = vector.extract_strided_slice %320 {offsets = [0, 8], sizes = [16, 8], strides = [1, 1]} : vector<16x32xbf16> to vector<16x8xbf16>
    %323 = vector.extract_strided_slice %320 {offsets = [0, 16], sizes = [16, 8], strides = [1, 1]} : vector<16x32xbf16> to vector<16x8xbf16>
    %324 = vector.extract_strided_slice %320 {offsets = [0, 24], sizes = [16, 8], strides = [1, 1]} : vector<16x32xbf16> to vector<16x8xbf16>
    %325 = vector.shape_cast %321 : vector<16x8xbf16> to vector<1x16x8xbf16>
    %326 = vector.shape_cast %322 : vector<16x8xbf16> to vector<1x16x8xbf16>
    %327 = vector.shape_cast %323 : vector<16x8xbf16> to vector<1x16x8xbf16>
    %328 = vector.shape_cast %324 : vector<16x8xbf16> to vector<1x16x8xbf16>
    %329 = tpu.concatenate %325, %326, %327, %328 in 0 : vector<1x16x8xbf16>, vector<1x16x8xbf16>, vector<1x16x8xbf16>, vector<1x16x8xbf16> -> vector<4x16x8xbf16>
    %330 = arith.truncf %309 : vector<16x32xf32> to vector<16x32xbf16>
    %331 = vector.extract_strided_slice %330 {offsets = [0, 0], sizes = [16, 8], strides = [1, 1]} : vector<16x32xbf16> to vector<16x8xbf16>
    %332 = vector.extract_strided_slice %330 {offsets = [0, 8], sizes = [16, 8], strides = [1, 1]} : vector<16x32xbf16> to vector<16x8xbf16>
    %333 = vector.extract_strided_slice %330 {offsets = [0, 16], sizes = [16, 8], strides = [1, 1]} : vector<16x32xbf16> to vector<16x8xbf16>
    %334 = vector.extract_strided_slice %330 {offsets = [0, 24], sizes = [16, 8], strides = [1, 1]} : vector<16x32xbf16> to vector<16x8xbf16>
    %335 = vector.shape_cast %331 : vector<16x8xbf16> to vector<1x16x8xbf16>
    %336 = vector.shape_cast %332 : vector<16x8xbf16> to vector<1x16x8xbf16>
    %337 = vector.shape_cast %333 : vector<16x8xbf16> to vector<1x16x8xbf16>
    %338 = vector.shape_cast %334 : vector<16x8xbf16> to vector<1x16x8xbf16>
    %339 = tpu.concatenate %335, %336, %337, %338 in 0 : vector<1x16x8xbf16>, vector<1x16x8xbf16>, vector<1x16x8xbf16>, vector<1x16x8xbf16> -> vector<4x16x8xbf16>
    "tpu.trace_start"() <{level = 10 : i32, message = "hqd,hkd->hqk"}> : () -> ()
    %cst_109 = arith.constant dense<0.000000e+00> : vector<4x16x16xf32>
    %340 = tpu.matmul %319, %329, %cst_109 {dimension_numbers = #tpu.dot_dimension_numbers<[2], [2], [1], [1], [0, 0, 0, 1, 1, 1], [0], [0]>} : vector<4x16x8xbf16>, vector<4x16x8xbf16>, vector<4x16x16xf32> -> vector<4x16x16xf32>
    "tpu.trace_stop"() : () -> ()
    %cst_110 = arith.constant 0.353553385 : f32
    %341 = vector.broadcast %cst_110 : f32 to vector<4x16x16xf32>
    %342 = arith.mulf %340, %341 : vector<4x16x16xf32>
    %343 = vector.shape_cast %14 : vector<16x16xf32> to vector<1x16x16xf32>
    %344 = vector.broadcast %343 : vector<1x16x16xf32> to vector<4x16x16xf32>
    %345 = arith.addf %342, %344 : vector<4x16x16xf32>
    %cst_111 = arith.constant dense<0xFF800000> : vector<4x16xf32>
    %346 = vector.multi_reduction <maximumf>, %345, %cst_111 [2] : vector<4x16x16xf32> to vector<4x16xf32>
    %347 = vector.shape_cast %346 : vector<4x16xf32> to vector<4x16x1xf32>
    %348 = vector.broadcast %347 : vector<4x16x1xf32> to vector<4x16x16xf32>
    %349 = arith.subf %345, %348 : vector<4x16x16xf32>
    %350 = math.exp %349 : vector<4x16x16xf32>
    %cst_112 = arith.constant dense<0.000000e+00> : vector<4x16xf32>
    %351 = vector.multi_reduction <add>, %350, %cst_112 [2] : vector<4x16x16xf32> to vector<4x16xf32>
    %352 = vector.shape_cast %351 : vector<4x16xf32> to vector<4x16x1xf32>
    %353 = tpu.reciprocal %352 : vector<4x16x1xf32> -> vector<4x16x1xf32>
    %354 = vector.broadcast %353 : vector<4x16x1xf32> to vector<4x16x16xf32>
    %355 = arith.mulf %350, %354 : vector<4x16x16xf32>
    %356 = arith.truncf %355 : vector<4x16x16xf32> to vector<4x16x16xbf16>
    "tpu.trace_start"() <{level = 10 : i32, message = "hqk,hkd->hqd"}> : () -> ()
    %cst_113 = arith.constant dense<0.000000e+00> : vector<4x16x8xf32>
    %357 = tpu.matmul %356, %339, %cst_113 {dimension_numbers = #tpu.dot_dimension_numbers<[2], [1], [1], [2], [0, 0, 0, 1, 1, 2], [0], [0]>} : vector<4x16x16xbf16>, vector<4x16x8xbf16>, vector<4x16x8xf32> -> vector<4x16x8xf32>
    "tpu.trace_stop"() : () -> ()
    %358 = vector.extract_strided_slice %357 {offsets = [0, 0, 0], sizes = [1, 16, 8], strides = [1, 1, 1]} : vector<4x16x8xf32> to vector<1x16x8xf32>
    %359 = vector.shape_cast %358 : vector<1x16x8xf32> to vector<16x8xf32>
    %360 = vector.extract_strided_slice %357 {offsets = [1, 0, 0], sizes = [1, 16, 8], strides = [1, 1, 1]} : vector<4x16x8xf32> to vector<1x16x8xf32>
    %361 = vector.shape_cast %360 : vector<1x16x8xf32> to vector<16x8xf32>
    %362 = vector.extract_strided_slice %357 {offsets = [2, 0, 0], sizes = [1, 16, 8], strides = [1, 1, 1]} : vector<4x16x8xf32> to vector<1x16x8xf32>
    %363 = vector.shape_cast %362 : vector<1x16x8xf32> to vector<16x8xf32>
    %364 = vector.extract_strided_slice %357 {offsets = [3, 0, 0], sizes = [1, 16, 8], strides = [1, 1, 1]} : vector<4x16x8xf32> to vector<1x16x8xf32>
    %365 = vector.shape_cast %364 : vector<1x16x8xf32> to vector<16x8xf32>
    %366 = tpu.concatenate %359, %361, %363, %365 in 1 : vector<16x8xf32>, vector<16x8xf32>, vector<16x8xf32>, vector<16x8xf32> -> vector<16x32xf32>
    %367 = arith.truncf %366 : vector<16x32xf32> to vector<16x32xbf16>
    %c1_114 = arith.constant 1 : index
    %c0_115 = arith.constant 0 : index
    %c0_116 = arith.constant 0 : index
    %368 = vector.load %arg11[%c1_114, %c0_115, %c0_116] : memref<2x32x32xbf16, #tpu.memory_space<vmem>>, vector<1x32x32xbf16>
    %369 = vector.shape_cast %368 : vector<1x32x32xbf16> to vector<32x32xbf16>
    %cst_117 = arith.constant dense<0.000000e+00> : vector<16x32xf32>
    %370 = tpu.matmul %367, %369, %cst_117 {dimension_numbers = #tpu.dot_dimension_numbers<[1], [0], [0], [1], [0, 0, 1, 1], [], []>} : vector<16x32xbf16>, vector<32x32xbf16>, vector<16x32xf32> -> vector<16x32xf32>
    %c1_118 = arith.constant 1 : index
    %c0_119 = arith.constant 0 : index
    %c0_120 = arith.constant 0 : index
    %371 = vector.load %arg12[%c1_118, %c0_119, %c0_120] : memref<2x1x32xf32, #tpu.memory_space<vmem>>, vector<1x1x32xf32>
    %372 = vector.shape_cast %371 : vector<1x1x32xf32> to vector<1x32xf32>
    %373 = vector.broadcast %372 : vector<1x32xf32> to vector<16x32xf32>
    %374 = arith.addf %370, %373 : vector<16x32xf32>
    %375 = arith.addf %270, %374 : vector<16x32xf32>
    %376 = vector.extract_strided_slice %272 {offsets = [1, 0], sizes = [1, 32], strides = [1, 1]} : vector<3x32xf32> to vector<1x32xf32>
    %377 = vector.extract_strided_slice %274 {offsets = [1, 0], sizes = [1, 32], strides = [1, 1]} : vector<3x32xf32> to vector<1x32xf32>
    %cst_121 = arith.constant dense<0.000000e+00> : vector<16xf32>
    %378 = vector.multi_reduction <add>, %375, %cst_121 [1] : vector<16x32xf32> to vector<16xf32>
    %379 = vector.shape_cast %378 : vector<16xf32> to vector<16x1xf32>
    %cst_122 = arith.constant 3.200000e+01 : f32
    %380 = vector.broadcast %cst_122 : f32 to vector<16x1xf32>
    %381 = arith.divf %379, %380 : vector<16x1xf32>
    %382 = vector.broadcast %381 : vector<16x1xf32> to vector<16x32xf32>
    %383 = arith.subf %375, %382 : vector<16x32xf32>
    %384 = arith.mulf %383, %383 : vector<16x32xf32>
    %cst_123 = arith.constant dense<0.000000e+00> : vector<16xf32>
    %385 = vector.multi_reduction <add>, %384, %cst_123 [1] : vector<16x32xf32> to vector<16xf32>
    %386 = vector.shape_cast %385 : vector<16xf32> to vector<16x1xf32>
    %cst_124 = arith.constant 3.200000e+01 : f32
    %387 = vector.broadcast %cst_124 : f32 to vector<16x1xf32>
    %388 = arith.divf %386, %387 : vector<16x1xf32>
    %389 = vector.broadcast %381 : vector<16x1xf32> to vector<16x32xf32>
    %390 = arith.subf %375, %389 : vector<16x32xf32>
    %cst_125 = arith.constant 9.99999974E-6 : f32
    %391 = vector.broadcast %cst_125 : f32 to vector<16x1xf32>
    %392 = arith.addf %388, %391 : vector<16x1xf32>
    %393 = math.rsqrt %392 : vector<16x1xf32>
    %394 = vector.broadcast %393 : vector<16x1xf32> to vector<16x32xf32>
    %395 = arith.mulf %390, %394 : vector<16x32xf32>
    %396 = vector.broadcast %376 : vector<1x32xf32> to vector<16x32xf32>
    %397 = arith.mulf %395, %396 : vector<16x32xf32>
    %398 = vector.broadcast %377 : vector<1x32xf32> to vector<16x32xf32>
    %399 = arith.addf %397, %398 : vector<16x32xf32>
    %400 = arith.truncf %399 : vector<16x32xf32> to vector<16x32xbf16>
    %c1_126 = arith.constant 1 : index
    %c0_127 = arith.constant 0 : index
    %c0_128 = arith.constant 0 : index
    %401 = vector.load %arg13[%c1_126, %c0_127, %c0_128] : memref<2x32x32xbf16, #tpu.memory_space<vmem>>, vector<1x32x32xbf16>
    %402 = vector.shape_cast %401 : vector<1x32x32xbf16> to vector<32x32xbf16>
    %cst_129 = arith.constant dense<0.000000e+00> : vector<16x32xf32>
    %403 = tpu.matmul %400, %402, %cst_129 {dimension_numbers = #tpu.dot_dimension_numbers<[1], [0], [0], [1], [0, 0, 1, 1], [], []>} : vector<16x32xbf16>, vector<32x32xbf16>, vector<16x32xf32> -> vector<16x32xf32>
    %c1_130 = arith.constant 1 : index
    %c0_131 = arith.constant 0 : index
    %c0_132 = arith.constant 0 : index
    %404 = vector.load %arg14[%c1_130, %c0_131, %c0_132] : memref<2x1x32xf32, #tpu.memory_space<vmem>>, vector<1x1x32xf32>
    %405 = vector.shape_cast %404 : vector<1x1x32xf32> to vector<1x32xf32>
    %406 = vector.broadcast %405 : vector<1x32xf32> to vector<16x32xf32>
    %407 = arith.addf %403, %406 : vector<16x32xf32>
    %c1_133 = arith.constant 1 : index
    %c0_134 = arith.constant 0 : index
    %c0_135 = arith.constant 0 : index
    %408 = vector.load %arg15[%c1_133, %c0_134, %c0_135] : memref<2x32x64xbf16, #tpu.memory_space<vmem>>, vector<1x32x64xbf16>
    %409 = vector.shape_cast %408 : vector<1x32x64xbf16> to vector<32x64xbf16>
    %cst_136 = arith.constant dense<0.000000e+00> : vector<16x64xf32>
    %410 = tpu.matmul %13, %409, %cst_136 {dimension_numbers = #tpu.dot_dimension_numbers<[1], [0], [0], [1], [0, 0, 1, 1], [], []>} : vector<16x32xbf16>, vector<32x64xbf16>, vector<16x64xf32> -> vector<16x64xf32>
    %c1_137 = arith.constant 1 : index
    %c0_138 = arith.constant 0 : index
    %c0_139 = arith.constant 0 : index
    %411 = vector.load %arg16[%c1_137, %c0_138, %c0_139] : memref<2x1x64xf32, #tpu.memory_space<vmem>>, vector<1x1x64xf32>
    %412 = vector.shape_cast %411 : vector<1x1x64xf32> to vector<1x64xf32>
    %413 = vector.broadcast %412 : vector<1x64xf32> to vector<16x64xf32>
    %414 = arith.addf %410, %413 : vector<16x64xf32>
    %415 = vector.extract_strided_slice %414 {offsets = [0, 0], sizes = [16, 32], strides = [1, 1]} : vector<16x64xf32> to vector<16x32xf32>
    %416 = vector.extract_strided_slice %414 {offsets = [0, 32], sizes = [16, 32], strides = [1, 1]} : vector<16x64xf32> to vector<16x32xf32>
    %417 = arith.truncf %407 : vector<16x32xf32> to vector<16x32xbf16>
    %418 = vector.extract_strided_slice %417 {offsets = [0, 0], sizes = [16, 8], strides = [1, 1]} : vector<16x32xbf16> to vector<16x8xbf16>
    %419 = vector.extract_strided_slice %417 {offsets = [0, 8], sizes = [16, 8], strides = [1, 1]} : vector<16x32xbf16> to vector<16x8xbf16>
    %420 = vector.extract_strided_slice %417 {offsets = [0, 16], sizes = [16, 8], strides = [1, 1]} : vector<16x32xbf16> to vector<16x8xbf16>
    %421 = vector.extract_strided_slice %417 {offsets = [0, 24], sizes = [16, 8], strides = [1, 1]} : vector<16x32xbf16> to vector<16x8xbf16>
    %422 = vector.shape_cast %418 : vector<16x8xbf16> to vector<1x16x8xbf16>
    %423 = vector.shape_cast %419 : vector<16x8xbf16> to vector<1x16x8xbf16>
    %424 = vector.shape_cast %420 : vector<16x8xbf16> to vector<1x16x8xbf16>
    %425 = vector.shape_cast %421 : vector<16x8xbf16> to vector<1x16x8xbf16>
    %426 = tpu.concatenate %422, %423, %424, %425 in 0 : vector<1x16x8xbf16>, vector<1x16x8xbf16>, vector<1x16x8xbf16>, vector<1x16x8xbf16> -> vector<4x16x8xbf16>
    %427 = arith.truncf %415 : vector<16x32xf32> to vector<16x32xbf16>
    %428 = vector.extract_strided_slice %427 {offsets = [0, 0], sizes = [16, 8], strides = [1, 1]} : vector<16x32xbf16> to vector<16x8xbf16>
    %429 = vector.extract_strided_slice %427 {offsets = [0, 8], sizes = [16, 8], strides = [1, 1]} : vector<16x32xbf16> to vector<16x8xbf16>
    %430 = vector.extract_strided_slice %427 {offsets = [0, 16], sizes = [16, 8], strides = [1, 1]} : vector<16x32xbf16> to vector<16x8xbf16>
    %431 = vector.extract_strided_slice %427 {offsets = [0, 24], sizes = [16, 8], strides = [1, 1]} : vector<16x32xbf16> to vector<16x8xbf16>
    %432 = vector.shape_cast %428 : vector<16x8xbf16> to vector<1x16x8xbf16>
    %433 = vector.shape_cast %429 : vector<16x8xbf16> to vector<1x16x8xbf16>
    %434 = vector.shape_cast %430 : vector<16x8xbf16> to vector<1x16x8xbf16>
    %435 = vector.shape_cast %431 : vector<16x8xbf16> to vector<1x16x8xbf16>
    %436 = tpu.concatenate %432, %433, %434, %435 in 0 : vector<1x16x8xbf16>, vector<1x16x8xbf16>, vector<1x16x8xbf16>, vector<1x16x8xbf16> -> vector<4x16x8xbf16>
    %437 = arith.truncf %416 : vector<16x32xf32> to vector<16x32xbf16>
    %438 = vector.extract_strided_slice %437 {offsets = [0, 0], sizes = [16, 8], strides = [1, 1]} : vector<16x32xbf16> to vector<16x8xbf16>
    %439 = vector.extract_strided_slice %437 {offsets = [0, 8], sizes = [16, 8], strides = [1, 1]} : vector<16x32xbf16> to vector<16x8xbf16>
    %440 = vector.extract_strided_slice %437 {offsets = [0, 16], sizes = [16, 8], strides = [1, 1]} : vector<16x32xbf16> to vector<16x8xbf16>
    %441 = vector.extract_strided_slice %437 {offsets = [0, 24], sizes = [16, 8], strides = [1, 1]} : vector<16x32xbf16> to vector<16x8xbf16>
    %442 = vector.shape_cast %438 : vector<16x8xbf16> to vector<1x16x8xbf16>
    %443 = vector.shape_cast %439 : vector<16x8xbf16> to vector<1x16x8xbf16>
    %444 = vector.shape_cast %440 : vector<16x8xbf16> to vector<1x16x8xbf16>
    %445 = vector.shape_cast %441 : vector<16x8xbf16> to vector<1x16x8xbf16>
    %446 = tpu.concatenate %442, %443, %444, %445 in 0 : vector<1x16x8xbf16>, vector<1x16x8xbf16>, vector<1x16x8xbf16>, vector<1x16x8xbf16> -> vector<4x16x8xbf16>
    "tpu.trace_start"() <{level = 10 : i32, message = "hqd,hkd->hqk"}> : () -> ()
    %cst_140 = arith.constant dense<0.000000e+00> : vector<4x16x16xf32>
    %447 = tpu.matmul %426, %436, %cst_140 {dimension_numbers = #tpu.dot_dimension_numbers<[2], [2], [1], [1], [0, 0, 0, 1, 1, 1], [0], [0]>} : vector<4x16x8xbf16>, vector<4x16x8xbf16>, vector<4x16x16xf32> -> vector<4x16x16xf32>
    "tpu.trace_stop"() : () -> ()
    %cst_141 = arith.constant 0.353553385 : f32
    %448 = vector.broadcast %cst_141 : f32 to vector<4x16x16xf32>
    %449 = arith.mulf %447, %448 : vector<4x16x16xf32>
    %450 = vector.shape_cast %15 : vector<16x16xf32> to vector<1x16x16xf32>
    %451 = vector.broadcast %450 : vector<1x16x16xf32> to vector<4x16x16xf32>
    %452 = arith.addf %449, %451 : vector<4x16x16xf32>
    %cst_142 = arith.constant dense<0xFF800000> : vector<4x16xf32>
    %453 = vector.multi_reduction <maximumf>, %452, %cst_142 [2] : vector<4x16x16xf32> to vector<4x16xf32>
    %454 = vector.shape_cast %453 : vector<4x16xf32> to vector<4x16x1xf32>
    %455 = vector.broadcast %454 : vector<4x16x1xf32> to vector<4x16x16xf32>
    %456 = arith.subf %452, %455 : vector<4x16x16xf32>
    %457 = math.exp %456 : vector<4x16x16xf32>
    %cst_143 = arith.constant dense<0.000000e+00> : vector<4x16xf32>
    %458 = vector.multi_reduction <add>, %457, %cst_143 [2] : vector<4x16x16xf32> to vector<4x16xf32>
    %459 = vector.shape_cast %458 : vector<4x16xf32> to vector<4x16x1xf32>
    %460 = tpu.reciprocal %459 : vector<4x16x1xf32> -> vector<4x16x1xf32>
    %461 = vector.broadcast %460 : vector<4x16x1xf32> to vector<4x16x16xf32>
    %462 = arith.mulf %457, %461 : vector<4x16x16xf32>
    %463 = arith.truncf %462 : vector<4x16x16xf32> to vector<4x16x16xbf16>
    "tpu.trace_start"() <{level = 10 : i32, message = "hqk,hkd->hqd"}> : () -> ()
    %cst_144 = arith.constant dense<0.000000e+00> : vector<4x16x8xf32>
    %464 = tpu.matmul %463, %446, %cst_144 {dimension_numbers = #tpu.dot_dimension_numbers<[2], [1], [1], [2], [0, 0, 0, 1, 1, 2], [0], [0]>} : vector<4x16x16xbf16>, vector<4x16x8xbf16>, vector<4x16x8xf32> -> vector<4x16x8xf32>
    "tpu.trace_stop"() : () -> ()
    %465 = vector.extract_strided_slice %464 {offsets = [0, 0, 0], sizes = [1, 16, 8], strides = [1, 1, 1]} : vector<4x16x8xf32> to vector<1x16x8xf32>
    %466 = vector.shape_cast %465 : vector<1x16x8xf32> to vector<16x8xf32>
    %467 = vector.extract_strided_slice %464 {offsets = [1, 0, 0], sizes = [1, 16, 8], strides = [1, 1, 1]} : vector<4x16x8xf32> to vector<1x16x8xf32>
    %468 = vector.shape_cast %467 : vector<1x16x8xf32> to vector<16x8xf32>
    %469 = vector.extract_strided_slice %464 {offsets = [2, 0, 0], sizes = [1, 16, 8], strides = [1, 1, 1]} : vector<4x16x8xf32> to vector<1x16x8xf32>
    %470 = vector.shape_cast %469 : vector<1x16x8xf32> to vector<16x8xf32>
    %471 = vector.extract_strided_slice %464 {offsets = [3, 0, 0], sizes = [1, 16, 8], strides = [1, 1, 1]} : vector<4x16x8xf32> to vector<1x16x8xf32>
    %472 = vector.shape_cast %471 : vector<1x16x8xf32> to vector<16x8xf32>
    %473 = tpu.concatenate %466, %468, %470, %472 in 1 : vector<16x8xf32>, vector<16x8xf32>, vector<16x8xf32>, vector<16x8xf32> -> vector<16x32xf32>
    %474 = arith.truncf %473 : vector<16x32xf32> to vector<16x32xbf16>
    %c1_145 = arith.constant 1 : index
    %c0_146 = arith.constant 0 : index
    %c0_147 = arith.constant 0 : index
    %475 = vector.load %arg17[%c1_145, %c0_146, %c0_147] : memref<2x32x32xbf16, #tpu.memory_space<vmem>>, vector<1x32x32xbf16>
    %476 = vector.shape_cast %475 : vector<1x32x32xbf16> to vector<32x32xbf16>
    %cst_148 = arith.constant dense<0.000000e+00> : vector<16x32xf32>
    %477 = tpu.matmul %474, %476, %cst_148 {dimension_numbers = #tpu.dot_dimension_numbers<[1], [0], [0], [1], [0, 0, 1, 1], [], []>} : vector<16x32xbf16>, vector<32x32xbf16>, vector<16x32xf32> -> vector<16x32xf32>
    %c1_149 = arith.constant 1 : index
    %c0_150 = arith.constant 0 : index
    %c0_151 = arith.constant 0 : index
    %478 = vector.load %arg18[%c1_149, %c0_150, %c0_151] : memref<2x1x32xf32, #tpu.memory_space<vmem>>, vector<1x1x32xf32>
    %479 = vector.shape_cast %478 : vector<1x1x32xf32> to vector<1x32xf32>
    %480 = vector.broadcast %479 : vector<1x32xf32> to vector<16x32xf32>
    %481 = arith.addf %477, %480 : vector<16x32xf32>
    %482 = arith.addf %375, %481 : vector<16x32xf32>
    %483 = vector.extract_strided_slice %272 {offsets = [2, 0], sizes = [1, 32], strides = [1, 1]} : vector<3x32xf32> to vector<1x32xf32>
    %484 = vector.extract_strided_slice %274 {offsets = [2, 0], sizes = [1, 32], strides = [1, 1]} : vector<3x32xf32> to vector<1x32xf32>
    %cst_152 = arith.constant dense<0.000000e+00> : vector<16xf32>
    %485 = vector.multi_reduction <add>, %482, %cst_152 [1] : vector<16x32xf32> to vector<16xf32>
    %486 = vector.shape_cast %485 : vector<16xf32> to vector<16x1xf32>
    %cst_153 = arith.constant 3.200000e+01 : f32
    %487 = vector.broadcast %cst_153 : f32 to vector<16x1xf32>
    %488 = arith.divf %486, %487 : vector<16x1xf32>
    %489 = vector.broadcast %488 : vector<16x1xf32> to vector<16x32xf32>
    %490 = arith.subf %482, %489 : vector<16x32xf32>
    %491 = arith.mulf %490, %490 : vector<16x32xf32>
    %cst_154 = arith.constant dense<0.000000e+00> : vector<16xf32>
    %492 = vector.multi_reduction <add>, %491, %cst_154 [1] : vector<16x32xf32> to vector<16xf32>
    %493 = vector.shape_cast %492 : vector<16xf32> to vector<16x1xf32>
    %cst_155 = arith.constant 3.200000e+01 : f32
    %494 = vector.broadcast %cst_155 : f32 to vector<16x1xf32>
    %495 = arith.divf %493, %494 : vector<16x1xf32>
    %496 = vector.broadcast %488 : vector<16x1xf32> to vector<16x32xf32>
    %497 = arith.subf %482, %496 : vector<16x32xf32>
    %cst_156 = arith.constant 9.99999974E-6 : f32
    %498 = vector.broadcast %cst_156 : f32 to vector<16x1xf32>
    %499 = arith.addf %495, %498 : vector<16x1xf32>
    %500 = math.rsqrt %499 : vector<16x1xf32>
    %501 = vector.broadcast %500 : vector<16x1xf32> to vector<16x32xf32>
    %502 = arith.mulf %497, %501 : vector<16x32xf32>
    %503 = vector.broadcast %483 : vector<1x32xf32> to vector<16x32xf32>
    %504 = arith.mulf %502, %503 : vector<16x32xf32>
    %505 = vector.broadcast %484 : vector<1x32xf32> to vector<16x32xf32>
    %506 = arith.addf %504, %505 : vector<16x32xf32>
    %507 = arith.truncf %506 : vector<16x32xf32> to vector<16x32xbf16>
    %c1_157 = arith.constant 1 : index
    %c0_158 = arith.constant 0 : index
    %c0_159 = arith.constant 0 : index
    %508 = vector.load %arg19[%c1_157, %c0_158, %c0_159] : memref<2x32x64xbf16, #tpu.memory_space<vmem>>, vector<1x32x64xbf16>
    %509 = vector.shape_cast %508 : vector<1x32x64xbf16> to vector<32x64xbf16>
    %cst_160 = arith.constant dense<0.000000e+00> : vector<16x64xf32>
    %510 = tpu.matmul %507, %509, %cst_160 {dimension_numbers = #tpu.dot_dimension_numbers<[1], [0], [0], [1], [0, 0, 1, 1], [], []>} : vector<16x32xbf16>, vector<32x64xbf16>, vector<16x64xf32> -> vector<16x64xf32>
    %c1_161 = arith.constant 1 : index
    %c0_162 = arith.constant 0 : index
    %c0_163 = arith.constant 0 : index
    %511 = vector.load %arg20[%c1_161, %c0_162, %c0_163] : memref<2x1x64xf32, #tpu.memory_space<vmem>>, vector<1x1x64xf32>
    %512 = vector.shape_cast %511 : vector<1x1x64xf32> to vector<1x64xf32>
    %513 = vector.broadcast %512 : vector<1x64xf32> to vector<16x64xf32>
    %514 = arith.addf %510, %513 : vector<16x64xf32>
    %cst_164 = arith.constant 0.000000e+00 : f32
    %515 = vector.broadcast %cst_164 : f32 to vector<16x64xf32>
    %516 = arith.maximumf %514, %515 : vector<16x64xf32>
    %517 = arith.truncf %516 : vector<16x64xf32> to vector<16x64xbf16>
    %c1_165 = arith.constant 1 : index
    %c0_166 = arith.constant 0 : index
    %c0_167 = arith.constant 0 : index
    %518 = vector.load %arg21[%c1_165, %c0_166, %c0_167] : memref<2x64x32xbf16, #tpu.memory_space<vmem>>, vector<1x64x32xbf16>
    %519 = vector.shape_cast %518 : vector<1x64x32xbf16> to vector<64x32xbf16>
    %cst_168 = arith.constant dense<0.000000e+00> : vector<16x32xf32>
    %520 = tpu.matmul %517, %519, %cst_168 {dimension_numbers = #tpu.dot_dimension_numbers<[1], [0], [0], [1], [0, 0, 1, 1], [], []>} : vector<16x64xbf16>, vector<64x32xbf16>, vector<16x32xf32> -> vector<16x32xf32>
    %c1_169 = arith.constant 1 : index
    %c0_170 = arith.constant 0 : index
    %c0_171 = arith.constant 0 : index
    %521 = vector.load %arg22[%c1_169, %c0_170, %c0_171] : memref<2x1x32xf32, #tpu.memory_space<vmem>>, vector<1x1x32xf32>
    %522 = vector.shape_cast %521 : vector<1x1x32xf32> to vector<1x32xf32>
    %523 = vector.broadcast %522 : vector<1x32xf32> to vector<16x32xf32>
    %524 = arith.addf %520, %523 : vector<16x32xf32>
    %525 = arith.addf %482, %524 : vector<16x32xf32>
    %526 = arith.truncf %525 : vector<16x32xf32> to vector<16x32xbf16>
    %c0_172 = arith.constant 0 : index
    %c0_173 = arith.constant 0 : index
    %527 = vector.load %arg23[%c0_172, %c0_173] : memref<32x32xbf16, #tpu.memory_space<vmem>>, vector<32x32xbf16>
    %cst_174 = arith.constant dense<0.000000e+00> : vector<16x32xf32>
    %528 = tpu.matmul %526, %527, %cst_174 {dimension_numbers = #tpu.dot_dimension_numbers<[1], [0], [0], [1], [0, 0, 1, 1], [], []>} : vector<16x32xbf16>, vector<32x32xbf16>, vector<16x32xf32> -> vector<16x32xf32>
    %c0_175 = arith.constant 0 : index
    %c0_176 = arith.constant 0 : index
    %529 = vector.load %arg24[%c0_175, %c0_176] : memref<1x32xf32, #tpu.memory_space<vmem>>, vector<1x32xf32>
    %530 = vector.broadcast %529 : vector<1x32xf32> to vector<16x32xf32>
    %531 = arith.addf %528, %530 : vector<16x32xf32>
    %c0_177 = arith.constant 0 : index
    %c0_178 = arith.constant 0 : index
    %532 = vector.load %arg25[%c0_177, %c0_178] : memref<1x32xf32, #tpu.memory_space<vmem>>, vector<1x32xf32>
    %c0_179 = arith.constant 0 : index
    %c0_180 = arith.constant 0 : index
    %533 = vector.load %arg26[%c0_179, %c0_180] : memref<1x32xf32, #tpu.memory_space<vmem>>, vector<1x32xf32>
    %cst_181 = arith.constant dense<0.000000e+00> : vector<16xf32>
    %534 = vector.multi_reduction <add>, %531, %cst_181 [1] : vector<16x32xf32> to vector<16xf32>
    %535 = vector.shape_cast %534 : vector<16xf32> to vector<16x1xf32>
    %cst_182 = arith.constant 3.200000e+01 : f32
    %536 = vector.broadcast %cst_182 : f32 to vector<16x1xf32>
    %537 = arith.divf %535, %536 : vector<16x1xf32>
    %538 = vector.broadcast %537 : vector<16x1xf32> to vector<16x32xf32>
    %539 = arith.subf %531, %538 : vector<16x32xf32>
    %540 = arith.mulf %539, %539 : vector<16x32xf32>
    %cst_183 = arith.constant dense<0.000000e+00> : vector<16xf32>
    %541 = vector.multi_reduction <add>, %540, %cst_183 [1] : vector<16x32xf32> to vector<16xf32>
    %542 = vector.shape_cast %541 : vector<16xf32> to vector<16x1xf32>
    %cst_184 = arith.constant 3.200000e+01 : f32
    %543 = vector.broadcast %cst_184 : f32 to vector<16x1xf32>
    %544 = arith.divf %542, %543 : vector<16x1xf32>
    %545 = vector.broadcast %537 : vector<16x1xf32> to vector<16x32xf32>
    %546 = arith.subf %531, %545 : vector<16x32xf32>
    %cst_185 = arith.constant 9.99999974E-6 : f32
    %547 = vector.broadcast %cst_185 : f32 to vector<16x1xf32>
    %548 = arith.addf %544, %547 : vector<16x1xf32>
    %549 = math.rsqrt %548 : vector<16x1xf32>
    %550 = vector.broadcast %549 : vector<16x1xf32> to vector<16x32xf32>
    %551 = arith.mulf %546, %550 : vector<16x32xf32>
    %552 = vector.broadcast %532 : vector<1x32xf32> to vector<16x32xf32>
    %553 = arith.mulf %551, %552 : vector<16x32xf32>
    %554 = vector.broadcast %533 : vector<1x32xf32> to vector<16x32xf32>
    %555 = arith.addf %553, %554 : vector<16x32xf32>
    %c0_186 = arith.constant 0 : index
    %c0_187 = arith.constant 0 : index
    %556 = vector.load %arg27[%c0_186, %c0_187] : memref<16x32xf32, #tpu.memory_space<vmem>>, vector<16x32xf32>
    tpu.vector_store %arg27[%c0_186, %c0_187], %555 {strides = array<i32>} : memref<16x32xf32, #tpu.memory_space<vmem>>, vector<16x32xf32>,
    return
  }
  func.func @transform_0(%arg0: i32) -> (i32, i32) {
    %c0_i32 = arith.constant 0 : i32
    %c0_i32_0 = arith.constant 0 : i32
    %c0_i32_1 = arith.constant 0 : i32
    return %c0_i32, %c0_i32_0 : i32, i32
  }
  func.func @transform_1(%arg0: i32) -> (i32, i32) {
    %c0_i32 = arith.constant 0 : i32
    %c0_i32_0 = arith.constant 0 : i32
    %c0_i32_1 = arith.constant 0 : i32
    return %c0_i32, %c0_i32_0 : i32, i32
  }
  func.func @transform_2(%arg0: i32) -> (i32, i32) {
    %c0_i32 = arith.constant 0 : i32
    %c0_i32_0 = arith.constant 0 : i32
    %c0_i32_1 = arith.constant 0 : i32
    return %c0_i32, %c0_i32_0 : i32, i32
  }
  func.func @transform_3(%arg0: i32) -> (i32, i32) {
    %c0_i32 = arith.constant 0 : i32
    %c0_i32_0 = arith.constant 0 : i32
    %c0_i32_1 = arith.constant 0 : i32
    return %c0_i32, %c0_i32_0 : i32, i32
  }
  func.func @transform_4(%arg0: i32) -> (i32, i32) {
    %c0_i32 = arith.constant 0 : i32
    %c0_i32_0 = arith.constant 0 : i32
    %c0_i32_1 = arith.constant 0 : i32
    return %c0_i32, %c0_i32_0 : i32, i32
  }
  func.func @transform_5(%arg0: i32) -> (i32, i32) {
    %c0_i32 = arith.constant 0 : i32
    %c0_i32_0 = arith.constant 0 : i32
    %c0_i32_1 = arith.constant 0 : i32
    return %c0_i32, %c0_i32_0 : i32, i32
  }
  func.func @transform_6(%arg0: i32) -> (i32, i32, i32) {
    %c0_i32 = arith.constant 0 : i32
    %c0_i32_0 = arith.constant 0 : i32
    %c0_i32_1 = arith.constant 0 : i32
    %c0_i32_2 = arith.constant 0 : i32
    return %c0_i32, %c0_i32_0, %c0_i32_1 : i32, i32, i32
  }
  func.func @transform_7(%arg0: i32) -> (i32, i32, i32) {
    %c0_i32 = arith.constant 0 : i32
    %c0_i32_0 = arith.constant 0 : i32
    %c0_i32_1 = arith.constant 0 : i32
    %c0_i32_2 = arith.constant 0 : i32
    return %c0_i32, %c0_i32_0, %c0_i32_1 : i32, i32, i32
  }
  func.func @transform_8(%arg0: i32) -> (i32, i32, i32) {
    %c0_i32 = arith.constant 0 : i32
    %c0_i32_0 = arith.constant 0 : i32
    %c0_i32_1 = arith.constant 0 : i32
    %c0_i32_2 = arith.constant 0 : i32
    return %c0_i32, %c0_i32_0, %c0_i32_1 : i32, i32, i32
  }
  func.func @transform_9(%arg0: i32) -> (i32, i32, i32) {
    %c0_i32 = arith.constant 0 : i32
    %c0_i32_0 = arith.constant 0 : i32
    %c0_i32_1 = arith.constant 0 : i32
    %c0_i32_2 = arith.constant 0 : i32
    return %c0_i32, %c0_i32_0, %c0_i32_1 : i32, i32, i32
  }
  func.func @transform_10(%arg0: i32) -> (i32, i32, i32) {
    %c0_i32 = arith.constant 0 : i32
    %c0_i32_0 = arith.constant 0 : i32
    %c0_i32_1 = arith.constant 0 : i32
    %c0_i32_2 = arith.constant 0 : i32
    return %c0_i32, %c0_i32_0, %c0_i32_1 : i32, i32, i32
  }
  func.func @transform_11(%arg0: i32) -> (i32, i32, i32) {
    %c0_i32 = arith.constant 0 : i32
    %c0_i32_0 = arith.constant 0 : i32
    %c0_i32_1 = arith.constant 0 : i32
    %c0_i32_2 = arith.constant 0 : i32
    return %c0_i32, %c0_i32_0, %c0_i32_1 : i32, i32, i32
  }
  func.func @transform_12(%arg0: i32) -> (i32, i32, i32) {
    %c0_i32 = arith.constant 0 : i32
    %c0_i32_0 = arith.constant 0 : i32
    %c0_i32_1 = arith.constant 0 : i32
    %c0_i32_2 = arith.constant 0 : i32
    return %c0_i32, %c0_i32_0, %c0_i32_1 : i32, i32, i32
  }
  func.func @transform_13(%arg0: i32) -> (i32, i32, i32) {
    %c0_i32 = arith.constant 0 : i32
    %c0_i32_0 = arith.constant 0 : i32
    %c0_i32_1 = arith.constant 0 : i32
    %c0_i32_2 = arith.constant 0 : i32
    return %c0_i32, %c0_i32_0, %c0_i32_1 : i32, i32, i32
  }
  func.func @transform_14(%arg0: i32) -> (i32, i32, i32) {
    %c0_i32 = arith.constant 0 : i32
    %c0_i32_0 = arith.constant 0 : i32
    %c0_i32_1 = arith.constant 0 : i32
    %c0_i32_2 = arith.constant 0 : i32
    return %c0_i32, %c0_i32_0, %c0_i32_1 : i32, i32, i32
  }
  func.func @transform_15(%arg0: i32) -> (i32, i32, i32) {
    %c0_i32 = arith.constant 0 : i32
    %c0_i32_0 = arith.constant 0 : i32
    %c0_i32_1 = arith.constant 0 : i32
    %c0_i32_2 = arith.constant 0 : i32
    return %c0_i32, %c0_i32_0, %c0_i32_1 : i32, i32, i32
  }
  func.func @transform_16(%arg0: i32) -> (i32, i32, i32) {
    %c0_i32 = arith.constant 0 : i32
    %c0_i32_0 = arith.constant 0 : i32
    %c0_i32_1 = arith.constant 0 : i32
    %c0_i32_2 = arith.constant 0 : i32
    return %c0_i32, %c0_i32_0, %c0_i32_1 : i32, i32, i32
  }
  func.func @transform_17(%arg0: i32) -> (i32, i32, i32) {
    %c0_i32 = arith.constant 0 : i32
    %c0_i32_0 = arith.constant 0 : i32
    %c0_i32_1 = arith.constant 0 : i32
    %c0_i32_2 = arith.constant 0 : i32
    return %c0_i32, %c0_i32_0, %c0_i32_1 : i32, i32, i32
  }
  func.func @transform_18(%arg0: i32) -> (i32, i32, i32) {
    %c0_i32 = arith.constant 0 : i32
    %c0_i32_0 = arith.constant 0 : i32
    %c0_i32_1 = arith.constant 0 : i32
    %c0_i32_2 = arith.constant 0 : i32
    return %c0_i32, %c0_i32_0, %c0_i32_1 : i32, i32, i32
  }
  func.func @transform_19(%arg0: i32) -> (i32, i32, i32) {
    %c0_i32 = arith.constant 0 : i32
    %c0_i32_0 = arith.constant 0 : i32
    %c0_i32_1 = arith.constant 0 : i32
    %c0_i32_2 = arith.constant 0 : i32
    return %c0_i32, %c0_i32_0, %c0_i32_1 : i32, i32, i32
  }
  func.func @transform_20(%arg0: i32) -> (i32, i32, i32) {
    %c0_i32 = arith.constant 0 : i32
    %c0_i32_0 = arith.constant 0 : i32
    %c0_i32_1 = arith.constant 0 : i32
    %c0_i32_2 = arith.constant 0 : i32
    return %c0_i32, %c0_i32_0, %c0_i32_1 : i32, i32, i32
  }
  func.func @transform_21(%arg0: i32) -> (i32, i32, i32) {
    %c0_i32 = arith.constant 0 : i32
    %c0_i32_0 = arith.constant 0 : i32
    %c0_i32_1 = arith.constant 0 : i32
    %c0_i32_2 = arith.constant 0 : i32
    return %c0_i32, %c0_i32_0, %c0_i32_1 : i32, i32, i32
  }
  func.func @transform_22(%arg0: i32) -> (i32, i32) {
    %c0_i32 = arith.constant 0 : i32
    %c0_i32_0 = arith.constant 0 : i32
    %c0_i32_1 = arith.constant 0 : i32
    return %c0_i32, %c0_i32_0 : i32, i32
  }
  func.func @transform_23(%arg0: i32) -> (i32, i32) {
    %c0_i32 = arith.constant 0 : i32
    %c0_i32_0 = arith.constant 0 : i32
    %c0_i32_1 = arith.constant 0 : i32
    return %c0_i32, %c0_i32_0 : i32, i32
  }
  func.func @transform_24(%arg0: i32) -> (i32, i32) {
    %c0_i32 = arith.constant 0 : i32
    %c0_i32_0 = arith.constant 0 : i32
    %c0_i32_1 = arith.constant 0 : i32
    return %c0_i32, %c0_i32_0 : i32, i32
  }
  func.func @transform_25(%arg0: i32) -> (i32, i32) {
    %c0_i32 = arith.constant 0 : i32
    %c0_i32_0 = arith.constant 0 : i32
    %c0_i32_1 = arith.constant 0 : i32
    return %c0_i32, %c0_i32_0 : i32, i32
  }
  func.func @transform_26(%arg0: i32) -> (i32, i32) {
    %c0_i32 = arith.constant 0 : i32
    %c0_i32_0 = arith.constant 0 : i32
    %c0_i32_1 = arith.constant 0 : i32
    return %c0_i32, %c0_i32_0 : i32, i32
  }
}

</mosaic_0001>

<bundles_post_ra>
// kernel: decoder_forward.1
= control target key start
LH: loop header
LB: loop body
LE: loop exit
PB: predicated region body
PF: predicated region fallthrough
CT: control target
= control target key end

     0   :  { %s5527_s0 = inlined_call_operand.vmem [shape: s32[16,1], index: 0, kind: input, shape index: {}]   ;;  %s5528_s1 = inlined_call_operand.vmem [shape: f32[8,32], index: 1, kind: input, shape index: {}]   ;;  %s5529_s2 = inlined_call_operand.vmem [shape: f32[16,32], index: 2, kind: input, shape index: {}]   ;;  %s5530_s3 = inlined_call_operand.vmem [shape: f32[16,16], index: 3, kind: input, shape index: {}]   ;;  %s5531_s4 = inlined_call_operand.vmem [shape: f32[16,16], index: 4, kind: input, shape index: {}]   ;;  %s5532_s5 = inlined_call_operand.vmem [shape: bf16[32,32], index: 5, kind: input, shape index: {}]   ;;  %s5533_s6 = inlined_call_operand.vmem [shape: f32[2,3,32], index: 6, kind: input, shape index: {}]   ;;  %s5534_s7 = inlined_call_operand.vmem [shape: f32[2,3,32], index: 7, kind: input, shape index: {}]   ;;  %s5535_s8 = inlined_call_operand.vmem [shape: bf16[2,32,96], index: 8, kind: input, shape index: {}]   ;;  %s5536_s9 = inlined_call_operand.vmem [shape: f32[2,1,96], index: 9, kind: input, shape index: {}]   ;;  %s5537_s10 = inlined_call_operand.vmem [shape: bf16[2,32,32], index: 10, kind: input, shape index: {}]   ;;  %s5538_s11 = inlined_call_operand.vmem [shape: f32[2,1,32], index: 11, kind: input, shape index: {}]   ;;  %s5539_s12 = inlined_call_operand.vmem [shape: bf16[2,32,32], index: 12, kind: input, shape index: {}]   ;;  %s5540_s13 = inlined_call_operand.vmem [shape: f32[2,1,32], index: 13, kind: input, shape index: {}]   ;;  %s5541_s14 = inlined_call_operand.vmem [shape: bf16[2,32,64], index: 14, kind: input, shape index: {}]   ;;  %s5542_s15 = inlined_call_operand.vmem [shape: f32[2,1,64], index: 15, kind: input, shape index: {}]   ;;  %s5543_s16 = inlined_call_operand.vmem [shape: bf16[2,32,32], index: 16, kind: input, shape index: {}]   ;;  %s5544_s17 = inlined_call_operand.vmem [shape: f32[2,1,32], index: 17, kind: input, shape index: {}]   ;;  %s5545_s18 = inlined_call_operand.vmem [shape: bf16[2,32,64], index: 18, kind: input, shape index: {}]   ;;  %s5546_s19 = inlined_call_operand.vmem [shape: f32[2,1,64], index: 19, kind: input, shape index: {}]   ;;  %s5547_s20 = inlined_call_operand.vmem [shape: bf16[2,64,32], index: 20, kind: input, shape index: {}]   ;;  %s5548_s21 = inlined_call_operand.vmem [shape: f32[2,1,32], index: 21, kind: input, shape index: {}]   ;;  %s5549_s22 = inlined_call_operand.vmem [shape: bf16[32,32], index: 22, kind: input, shape index: {}]   ;;  %s5550_s23 = inlined_call_operand.vmem [shape: f32[1,32], index: 23, kind: input, shape index: {}]   ;;  %s5551_s24 = inlined_call_operand.vmem [shape: f32[1,32], index: 24, kind: input, shape index: {}]   ;;  %s5552_s25 = inlined_call_operand.vmem [shape: f32[1,32], index: 25, kind: input, shape index: {}]   ;;  %s5553_s26 = inlined_call_operand.hbm [shape: f32[16,32], index: 26, kind: output, shape index: {}]  }
   0x1   :  { %5585 = sst [smem:[#allocation5_spill]] %s5527_s0 }
   0x2   :  { %5586 = sst [smem:[#allocation6_spill]] %s5528_s1 }
   0x3   :  { %5587 = sst [smem:[#allocation7_spill]] %s5529_s2 }
   0x4   :  { %5588 = sst [smem:[#allocation8_spill]] %s5530_s3 }
   0x5   :  { %5589 = sst [smem:[#allocation9_spill]] %s5531_s4 }
   0x6   :  { %5590 = sst [smem:[#allocation10_spill]] %s5532_s5 }
   0x7   :  { %5591 = sst [smem:[#allocation11_spill]] %s5533_s6 }
   0x8   :  { %5592 = sst [smem:[#allocation12_spill]] %s5534_s7 }
   0x9   :  { %5593 = sst [smem:[#allocation13_spill]] %s5535_s8 }
   0xa   :  { %5594 = sst [smem:[#allocation14_spill]] %s5536_s9 }
   0xb   :  { %5595 = sst [smem:[#allocation15_spill]] %s5537_s10 }
   0xc   :  { %5596 = sst [smem:[#allocation16_spill]] %s5543_s16 }
   0xd   :  { %5597 = sst [smem:[#allocation17_spill]] %s5544_s17 }
   0xe   :  { %5598 = sst [smem:[#allocation18_spill]] %s5549_s22 }
   0xf   :  { %5599 = sst [smem:[#allocation19_spill]] %s5550_s23 }
  0x10   :  { %5600 = sst [smem:[#allocation20_spill]] %s5551_s24 }
  0x11   :  { %5601 = sst [smem:[#allocation21_spill]] %s5552_s25 }
  0x12   :  { %5602 = sst [smem:[#allocation22_spill]] %s5553_s26 }
  0x13   :  { %s5603_s7 = sld [smem:[#allocation5_spill]]  ;;  %v4555_v1 = vmov 0   ;;  %v4556_v2 = vmov 0.0   ;;  %s5604_s4 = sld [smem:[#allocation10_spill]]  ;;  %vm4557_vm0 = vmmov 0  }
  0x14   :  { %4270 = vset.pattern.permute.xlu0 %v4555_v1  ;;  %3929 = vmatprep.subr.bf16.mxu0 %v4556_v2 }
  0x15   :  { %3937 = vmatprep.subr.bf16.mxu1 %v4556_v2  ;;  %3933 = vmatprep.mubr.msk.bf16.mxu0 %vm4557_vm0, %v4556_v2 }
  0x16   :  { %3941 = vmatprep.mubr.msk.bf16.mxu1 %vm4557_vm0, %v4556_v2 }
  0x19   :  { %v85_v0 = vld [vmem:[%s5603_s7] sm:$0xff]  ;;  %v86_v4 = vld [vmem:[%s5603_s7 + $0x8] sm:$0xff] }
  0x1a   :  { %v4331_v3 = vld [vmem:[%s5604_s4] sm:$0xff]   ;;  %90 = vperm.xlu0 %4270, %v85_v0   ;;  %v4332_v5 = vld [vmem:[%s5604_s4 + $0x8] sm:$0xff]  }
  0x1b   :  { %3930 = vmatpush3.bf16.msra.mxu0 %v4331_v3 }
  0x1c   :  { %3931 = vmatprep.subr.bf16.mxu0 %v4556_v2 }
  0x1e   :  { %93 = vperm.xlu0 %4270, %v86_v4  }
  0x1f   :  { %3932 = vmatpush3.bf16.msra.mxu0 %v4332_v5 }
  0x20   :  { %3945 = vmatprep.subr.bf16.mxu0 %v4556_v2 }
  0x21   :  { %31 = vsyncpa [#allocation3], 0  ;;  %v87_v6 = vlaneseq  ;;  %vm119_vm3 = vcmask 261120   ;;  %s5605_s10 = sld [smem:[#allocation6_spill]]  ;;  %s5606_s27 = sld [smem:[#allocation13_spill]]  ;;  %vm290_vm4 = vcmask 64512  }
  0x22   :  { %s5607_s4 = sld [smem:[#allocation11_spill]]  ;;  %s5608_s9 = sld [smem:[#allocation12_spill]]  ;;  %vm501_vm5 = vcmask 130048   ;;  %vm810_vm6 = vcmask 195584   ;;  %vm1804_vm7 = vcmask 523264  }
  0x23   :  { %v88_v7 = vand.u32 127, %v87_v6  ;;  %v4751_v40 = vshrl.u32 %v87_v6, 7  ;;  %s5609_s5 = sld [smem:[#allocation14_spill]]  ;;  %s5578_s6 = smov 112  }
  0x24   :  { %s5574_s1 = smov 104   ;;  %s5572_s3 = smov 96  }
  0x25   :  { %v4754_v41 = vsub.s32 0, %v4751_v40  ;;  %s5610_s8 = sld [smem:[#allocation8_spill]]  ;;  %s5564_s30 = smov 64  }
  0x26   :  { %s5611_s28 = sld [smem:[#allocation15_spill]]  ;;  %s5568_s2 = smov 16  }
  0x27   :  { %v106_v13 = vld [vmem:[%s5605_s10] sm:$0xff]  ;;  %v4334_v33 = vld [vmem:[%s5606_s27 + $0x8] sm:$0xff]   ;;  %s5576_s10 = smov 120   ;;  %s5566_s7 = smov 24  }
  0x28   :  { %v4333_v32 = vld [vmem:[%s5606_s27] sm:$0xff]   ;;  %s5615_s0 = smov 104   ;;  %s5617_s29 = smov 96  }
  0x29   :  { %3938 = vmatpush3.bf16.msra.mxu1 %v4333_v32  ;;  %v4759_v42 = vld [vmem:[%s5607_s4] sm:$0x7]  ;;  %s5627_s25 = sld [smem:[#allocation21_spill]]  ;;  %s4566_s26 = smov [#allocation2]  }
  0x2a   :  { %3939 = vmatprep.subr.bf16.mxu1 %v4556_v2  ;;  %v203_v45 = vrot.slane %v4759_v42, %v4754_v41  ;;  %v4766_v46 = vld [vmem:[%s5608_s9] sm:$0x7] }
  0x2b   :  { %v209_v50 = vrot.slane %v4766_v46, %v4754_v41  ;;  %v3674_v55 = vld [vmem:[%s5609_s5] ss:$0 sm:$0xff] }
  0x2d   :  { %3940 = vmatpush3.bf16.msra.mxu1 %v4334_v33 }
  0x2e   :  { %3951 = vmatprep.subr.bf16.mxu1 %v4556_v2 }
  0x99   :  { %v91_v8 = vpop.permute.xlu0 %90 }
  0x9a   :  { %vm95_vm1 = vcmp.eq.s32.totalorder %v91_v8, %v88_v7 }
  0x9b   :  { %v3669_v10 = vsel %vm95_vm1, 1.0, %v4556_v2 }
  0x9d   :  { %v94_v9 = vpop.permute.xlu0 %93 }
  0x9e   :  { %vm96_vm2 = vcmp.eq.s32.totalorder %v94_v9, %v88_v7 }
  0x9f   :  { %v3670_v11 = vsel %vm96_vm2, 1.0, %v4556_v2 }
  0xa0   :  { %v101_v12 = vpack.c.bf16 %v3670_v11, %v3669_v10 }
  0xa2   :  { %3934 = vmatmul.mubr.msk.bf16.vlgmr.msra.gmra.mrb[0].mxu0 %vm119_vm3, %v101_v12  ;;  %v167_v12 = vld [vmem:[%s5610_s8] sm:$0xff] }
  0xa3   :  { %3947 = vmatprep.mubr.msk.bf16.mxu0 %vm4557_vm0, %v4556_v2 }
 0x175   :  { %v157_v14 = vpop.f32.mrb[0].mxu0 }
 0x176   :  { %v4731_v15 = vadd.f32 %v157_v14, %v106_v13  ;;  %v3935_v16 = vpop.f32.mrb[1].mxu0 }
 0x177   :  { %v160_v17 = vpop.f32.mrb[2].mxu0 }
 0x178   :  { %v4733_v18 = vadd.f32 %v160_v17, %v106_v13  ;;  %v3936_v19 = vpop.f32.mrb[3].mxu0  ;;  %v173_v20 = vsel %vm119_vm3, %v4731_v15, 0.0  ;;  %v168_v17 = vld [vmem:[%s5610_s8 + $0x8] sm:$0xff] }
 0x179   :  { %174 = vadd.xlane.f32.xlu1 %v173_v20 }
 0x17a   :  { %v176_v21 = vsel %vm119_vm3, %v4733_v18, 0.0 }
 0x17d   :  { %177 = vadd.xlane.f32.xlu1 %v176_v21 }
 0x206   :  { %v175_v22 = vpop.xlane.xlu1 %174 }
 0x207   :  { %v180_v23 = vmul.f32 0.03125, %v175_v22 }
 0x209   :  { %v182_v24 = vsub.f32 %v4731_v15, %v180_v23 }
 0x20a   :  { %v178_v25 = vpop.xlane.xlu1 %177 }
 0x20b   :  { %v181_v26 = vmul.f32 0.03125, %v178_v25  ;;  %v184_v27 = vmul.f32 %v182_v24, %v182_v24 }
 0x20d   :  { %v183_v28 = vsub.f32 %v4733_v18, %v181_v26  ;;  %v186_v29 = vsel %vm119_vm3, %v184_v27, 0.0 }
 0x20e   :  { %187 = vadd.xlane.f32.xlu0 %v186_v29 }
 0x20f   :  { %v185_v30 = vmul.f32 %v183_v28, %v183_v28 }
 0x211   :  { %v189_v31 = vsel %vm119_vm3, %v185_v30, 0.0 }
 0x212   :  { %190 = vadd.xlane.f32.xlu1 %v189_v31 }
 0x29b   :  { %v188_v34 = vpop.xlane.xlu0 %187 }
 0x29c   :  { %v192_v35 = vmul.f32 0.03125, %v188_v34 }
 0x29e   :  { %v194_v36 = vadd.f32 1e-05, %v192_v35 }
 0x29f   :  { %v191_v37 = vpop.xlane.xlu1 %190 }
 0x2a0   :  { %4367 = vrsqrt.f32 %v194_v36  ;;  %v193_v38 = vmul.f32 0.03125, %v191_v37 }
 0x2a2   :  { %v195_v39 = vadd.f32 1e-05, %v193_v38 }
 0x2a4   :  { %4369 = vrsqrt.f32 %v195_v39 }
 0x2aa   :  { %v4368_v43 = vpop.eup %4367 }
 0x2ab   :  { %v198_v44 = vmul.f32 %v4368_v43, %v182_v24 }
 0x2ad   :  { %v204_v49 = vmul.f32 %v203_v45, %v198_v44 }
 0x2ae   :  { %v4370_v47 = vpop.eup %4369 }
 0x2af   :  { %v199_v48 = vmul.f32 %v4370_v47, %v183_v28  ;;  %v210_v52 = vadd.f32 %v209_v50, %v204_v49 }
 0x2b1   :  { %v205_v51 = vmul.f32 %v203_v45, %v199_v48 }
 0x2b3   :  { %v211_v53 = vadd.f32 %v209_v50, %v205_v51 }
 0x2b5   :  { %v212_v54 = vpack.c.bf16 %v211_v53, %v210_v52 }
 0x2b7   :  { %3942 = vmatmul.mubr.msk.bf16.vlgmr.msra.gmra.mrb[0].mxu1 %vm119_vm3, %v212_v54 }
 0x2b8   :  { %3953 = vmatprep.mubr.msk.bf16.mxu1 %vm4557_vm0, %v4556_v2 }
 0x38a   :  { %v273_v56 = vpop.f32.mrb[0].mxu1 }
 0x38b   :  { %v3943_v57 = vpop.f32.mrb[1].mxu1  ;;  %v274_v59 = vadd.f32 %v3674_v55, %v273_v56 }
 0x38c   :  { %v276_v58 = vpop.f32.mrb[2].mxu1 }
 0x38d   :  { %v277_v60 = vadd.f32 %v3674_v55, %v276_v58  ;;  %v3944_v61 = vpop.f32.mrb[3].mxu1 }
 0x38f   :  { %v4776_v62 = vpack.c.bf16 %v277_v60, %v274_v59 }
 0x391   :  { %282 = vrot.lane.b32.xlu1 %v4776_v62, %s5576_s10  ;;  %s5616_s10 = sld [smem:[#allocation9_spill]] }
 0x395   :  { %284 = vrot.lane.b32.xlu1 %v4776_v62, %s5578_s6  ;;  %s5620_s6 = smov 24  }
 0x399   :  { %286 = vrot.lane.b32.xlu1 %v4776_v62, %s5574_s1  ;;  %s5612_s1 = sld [smem:[#allocation7_spill]] }
 0x39d   :  { %288 = vrot.lane.b32.xlu1 %v4776_v62, %s5572_s3 }
 0x403   :  { %v4786_v63 = vpop.permute.xlu1 %282 }
 0x404   :  { %338 = vrot.lane.b32.xlu0 %v4786_v63, %s5572_s3 }
 0x407   :  { %v4790_v0 = vpop.permute.xlu1 %284 }
 0x408   :  { %387 = vrot.lane.b32.xlu1 %v4790_v0, %s5572_s3 }
 0x40b   :  { %v4794_v1 = vpop.permute.xlu1 %286 }
 0x40c   :  { %436 = vrot.lane.b32.xlu1 %v4794_v1, %s5572_s3  ;;  %s5618_s3 = smov 8  }
 0x40f   :  { %v289_v3 = vpop.permute.xlu1 %288 }
 0x410   :  { %v295_v4 = vsel %vm290_vm4, %v289_v3, 0 }
 0x411   :  { %3946 = vmatpush3.bf16.xpose.msra.mxu0 %v295_v4 }
 0x412   :  { %3957 = vmatprep.subr.bf16.mxu0 %v4556_v2 }
 0x418   :  { %3948 = vmatmul.mubr.msk.bf16.vlgmr.msra.gmra.mrb[4].mxu0 %vm290_vm4, %v4776_v62 }
 0x419   :  { %3959 = vmatprep.mubr.msk.bf16.mxu0 %vm4557_vm0, %v4556_v2 }
 0x476   :  { %v339_v5 = vpop.permute.xlu0 %338 }
 0x477   :  { %v344_v6 = vsel %vm290_vm4, %v339_v5, 0 }
 0x478   :  { %3952 = vmatpush3.bf16.xpose.msra.mxu1 %v344_v6 }
 0x479   :  { %3963 = vmatprep.subr.bf16.mxu1 %v4556_v2 }
 0x47a   :  { %v388_v7 = vpop.permute.xlu1 %387 }
 0x47b   :  { %v393_v8 = vsel %vm290_vm4, %v388_v7, 0 }
 0x47c   :  { %3958 = vmatpush3.bf16.xpose.msra.mxu0 %v393_v8 }
 0x47d   :  { %3969 = vmatprep.subr.bf16.mxu0 %v4556_v2 }
 0x47e   :  { %v437_v9 = vpop.permute.xlu1 %436 }
 0x47f   :  { %v442_v10 = vsel %vm290_vm4, %v437_v9, 0  ;;  %3954 = vmatmul.mubr.msk.bf16.vlgmr.msra.gmra.mrb[4].mxu1 %vm290_vm4, %v4786_v63 }
 0x480   :  { %3964 = vmatpush3.bf16.xpose.msra.mxu1 %v442_v10  ;;  %3965 = vmatprep.mubr.msk.bf16.mxu1 %vm4557_vm0, %v4556_v2 }
 0x481   :  { %3975 = vmatprep.subr.bf16.mxu1 %v4556_v2 }
 0x483   :  { %3960 = vmatmul.mubr.msk.bf16.vlgmr.msra.gmra.mrb[8].mxu0 %vm290_vm4, %v4790_v0 }
 0x484   :  { %3971 = vmatprep.mubr.msk.bf16.mxu0 %vm4557_vm0, %v4556_v2 }
 0x487   :  { %3966 = vmatmul.mubr.msk.bf16.vlgmr.msra.gmra.mrb[8].mxu1 %vm290_vm4, %v4794_v1 }
 0x488   :  { %3977 = vmatprep.mubr.msk.bf16.mxu1 %vm4557_vm0, %v4556_v2 }
 0x4eb   :  { %v331_v11 = vpop.f32.mrb[4].mxu0 }
 0x4ec   :  { %v485_v13 = vmul.f32 0.35355338, %v331_v11  ;;  %v3949_v14 = vpop.f32.mrb[5].mxu0 }
 0x4ed   :  { %v334_v16 = vpop.f32.mrb[6].mxu0 }
 0x4ee   :  { %v486_v19 = vmul.f32 0.35355338, %v334_v16  ;;  %v3950_v20 = vpop.f32.mrb[7].mxu0  ;;  %v493_v21 = vadd.f32 %v485_v13, %v167_v12 }
 0x4f0   :  { %v502_v22 = vsel %vm501_vm5, %v493_v21, -inf  ;;  %v494_v23 = vadd.f32 %v486_v19, %v168_v17 }
 0x4f1   :  { %503 = vmax.xlane.f32.xlu1 %v502_v22 }
 0x4f2   :  { %v505_v24 = vsel %vm501_vm5, %v494_v23, -inf }
 0x4f3   :  { %506 = vmax.xlane.f32.xlu0 %v505_v24 }
 0x552   :  { %v380_v25 = vpop.f32.mrb[4].mxu1 }
 0x553   :  { %v487_v26 = vmul.f32 0.35355338, %v380_v25  ;;  %v3955_v27 = vpop.f32.mrb[5].mxu1 }
 0x554   :  { %v383_v28 = vpop.f32.mrb[6].mxu1 }
 0x555   :  { %v488_v29 = vmul.f32 0.35355338, %v383_v28  ;;  %v3956_v30 = vpop.f32.mrb[7].mxu1  ;;  %v495_v31 = vadd.f32 %v487_v26, %v167_v12 }
 0x556   :  { %v429_v32 = vpop.f32.mrb[8].mxu0 }
 0x557   :  { %v489_v33 = vmul.f32 0.35355338, %v429_v32  ;;  %v3961_v34 = vpop.f32.mrb[9].mxu0  ;;  %v508_v35 = vsel %vm501_vm5, %v495_v31, -inf  ;;  %v496_v36 = vadd.f32 %v488_v29, %v168_v17 }
 0x558   :  { %509 = vmax.xlane.f32.xlu1 %v508_v35  ;;  %v432_v37 = vpop.f32.mrb[10].mxu0 }
 0x559   :  { %v490_v38 = vmul.f32 0.35355338, %v432_v37  ;;  %v3962_v39 = vpop.f32.mrb[11].mxu0  ;;  %v497_v43 = vadd.f32 %v489_v33, %v167_v12  ;;  %v511_v48 = vsel %vm501_vm5, %v496_v36, -inf }
 0x55a   :  { %v478_v44 = vpop.f32.mrb[8].mxu1 }
 0x55b   :  { %v491_v45 = vmul.f32 0.35355338, %v478_v44  ;;  %v3967_v47 = vpop.f32.mrb[9].mxu1  ;;  %v514_v49 = vsel %vm501_vm5, %v497_v43, -inf  ;;  %v498_v50 = vadd.f32 %v490_v38, %v168_v17 }
 0x55c   :  { %v481_v51 = vpop.f32.mrb[10].mxu1  ;;  %512 = vmax.xlane.f32.xlu1 %v511_v48  ;;  %515 = vmax.xlane.f32.xlu0 %v514_v49 }
 0x55d   :  { %v492_v52 = vmul.f32 0.35355338, %v481_v51  ;;  %v3968_v53 = vpop.f32.mrb[11].mxu1  ;;  %v499_v54 = vadd.f32 %v491_v45, %v167_v12  ;;  %v517_v56 = vsel %vm501_vm5, %v498_v50, -inf }
 0x55f   :  { %v520_v55 = vsel %vm501_vm5, %v499_v54, -inf  ;;  %v500_v57 = vadd.f32 %v492_v52, %v168_v17 }
 0x560   :  { %521 = vmax.xlane.f32.xlu0 %v520_v55  ;;  %518 = vmax.xlane.f32.xlu1 %v517_v56 }
 0x561   :  { %v523_v58 = vsel %vm501_vm5, %v500_v57, -inf }
 0x564   :  { %524 = vmax.xlane.f32.xlu1 %v523_v58 }
 0x575   :  { %641 = vrot.lane.b32.xlu1 %v4786_v63, %s5564_s30 }
 0x576   :  { %594 = vrot.lane.b32.xlu0 %v4776_v62, %s5564_s30 }
 0x57e   :  { %v504_v59 = vpop.xlane.xlu1 %503 }
 0x57f   :  { %v526_v60 = vsub.f32 %v493_v21, %v504_v59 }
 0x580   :  { %v507_v61 = vpop.xlane.xlu0 %506 }
 0x581   :  { %v534_v3 = vmul.f32 1.442695, %v526_v60  ;;  %v527_v4 = vsub.f32 %v494_v23, %v507_v61 }
 0x583   :  { %4371 = vpow2.f32 %v534_v3  ;;  %v536_v5 = vmul.f32 1.442695, %v527_v4 }
 0x585   :  { %4373 = vpow2.f32 %v536_v5 }
 0x58d   :  { %v4372_v6 = vpop.eup %4371 }
 0x58e   :  { %v550_v7 = vsel %vm501_vm5, %v4372_v6, 0.0 }
 0x58f   :  { %v4374_v8 = vpop.eup %4373 }
 0x590   :  { %v553_v9 = vsel %vm501_vm5, %v4374_v8, 0.0 }
 0x595   :  { %551 = vadd.xlane.f32.xlu0 %v550_v7 }
 0x599   :  { %554 = vadd.xlane.f32.xlu1 %v553_v9 }
 0x5e5   :  { %v510_v63 = vpop.xlane.xlu1 %509 }
 0x5e6   :  { %v528_v10 = vsub.f32 %v495_v31, %v510_v63 }
 0x5e8   :  { %v538_v11 = vmul.f32 1.442695, %v528_v10 }
 0x5e9   :  { %v513_v62 = vpop.xlane.xlu1 %512  ;;  %v516_v12 = vpop.xlane.xlu0 %515 }
 0x5ea   :  { %4375 = vpow2.f32 %v538_v11  ;;  %v529_v13 = vsub.f32 %v496_v36, %v513_v62  ;;  %v530_v14 = vsub.f32 %v497_v43, %v516_v12 }
 0x5ec   :  { %v540_v16 = vmul.f32 1.442695, %v529_v13  ;;  %v542_v17 = vmul.f32 1.442695, %v530_v14 }
 0x5ed   :  { %v522_v19 = vpop.xlane.xlu0 %521  ;;  %v519_v20 = vpop.xlane.xlu1 %518 }
 0x5ee   :  { %4377 = vpow2.f32 %v540_v16  ;;  %v532_v21 = vsub.f32 %v499_v54, %v522_v19  ;;  %v531_v22 = vsub.f32 %v498_v50, %v519_v20  ;;  %v4335_v19 = vld [vmem:[%s5611_s28] sm:$0xff]  }
 0x5ef   :  { %4379 = vpow2.f32 %v542_v17 }
 0x5f0   :  { %v546_v23 = vmul.f32 1.442695, %v532_v21  ;;  %v544_v24 = vmul.f32 1.442695, %v531_v22 }
 0x5f1   :  { %v595_v25 = vpop.permute.xlu0 %594  ;;  %v525_v26 = vpop.xlane.xlu1 %524 }
 0x5f2   :  { %4381 = vpow2.f32 %v546_v23  ;;  %v533_v27 = vsub.f32 %v500_v57, %v525_v26  ;;  %3970 = vmatpush3.bf16.msra.mxu0 %v595_v25  ;;  %v4336_v23 = vld [vmem:[%s5611_s28 + $0x8] sm:$0xff]  }
 0x5f3   :  { %4383 = vpow2.f32 %v544_v24  ;;  %3981 = vmatprep.subr.bf16.mxu0 %v4556_v2 }
 0x5f4   :  { %v4376_v28 = vpop.eup %4375  ;;  %v548_v29 = vmul.f32 1.442695, %v533_v27 }
 0x5f5   :  { %v642_v30 = vpop.permute.xlu1 %641  ;;  %v556_v31 = vsel %vm501_vm5, %v4376_v28, 0.0 }
 0x5f6   :  { %4385 = vpow2.f32 %v548_v29  ;;  %557 = vadd.xlane.f32.xlu0 %v556_v31  ;;  %3976 = vmatpush3.bf16.msra.mxu1 %v642_v30 }
 0x5f7   :  { %3987 = vmatprep.subr.bf16.mxu1 %v4556_v2 }
 0x5f8   :  { %v4378_v32 = vpop.eup %4377 }
 0x5f9   :  { %v4380_v33 = vpop.eup %4379  ;;  %v559_v34 = vsel %vm501_vm5, %v4378_v32, 0.0 }
 0x5fa   :  { %v562_v35 = vsel %vm501_vm5, %v4380_v33, 0.0  ;;  %560 = vadd.xlane.f32.xlu1 %v559_v34 }
 0x5fb   :  { %563 = vadd.xlane.f32.xlu0 %v562_v35 }
 0x5fc   :  { %v4382_v36 = vpop.eup %4381 }
 0x5fd   :  { %v4384_v37 = vpop.eup %4383  ;;  %v568_v38 = vsel %vm501_vm5, %v4382_v36, 0.0 }
 0x5fe   :  { %v565_v39 = vsel %vm501_vm5, %v4384_v37, 0.0 }
 0x5ff   :  { %569 = vadd.xlane.f32.xlu0 %v568_v38  ;;  %566 = vadd.xlane.f32.xlu1 %v565_v39 }
 0x600   :  { %v4386_v43 = vpop.eup %4385 }
 0x601   :  { %v571_v44 = vsel %vm501_vm5, %v4386_v43, 0.0 }
 0x603   :  { %572 = vadd.xlane.f32.xlu1 %v571_v44 }
 0x614   :  { %688 = vrot.lane.b32.xlu1 %v4790_v0, %s5564_s30 }
 0x615   :  { %735 = vrot.lane.b32.xlu0 %v4794_v1, %s5564_s30  ;;  %s5570_s30 = smov 8  }
 0x622   :  { %v552_v45 = vpop.xlane.xlu0 %551 }
 0x623   :  { %4387 = vrcp.f32 %v552_v45 }
 0x626   :  { %v555_v47 = vpop.xlane.xlu1 %554 }
 0x627   :  { %4389 = vrcp.f32 %v555_v47 }
 0x62d   :  { %v4388_v48 = vpop.eup %4387 }
 0x62e   :  { %v582_v50 = vmul.f32 %v4388_v48, %v4372_v6 }
 0x631   :  { %v4390_v49 = vpop.eup %4389 }
 0x632   :  { %v583_v51 = vmul.f32 %v4390_v49, %v4374_v8 }
 0x634   :  { %v590_v52 = vpack.c.bf16 %v583_v51, %v582_v50 }
 0x636   :  { %3972 = vmatmul.mubr.msk.bf16.vlgmr.msra.gmra.mrb[12].mxu0 %vm501_vm5, %v590_v52 }
 0x637   :  { %3983 = vmatprep.mubr.msk.bf16.mxu0 %vm4557_vm0, %v4556_v2 }
 0x683   :  { %v558_v53 = vpop.xlane.xlu0 %557 }
 0x684   :  { %4391 = vrcp.f32 %v558_v53 }
 0x687   :  { %v561_v0 = vpop.xlane.xlu1 %560 }
 0x688   :  { %v564_v54 = vpop.xlane.xlu0 %563  ;;  %4393 = vrcp.f32 %v561_v0 }
 0x689   :  { %4395 = vrcp.f32 %v564_v54 }
 0x68c   :  { %v570_v1 = vpop.xlane.xlu0 %569  ;;  %v567_v55 = vpop.xlane.xlu1 %566 }
 0x68d   :  { %4397 = vrcp.f32 %v567_v55 }
 0x68e   :  { %4399 = vrcp.f32 %v570_v1  ;;  %v4392_v56 = vpop.eup %4391  ;;  %v3686_v1 = vld [vmem:[%s5538_s11] ss:$0 sm:$0xff] }
 0x68f   :  { %v584_v59 = vmul.f32 %v4392_v56, %v4376_v28 }
 0x690   :  { %v573_v57 = vpop.xlane.xlu1 %572  ;;  %v736_v5 = vpop.permute.xlu0 %735 }
 0x691   :  { %4401 = vrcp.f32 %v573_v57 }
 0x692   :  { %v4394_v58 = vpop.eup %4393 }
 0x693   :  { %v585_v60 = vmul.f32 %v4394_v58, %v4378_v32  ;;  %v4396_v4 = vpop.eup %4395 }
 0x694   :  { %v689_v61 = vpop.permute.xlu1 %688  ;;  %v586_v8 = vmul.f32 %v4396_v4, %v4380_v33 }
 0x695   :  { %3982 = vmatpush3.bf16.msra.mxu0 %v689_v61  ;;  %v591_v3 = vpack.c.bf16 %v585_v60, %v584_v59 }
 0x696   :  { %3993 = vmatprep.subr.bf16.mxu0 %v4556_v2 }
 0x697   :  { %3978 = vmatmul.mubr.msk.bf16.vlgmr.msra.gmra.mrb[12].mxu1 %vm501_vm5, %v591_v3  ;;  %v4398_v6 = vpop.eup %4397 }
 0x698   :  { %3988 = vmatpush3.bf16.msra.mxu1 %v736_v5  ;;  %3989 = vmatprep.mubr.msk.bf16.mxu1 %vm4557_vm0, %v4556_v2  ;;  %v4400_v7 = vpop.eup %4399  ;;  %v587_v9 = vmul.f32 %v4398_v6, %v4384_v37 }
 0x699   :  { %4001 = vmatprep.subr.bf16.mxu1 %v4556_v2  ;;  %v588_v11 = vmul.f32 %v4400_v7, %v4382_v36 }
 0x69a   :  { %v592_v10 = vpack.c.bf16 %v587_v9, %v586_v8 }
 0x69b   :  { %v4402_v63 = vpop.eup %4401 }
 0x69c   :  { %v589_v62 = vmul.f32 %v4402_v63, %v4386_v43  ;;  %3984 = vmatmul.mubr.msk.bf16.vlgmr.msra.gmra.mrb[16].mxu0 %vm501_vm5, %v592_v10 }
 0x69d   :  { %3997 = vmatprep.mubr.msk.bf16.mxu0 %vm4557_vm0, %v4556_v2  ;;  %3994 = vmatpush3.bf16.msra.mxu0 %v4335_v19  ;;  %v4339_v19 = vld [vmem:[%s5539_s12] sm:$0xff]  }
 0x69e   :  { %v593_v12 = vpack.c.bf16 %v589_v62, %v588_v11  ;;  %3995 = vmatprep.subr.bf16.mxu0 %v4556_v2 }
 0x6a0   :  { %3990 = vmatmul.mubr.msk.bf16.vlgmr.msra.gmra.mrb[16].mxu1 %vm501_vm5, %v593_v12  ;;  %v4337_v12 = vld [vmem:[%s5541_s14] sm:$0xff]  }
 0x6a1   :  { %4005 = vmatprep.mubr.msk.bf16.mxu1 %vm4557_vm0, %v4556_v2  ;;  %3996 = vmatpush3.bf16.msra.mxu0 %v4336_v23 }
 0x6a2   :  { %4009 = vmatprep.subr.bf16.mxu0 %v4556_v2  ;;  %4002 = vmatpush3.bf16.msra.mxu1 %v4339_v19 }
 0x6a3   :  { %4003 = vmatprep.subr.bf16.mxu1 %v4556_v2 }
 0x709   :  { %v634_v13 = vpop.f32.mrb[12].mxu0 }
 0x70a   :  { %v3973_v14 = vpop.f32.mrb[13].mxu0 }
 0x70b   :  { %v637_v16 = vpop.f32.mrb[14].mxu0  ;;  %v164_v14 = vld [vmem:[%s5612_s1] sm:$0xff] }
 0x70c   :  { %v3974_v17 = vpop.f32.mrb[15].mxu0 }
 0x76a   :  { %v681_v20 = vpop.f32.mrb[12].mxu1 }
 0x76b   :  { %v3979_v21 = vpop.f32.mrb[13].mxu1 }
 0x76c   :  { %v684_v22 = vpop.f32.mrb[14].mxu1 }
 0x76d   :  { %v4271_v24 = vpack.i.bf16 %v684_v22, %v681_v20  ;;  %v3980_v25 = vpop.f32.mrb[15].mxu1  ;;  %v4340_v20 = vld [vmem:[%s5539_s12 + $0x8] sm:$0xff]  }
 0x76e   :  { %4004 = vmatpush3.bf16.msra.mxu1 %v4340_v20 }
 0x76f   :  { %4272 = vrot.lane.b32.xlu1 %v4271_v24, %s5570_s30  ;;  %v728_v26 = vpop.f32.mrb[16].mxu0  ;;  %4017 = vmatprep.subr.bf16.mxu1 %v4556_v2  ;;  %s5619_s30 = smov 16  }
 0x770   :  { %v3985_v27 = vpop.f32.mrb[17].mxu0 }
 0x771   :  { %v731_v28 = vpop.f32.mrb[18].mxu0  ;;  %v4934_v27 = vsub.s32 1, %v4751_v40 }
 0x772   :  { %v4276_v29 = vpack.i.bf16 %v731_v28, %v728_v26  ;;  %v3986_v30 = vpop.f32.mrb[19].mxu0 }
 0x773   :  { %v775_v31 = vpop.f32.mrb[16].mxu1 }
 0x774   :  { %v3991_v32 = vpop.f32.mrb[17].mxu1  ;;  %4277 = vrot.lane.b32.xlu0 %v4276_v29, %s5568_s2  ;;  %v912_v29 = vrot.slane %v4759_v42, %v4934_v27  ;;  %v3694_v42 = vld [vmem:[%s5542_s15] ss:$0 sm:$0xff]  ;;  %s5614_s2 = smov 120  }
 0x775   :  { %v778_v33 = vpop.f32.mrb[18].mxu1 }
 0x776   :  { %v4281_v34 = vpack.i.bf16 %v778_v33, %v775_v31  ;;  %v3992_v35 = vpop.f32.mrb[19].mxu1 }
 0x778   :  { %4282 = vrot.lane.b32.xlu1 %v4281_v34, %s5566_s7  ;;  %v918_v34 = vrot.slane %v4766_v46, %v4934_v27  ;;  %s3658_s7 = sshll.u32 %s4566_s26, 4  ;;  %s3659_s7 = int_to_ptr.vmem [resolvable:$true] %s3658_s7 }
 0x779   :  { %p4536_p1 = scmp.lt.s32.totalorder %s3659_s7, %s3659_s7 }
 0x7e1   :  { %v4273_v36 = vpop.permute.xlu1 %4272 }
 0x7e2   :  { %v4275_v37 = vunpack.i.h.bf16 %v4273_v36  ;;  %v4274_v38 = vunpack.i.l.bf16 %v4273_v36 }
 0x7e4   :  { %v806_v47 = vsel %vm290_vm4, %v634_v13, %v4274_v38  ;;  %v807_v48 = vsel %vm290_vm4, %v637_v16, %v4275_v37  ;;  %v4338_v13 = vld [vmem:[%s5541_s14 + $0x8] sm:$0xff]  }
 0x7e5   :  { %v165_v16 = vld [vmem:[%s5612_s1 + $0x8] sm:$0xff]  ;;  %s5613_s1 = smov 112  }
 0x7e6   :  { %v4278_v39 = vpop.permute.xlu0 %4277  ;;  %v4918_v17 = vpack.c.bf16 %v165_v16, %v164_v14 }
 0x7e7   :  { %v4280_v43 = vunpack.i.h.bf16 %v4278_v39  ;;  %v4279_v44 = vunpack.i.l.bf16 %v4278_v39 }
 0x7e9   :  { %v809_v51 = vsel %vm501_vm5, %v807_v48, %v4280_v43  ;;  %v808_v52 = vsel %vm501_vm5, %v806_v47, %v4279_v44 }
 0x7ea   :  { %v4283_v45 = vpop.permute.xlu1 %4282 }
 0x7eb   :  { %v4285_v49 = vunpack.i.h.bf16 %v4283_v45  ;;  %v4284_v50 = vunpack.i.l.bf16 %v4283_v45 }
 0x7ed   :  { %v811_v53 = vsel %vm810_vm6, %v808_v52, %v4284_v50  ;;  %v812_v0 = vsel %vm810_vm6, %v809_v51, %v4285_v49  ;;  %v3690_v52 = vld [vmem:[%s5540_s13] ss:$0 sm:$0xff] }
 0x7ee   :  { %v813_v54 = vpack.c.bf16 %v812_v0, %v811_v53 }
 0x7f0   :  { %3998 = vmatmul.mubr.msk.bf16.vlgmr.msra.gmra.mrb[20].mxu0 %vm119_vm3, %v813_v54 }
 0x7f1   :  { %4013 = vmatprep.mubr.msk.bf16.mxu0 %vm4557_vm0, %v4556_v2  ;;  %4010 = vmatpush3.bf16.msra.mxu0 %v4337_v12 }
 0x7f2   :  { %4011 = vmatprep.subr.bf16.mxu0 %v4556_v2 }
 0x7f5   :  { %4012 = vmatpush3.bf16.msra.mxu0 %v4338_v13 }
 0x7f6   :  { %4023 = vmatprep.subr.bf16.mxu0 %v4556_v2 }
 0x7f8   :  { %4014 = vmatmul.mubr.msk.bf16.vlgmr.msra.gmra.mrb[24].mxu0 %vm119_vm3, %v4918_v17 }
 0x7f9   :  { %4025 = vmatprep.mubr.msk.bf16.mxu0 %vm4557_vm0, %v4556_v2 }
 0x8c3   :  { %v874_v55 = vpop.f32.mrb[20].mxu0 }
 0x8c4   :  { %v875_v56 = vadd.f32 %v3686_v1, %v874_v55  ;;  %v3999_v57 = vpop.f32.mrb[21].mxu0 }
 0x8c5   :  { %v877_v58 = vpop.f32.mrb[22].mxu0 }
 0x8c6   :  { %v4892_v59 = vadd.f32 %v875_v56, %v4731_v15  ;;  %v878_v60 = vadd.f32 %v3686_v1, %v877_v58  ;;  %v4000_v61 = vpop.f32.mrb[23].mxu0 }
 0x8c8   :  { %v4895_v3 = vadd.f32 %v878_v60, %v4733_v18  ;;  %v883_v4 = vsel %vm119_vm3, %v4892_v59, 0.0 }
 0x8c9   :  { %884 = vadd.xlane.f32.xlu0 %v883_v4 }
 0x8ca   :  { %v886_v5 = vsel %vm119_vm3, %v4895_v3, 0.0 }
 0x8cb   :  { %887 = vadd.xlane.f32.xlu1 %v886_v5  ;;  %v1049_v39 = vpop.f32.mrb[24].mxu0 }
 0x8cc   :  { %v1050_v43 = vadd.f32 %v3694_v42, %v1049_v39  ;;  %v4015_v44 = vpop.f32.mrb[25].mxu0 }
 0x8cd   :  { %v1052_v45 = vpop.f32.mrb[26].mxu0 }
 0x8ce   :  { %v1053_v47 = vadd.f32 %v3694_v42, %v1052_v45  ;;  %v4016_v48 = vpop.f32.mrb[27].mxu0 }
 0x8d0   :  { %v4946_v46 = vpack.c.bf16 %v1053_v47, %v1050_v43 }
 0x8d2   :  { %v1076_v49 = vsel %vm290_vm4, %v4946_v46, 0 }
 0x8dc   :  { %1066 = vrot.lane.b32.xlu1 %v4946_v46, %s5614_s2 }
 0x956   :  { %v885_v6 = vpop.xlane.xlu0 %884 }
 0x957   :  { %v889_v7 = vmul.f32 0.03125, %v885_v6 }
 0x958   :  { %v888_v8 = vpop.xlane.xlu1 %887 }
 0x959   :  { %v891_v9 = vsub.f32 %v4892_v59, %v889_v7  ;;  %v890_v15 = vmul.f32 0.03125, %v888_v8 }
 0x95b   :  { %v892_v63 = vsub.f32 %v4895_v3, %v890_v15  ;;  %v893_v10 = vmul.f32 %v891_v9, %v891_v9 }
 0x95c   :  { %v4955_v50 = vpop.permute.xlu1 %1066 }
 0x95d   :  { %v895_v18 = vsel %vm119_vm3, %v893_v10, 0.0  ;;  %v894_v11 = vmul.f32 %v892_v63, %v892_v63  ;;  %v1123_v51 = vsel %vm290_vm4, %v4955_v50, 0 }
 0x95e   :  { %896 = vadd.xlane.f32.xlu0 %v895_v18  ;;  %4024 = vmatpush3.bf16.xpose.msra.mxu0 %v1123_v51  ;;  %v170_v18 = vld [vmem:[%s5616_s10 + $0x8] sm:$0xff] }
 0x95f   :  { %v898_v62 = vsel %vm119_vm3, %v894_v11, 0.0  ;;  %4035 = vmatprep.subr.bf16.mxu0 %v4556_v2 }
 0x962   :  { %899 = vadd.xlane.f32.xlu0 %v898_v62 }
 0x978   :  { %1068 = vrot.lane.b32.xlu0 %v4946_v46, %s5613_s1 }
 0x9eb   :  { %v897_v21 = vpop.xlane.xlu0 %896 }
 0x9ec   :  { %v901_v22 = vmul.f32 0.03125, %v897_v21 }
 0x9ee   :  { %v903_v23 = vadd.f32 1e-05, %v901_v22 }
 0x9ef   :  { %v900_v24 = vpop.xlane.xlu0 %899 }
 0x9f0   :  { %4403 = vrsqrt.f32 %v903_v23  ;;  %v902_v25 = vmul.f32 0.03125, %v900_v24 }
 0x9f2   :  { %v904_v26 = vadd.f32 1e-05, %v902_v25 }
 0x9f3   :  { %v4963_v57 = vpop.permute.xlu0 %1068 }
 0x9f4   :  { %4405 = vrsqrt.f32 %v904_v26  ;;  %v1170_v60 = vsel %vm290_vm4, %v4963_v57, 0 }
 0x9fa   :  { %v4404_v28 = vpop.eup %4403 }
 0x9fb   :  { %v907_v30 = vmul.f32 %v4404_v28, %v891_v9  ;;  %v169_v9 = vld [vmem:[%s5616_s10] sm:$0xff] }
 0x9fd   :  { %v913_v32 = vmul.f32 %v912_v29, %v907_v30 }
 0x9fe   :  { %v4406_v31 = vpop.eup %4405 }
 0x9ff   :  { %v908_v33 = vmul.f32 %v4406_v31, %v892_v63  ;;  %v919_v36 = vadd.f32 %v918_v34, %v913_v32 }
 0xa01   :  { %v914_v35 = vmul.f32 %v912_v29, %v908_v33 }
 0xa03   :  { %v920_v37 = vadd.f32 %v918_v34, %v914_v35 }
 0xa05   :  { %v921_v38 = vpack.c.bf16 %v920_v37, %v919_v36 }
 0xa07   :  { %4006 = vmatmul.mubr.msk.bf16.vlgmr.msra.gmra.mrb[20].mxu1 %vm119_vm3, %v921_v38 }
 0xa08   :  { %4019 = vmatprep.mubr.msk.bf16.mxu1 %vm4557_vm0, %v4556_v2  ;;  %4018 = vmatpush3.bf16.xpose.msra.mxu1 %v1076_v49 }
 0xa09   :  { %4029 = vmatprep.subr.bf16.mxu1 %v4556_v2 }
 0xada   :  { %v982_v53 = vpop.f32.mrb[20].mxu1 }
 0xadb   :  { %v4007_v0 = vpop.f32.mrb[21].mxu1  ;;  %v983_v1 = vadd.f32 %v3690_v52, %v982_v53 }
 0xadc   :  { %v985_v54 = vpop.f32.mrb[22].mxu1 }
 0xadd   :  { %v986_v55 = vadd.f32 %v3690_v52, %v985_v54  ;;  %v4008_v56 = vpop.f32.mrb[23].mxu1 }
 0xadf   :  { %v1056_v58 = vpack.c.bf16 %v986_v55, %v983_v1 }
 0xae1   :  { %1060 = vrot.lane.b32.xlu0 %v1056_v58, %s5613_s1  ;;  %1058 = vrot.lane.b32.xlu1 %v1056_v58, %s5614_s2 }
 0xae2   :  { %4020 = vmatmul.mubr.msk.bf16.vlgmr.msra.gmra.mrb[24].mxu1 %vm290_vm4, %v1056_v58 }
 0xae3   :  { %4030 = vmatpush3.bf16.xpose.msra.mxu1 %v1170_v60  ;;  %4031 = vmatprep.mubr.msk.bf16.mxu1 %vm4557_vm0, %v4556_v2 }
 0xae4   :  { %4041 = vmatprep.subr.bf16.mxu1 %v4556_v2 }
 0xae5   :  { %1070 = vrot.lane.b32.xlu1 %v4946_v46, %s5615_s0 }
 0xae9   :  { %1062 = vrot.lane.b32.xlu1 %v1056_v58, %s5615_s0 }
 0xb53   :  { %v1061_v61 = vpop.permute.xlu0 %1060  ;;  %v1059_v4 = vpop.permute.xlu1 %1058 }
 0xb54   :  { %4026 = vmatmul.mubr.msk.bf16.vlgmr.msra.gmra.mrb[28].mxu0 %vm290_vm4, %v1059_v4  ;;  %4032 = vmatmul.mubr.msk.bf16.vlgmr.msra.gmra.mrb[28].mxu1 %vm290_vm4, %v1061_v61 }
 0xb55   :  { %4037 = vmatprep.mubr.msk.bf16.mxu0 %vm4557_vm0, %v4556_v2  ;;  %4043 = vmatprep.mubr.msk.bf16.mxu1 %vm4557_vm0, %v4556_v2 }
 0xb57   :  { %v4982_v5 = vpop.permute.xlu1 %1070 }
 0xb58   :  { %v1217_v6 = vsel %vm290_vm4, %v4982_v5, 0 }
 0xb59   :  { %4036 = vmatpush3.bf16.xpose.msra.mxu0 %v1217_v6 }
 0xb5a   :  { %4047 = vmatprep.subr.bf16.mxu0 %v4556_v2 }
 0xb5b   :  { %v1063_v7 = vpop.permute.xlu1 %1062 }
 0xb60   :  { %4038 = vmatmul.mubr.msk.bf16.vlgmr.msra.gmra.mrb[32].mxu0 %vm290_vm4, %v1063_v7 }
 0xb61   :  { %4049 = vmatprep.mubr.msk.bf16.mxu0 %vm4557_vm0, %v4556_v2 }
 0xbb5   :  { %v1112_v8 = vpop.f32.mrb[24].mxu1 }
 0xbb6   :  { %v1260_v15 = vmul.f32 0.35355338, %v1112_v8  ;;  %v4021_v63 = vpop.f32.mrb[25].mxu1 }
 0xbb7   :  { %v1115_v10 = vpop.f32.mrb[26].mxu1 }
 0xbb8   :  { %v1261_v11 = vmul.f32 0.35355338, %v1115_v10  ;;  %v4022_v62 = vpop.f32.mrb[27].mxu1  ;;  %v1268_v12 = vadd.f32 %v1260_v15, %v169_v9 }
 0xbba   :  { %v1276_v13 = vsel %vm501_vm5, %v1268_v12, -inf  ;;  %v1269_v14 = vadd.f32 %v1261_v11, %v170_v18 }
 0xbbb   :  { %1277 = vmax.xlane.f32.xlu0 %v1276_v13 }
 0xbbc   :  { %v1279_v16 = vsel %vm501_vm5, %v1269_v14, -inf }
 0xbbd   :  { %1280 = vmax.xlane.f32.xlu1 %v1279_v16 }
 0xc27   :  { %v1159_v19 = vpop.f32.mrb[28].mxu0  ;;  %v1206_v20 = vpop.f32.mrb[28].mxu1 }
 0xc28   :  { %v1262_v21 = vmul.f32 0.35355338, %v1159_v19  ;;  %v1264_v22 = vmul.f32 0.35355338, %v1206_v20  ;;  %v4027_v23 = vpop.f32.mrb[29].mxu0  ;;  %v4033_v24 = vpop.f32.mrb[29].mxu1 }
 0xc29   :  { %v1162_v25 = vpop.f32.mrb[30].mxu0  ;;  %v1209_v26 = vpop.f32.mrb[30].mxu1 }
 0xc2a   :  { %v1263_v28 = vmul.f32 0.35355338, %v1162_v25  ;;  %v4028_v29 = vpop.f32.mrb[31].mxu0  ;;  %v4034_v30 = vpop.f32.mrb[31].mxu1  ;;  %v1272_v31 = vadd.f32 %v1264_v22, %v169_v9  ;;  %v1270_v32 = vadd.f32 %v1262_v21, %v169_v9  ;;  %v1265_v33 = vmul.f32 0.35355338, %v1209_v26 }
 0xc2c   :  { %v1288_v34 = vsel %vm501_vm5, %v1272_v31, -inf  ;;  %v1282_v35 = vsel %vm501_vm5, %v1270_v32, -inf  ;;  %v1271_v36 = vadd.f32 %v1263_v28, %v170_v18  ;;  %v1273_v38 = vadd.f32 %v1265_v33, %v170_v18 }
 0xc2d   :  { %1289 = vmax.xlane.f32.xlu1 %v1288_v34  ;;  %1283 = vmax.xlane.f32.xlu0 %v1282_v35 }
 0xc2e   :  { %v1285_v37 = vsel %vm501_vm5, %v1271_v36, -inf  ;;  %v1291_v44 = vsel %vm501_vm5, %v1273_v38, -inf }
 0xc31   :  { %1286 = vmax.xlane.f32.xlu0 %v1285_v37 }
 0xc33   :  { %v1253_v42 = vpop.f32.mrb[32].mxu0 }
 0xc34   :  { %v1266_v39 = vmul.f32 0.35355338, %v1253_v42  ;;  %v4039_v43 = vpop.f32.mrb[33].mxu0 }
 0xc35   :  { %1292 = vmax.xlane.f32.xlu0 %v1291_v44  ;;  %v1256_v45 = vpop.f32.mrb[34].mxu0 }
 0xc36   :  { %v1267_v47 = vmul.f32 0.35355338, %v1256_v45  ;;  %v4040_v48 = vpop.f32.mrb[35].mxu0  ;;  %v1274_v49 = vadd.f32 %v1266_v39, %v169_v9 }
 0xc38   :  { %v1294_v51 = vsel %vm501_vm5, %v1274_v49, -inf  ;;  %v1275_v52 = vadd.f32 %v1267_v47, %v170_v18 }
 0xc39   :  { %1295 = vmax.xlane.f32.xlu1 %v1294_v51 }
 0xc3a   :  { %v1297_v53 = vsel %vm501_vm5, %v1275_v52, -inf }
 0xc3b   :  { %1298 = vmax.xlane.f32.xlu0 %v1297_v53 }
 0xc48   :  { %v1278_v55 = vpop.xlane.xlu0 %1277 }
 0xc49   :  { %v1300_v56 = vsub.f32 %v1268_v12, %v1278_v55 }
 0xc4a   :  { %v1281_v0 = vpop.xlane.xlu1 %1280  ;;  %1368 = vrot.lane.b32.xlu1 %v4946_v46, %s5617_s29 }
 0xc4b   :  { %v1301_v54 = vsub.f32 %v1269_v14, %v1281_v0  ;;  %v1308_v61 = vmul.f32 1.442695, %v1300_v56 }
 0xc4d   :  { %v1310_v1 = vmul.f32 1.442695, %v1301_v54 }
 0xc4f   :  { %4407 = vpow2.f32 %v1310_v1 }
 0xc50   :  { %4409 = vpow2.f32 %v1308_v61 }
 0xc59   :  { %v4408_v58 = vpop.eup %4407 }
 0xc5a   :  { %v1327_v60 = vsel %vm501_vm5, %v4408_v58, 0.0  ;;  %v4410_v4 = vpop.eup %4409 }
 0xc5b   :  { %1328 = vadd.xlane.f32.xlu0 %v1327_v60  ;;  %v1324_v6 = vsel %vm501_vm5, %v4410_v4, 0.0 }
 0xc6e   :  { %1325 = vadd.xlane.f32.xlu1 %v1324_v6 }
 0xcba   :  { %v1290_v7 = vpop.xlane.xlu1 %1289  ;;  %v1284_v8 = vpop.xlane.xlu0 %1283 }
 0xcbb   :  { %v1304_v9 = vsub.f32 %v1272_v31, %v1290_v7  ;;  %v1302_v15 = vsub.f32 %v1270_v32, %v1284_v8 }
 0xcbd   :  { %v1312_v46 = vmul.f32 1.442695, %v1302_v15  ;;  %v1316_v63 = vmul.f32 1.442695, %v1304_v9 }
 0xcbe   :  { %v1287_v10 = vpop.xlane.xlu0 %1286 }
 0xcbf   :  { %v1303_v18 = vsub.f32 %v1271_v36, %v1287_v10  ;;  %4411 = vpow2.f32 %v1312_v46 }
 0xcc0   :  { %4413 = vpow2.f32 %v1316_v63 }
 0xcc1   :  { %v1314_v11 = vmul.f32 1.442695, %v1303_v18 }
 0xcc2   :  { %v1293_v62 = vpop.xlane.xlu0 %1292 }
 0xcc3   :  { %4415 = vpow2.f32 %v1314_v11  ;;  %v1305_v12 = vsub.f32 %v1273_v38, %v1293_v62  ;;  %v4341_v62 = vld [vmem:[%s5543_s16] sm:$0xff]  }
 0xcc5   :  { %v1318_v13 = vmul.f32 1.442695, %v1305_v12 }
 0xcc6   :  { %v1296_v14 = vpop.xlane.xlu1 %1295 }
 0xcc7   :  { %4417 = vpow2.f32 %v1318_v13  ;;  %v1306_v16 = vsub.f32 %v1274_v49, %v1296_v14  ;;  %v4342_v14 = vld [vmem:[%s5543_s16 + $0x8] sm:$0xff]  }
 0xcc8   :  { %v1299_v19 = vpop.xlane.xlu0 %1298 }
 0xcc9   :  { %v1320_v20 = vmul.f32 1.442695, %v1306_v16  ;;  %v1307_v21 = vsub.f32 %v1275_v52, %v1299_v19  ;;  %v4412_v22 = vpop.eup %4411 }
 0xcca   :  { %v1369_v23 = vpop.permute.xlu1 %1368  ;;  %v1330_v25 = vsel %vm501_vm5, %v4412_v22, 0.0  ;;  %v4414_v26 = vpop.eup %4413 }
 0xccb   :  { %4419 = vpow2.f32 %v1320_v20  ;;  %v1322_v24 = vmul.f32 1.442695, %v1307_v21  ;;  %4042 = vmatpush3.bf16.msra.mxu1 %v1369_v23  ;;  %1331 = vadd.xlane.f32.xlu1 %v1330_v25  ;;  %v1336_v30 = vsel %vm501_vm5, %v4414_v26, 0.0 }
 0xccc   :  { %4053 = vmatprep.subr.bf16.mxu1 %v4556_v2 }
 0xccd   :  { %v4416_v28 = vpop.eup %4415  ;;  %4421 = vpow2.f32 %v1322_v24 }
 0xcce   :  { %v1333_v29 = vsel %vm501_vm5, %v4416_v28, 0.0 }
 0xccf   :  { %1334 = vadd.xlane.f32.xlu0 %v1333_v29  ;;  %1337 = vadd.xlane.f32.xlu1 %v1336_v30 }
 0xcd1   :  { %v4418_v31 = vpop.eup %4417 }
 0xcd2   :  { %v1339_v32 = vsel %vm501_vm5, %v4418_v31, 0.0 }
 0xcd3   :  { %1340 = vadd.xlane.f32.xlu0 %v1339_v32 }
 0xcd5   :  { %v4420_v33 = vpop.eup %4419 }
 0xcd6   :  { %v1342_v34 = vsel %vm501_vm5, %v4420_v33, 0.0 }
 0xcd7   :  { %v4422_v35 = vpop.eup %4421  ;;  %1343 = vadd.xlane.f32.xlu1 %v1342_v34 }
 0xcd8   :  { %v1345_v36 = vsel %vm501_vm5, %v4422_v35, 0.0 }
 0xcd9   :  { %1346 = vadd.xlane.f32.xlu0 %v1345_v36 }
 0xce8   :  { %1462 = vrot.lane.b32.xlu1 %v4963_v57, %s5617_s29  ;;  %v1329_v37 = vpop.xlane.xlu0 %1328 }
 0xce9   :  { %4423 = vrcp.f32 %v1329_v37 }
 0xcec   :  { %1509 = vrot.lane.b32.xlu1 %v4982_v5, %s5617_s29 }
 0xcef   :  { %1415 = vrot.lane.b32.xlu0 %v4955_v50, %s5617_s29 }
 0xcf3   :  { %v4424_v42 = vpop.eup %4423 }
 0xcf4   :  { %v1357_v43 = vmul.f32 %v4424_v42, %v4408_v58 }
 0xcfb   :  { %v1326_v38 = vpop.xlane.xlu1 %1325 }
 0xcfc   :  { %4425 = vrcp.f32 %v1326_v38 }
 0xd06   :  { %v4426_v39 = vpop.eup %4425 }
 0xd07   :  { %v1356_v44 = vmul.f32 %v4426_v39, %v4410_v4 }
 0xd09   :  { %v1364_v45 = vpack.c.bf16 %v1357_v43, %v1356_v44 }
 0xd0b   :  { %4044 = vmatmul.mubr.msk.bf16.vlgmr.msra.gmra.mrb[32].mxu1 %vm501_vm5, %v1364_v45 }
 0xd0c   :  { %4055 = vmatprep.mubr.msk.bf16.mxu1 %vm4557_vm0, %v4556_v2 }
 0xd58   :  { %v1332_v57 = vpop.xlane.xlu1 %1331 }
 0xd59   :  { %4427 = vrcp.f32 %v1332_v57 }
 0xd5c   :  { %v1335_v5 = vpop.xlane.xlu0 %1334  ;;  %v1338_v47 = vpop.xlane.xlu1 %1337 }
 0xd5d   :  { %4429 = vrcp.f32 %v1335_v5 }
 0xd5e   :  { %4431 = vrcp.f32 %v1338_v47 }
 0xd60   :  { %v1341_v50 = vpop.xlane.xlu0 %1340 }
 0xd61   :  { %4433 = vrcp.f32 %v1341_v50 }
 0xd63   :  { %v4428_v49 = vpop.eup %4427 }
 0xd64   :  { %v1344_v48 = vpop.xlane.xlu1 %1343  ;;  %v1358_v1 = vmul.f32 %v4428_v49, %v4412_v22 }
 0xd65   :  { %4435 = vrcp.f32 %v1344_v48  ;;  %v3706_v48 = vld [vmem:[%s5544_s17] ss:$0 sm:$0xff]  ;;  %s5623_s17 = sld [smem:[#allocation17_spill]] }
 0xd66   :  { %v1347_v51 = vpop.xlane.xlu0 %1346 }
 0xd67   :  { %v4430_v52 = vpop.eup %4429  ;;  %4437 = vrcp.f32 %v1347_v51 }
 0xd68   :  { %v1359_v53 = vmul.f32 %v4430_v52, %v4416_v28  ;;  %v1463_v0 = vpop.permute.xlu1 %1462  ;;  %v4432_v54 = vpop.eup %4431 }
 0xd69   :  { %4054 = vmatpush3.bf16.msra.mxu1 %v1463_v0  ;;  %v1360_v58 = vmul.f32 %v4432_v54, %v4414_v26 }
 0xd6a   :  { %v1416_v55 = vpop.permute.xlu0 %1415  ;;  %4065 = vmatprep.subr.bf16.mxu1 %v4556_v2  ;;  %v1365_v61 = vpack.c.bf16 %v1359_v53, %v1358_v1 }
 0xd6b   :  { %v4434_v56 = vpop.eup %4433  ;;  %4048 = vmatpush3.bf16.msra.mxu0 %v1416_v55 }
 0xd6c   :  { %v1361_v60 = vmul.f32 %v4434_v56, %v4418_v31  ;;  %4059 = vmatprep.subr.bf16.mxu0 %v4556_v2  ;;  %v1510_v4 = vpop.permute.xlu1 %1509 }
 0xd6e   :  { %4050 = vmatmul.mubr.msk.bf16.vlgmr.msra.gmra.mrb[36].mxu0 %vm501_vm5, %v1365_v61  ;;  %v1366_v6 = vpack.c.bf16 %v1361_v60, %v1360_v58 }
 0xd6f   :  { %v4436_v7 = vpop.eup %4435  ;;  %4060 = vmatpush3.bf16.msra.mxu0 %v1510_v4  ;;  %4061 = vmatprep.mubr.msk.bf16.mxu0 %vm4557_vm0, %v4556_v2 }
 0xd70   :  { %4056 = vmatmul.mubr.msk.bf16.vlgmr.msra.gmra.mrb[36].mxu1 %vm501_vm5, %v1366_v6  ;;  %4073 = vmatprep.subr.bf16.mxu0 %v4556_v2  ;;  %v1362_v9 = vmul.f32 %v4436_v7, %v4420_v33 }
 0xd71   :  { %v4438_v8 = vpop.eup %4437  ;;  %4069 = vmatprep.mubr.msk.bf16.mxu1 %vm4557_vm0, %v4556_v2  ;;  %4066 = vmatpush3.bf16.msra.mxu1 %v4341_v62 }
 0xd72   :  { %v1363_v15 = vmul.f32 %v4438_v8, %v4422_v35  ;;  %4067 = vmatprep.subr.bf16.mxu1 %v4556_v2 }
 0xd74   :  { %v1367_v46 = vpack.c.bf16 %v1363_v15, %v1362_v9 }
 0xd75   :  { %4068 = vmatpush3.bf16.msra.mxu1 %v4342_v14 }
 0xd76   :  { %4062 = vmatmul.mubr.msk.bf16.vlgmr.msra.gmra.mrb[40].mxu0 %vm501_vm5, %v1367_v46  ;;  %4081 = vmatprep.subr.bf16.mxu1 %v4556_v2  ;;  %v4343_v46 = vld [vmem:[%s5545_s18] sm:$0xff]  }
 0xd77   :  { %4077 = vmatprep.mubr.msk.bf16.mxu0 %vm4557_vm0, %v4556_v2  ;;  %4074 = vmatpush3.bf16.msra.mxu0 %v4343_v46 }
 0xd78   :  { %4075 = vmatprep.subr.bf16.mxu0 %v4556_v2 }
 0xdde   :  { %v1408_v63 = vpop.f32.mrb[32].mxu1 }
 0xddf   :  { %v4045_v10 = vpop.f32.mrb[33].mxu1 }
 0xde0   :  { %v1411_v18 = vpop.f32.mrb[34].mxu1  ;;  %v4345_v10 = vld [vmem:[%s5547_s20] sm:$0xff]  }
 0xde1   :  { %v4046_v11 = vpop.f32.mrb[35].mxu1 }
 0xe41   :  { %v1455_v12 = vpop.f32.mrb[36].mxu0 }
 0xe42   :  { %v4051_v13 = vpop.f32.mrb[37].mxu0 }
 0xe43   :  { %v1458_v16 = vpop.f32.mrb[38].mxu0  ;;  %v1502_v19 = vpop.f32.mrb[36].mxu1 }
 0xe44   :  { %v4286_v20 = vpack.i.bf16 %v1458_v16, %v1455_v12  ;;  %v4052_v21 = vpop.f32.mrb[39].mxu0  ;;  %v4057_v22 = vpop.f32.mrb[37].mxu1 }
 0xe45   :  { %v1505_v23 = vpop.f32.mrb[38].mxu1 }
 0xe46   :  { %v4291_v24 = vpack.i.bf16 %v1505_v23, %v1502_v19  ;;  %v4058_v25 = vpop.f32.mrb[39].mxu1  ;;  %4287 = vrot.lane.b32.xlu0 %v4286_v20, %s5618_s3  ;;  %v5090_v19 = vsub.s32 2, %v4751_v40  ;;  %v4523_v20 = vld [vmem:[%s5607_s4] sm:$0x7] }
 0xe48   :  { %4292 = vrot.lane.b32.xlu1 %v4291_v24, %s5619_s30  ;;  %v1685_v21 = vrot.slane %v4523_v20, %v5090_v19 }
 0xe49   :  { %v1549_v26 = vpop.f32.mrb[40].mxu0 }
 0xe4a   :  { %v4063_v28 = vpop.f32.mrb[41].mxu0 }
 0xe4b   :  { %v1552_v29 = vpop.f32.mrb[42].mxu0  ;;  %v4524_v28 = vld [vmem:[%s5608_s9] sm:$0x7] }
 0xe4c   :  { %v4296_v30 = vpack.i.bf16 %v1552_v29, %v1549_v26  ;;  %v4064_v31 = vpop.f32.mrb[43].mxu0  ;;  %v1691_v29 = vrot.slane %v4524_v28, %v5090_v19 }
 0xe4e   :  { %4297 = vrot.lane.b32.xlu0 %v4296_v30, %s5620_s6 }
 0xeb8   :  { %v4288_v32 = vpop.permute.xlu0 %4287 }
 0xeb9   :  { %v4290_v33 = vunpack.i.h.bf16 %v4288_v32  ;;  %v4289_v34 = vunpack.i.l.bf16 %v4288_v32 }
 0xeba   :  { %v4293_v35 = vpop.permute.xlu1 %4292 }
 0xebb   :  { %v4295_v36 = vunpack.i.h.bf16 %v4293_v35  ;;  %v4294_v37 = vunpack.i.l.bf16 %v4293_v35  ;;  %v1581_v38 = vsel %vm290_vm4, %v1411_v18, %v4290_v33  ;;  %v1580_v42 = vsel %vm290_vm4, %v1408_v63, %v4289_v34  ;;  %v4344_v63 = vld [vmem:[%s5545_s18 + $0x8] sm:$0xff]   ;;  %v4347_v33 = vld [vmem:[%s5547_s20 + $0x10] sm:$0xff]   ;;  %v4348_v34 = vld [vmem:[%s5547_s20 + $0x18] sm:$0xff]  }
 0xebc   :  { %4076 = vmatpush3.bf16.msra.mxu0 %v4344_v63  ;;  %v4346_v18 = vld [vmem:[%s5547_s20 + $0x8] sm:$0xff]   ;;  %v3710_v35 = vld [vmem:[%s5546_s19] ss:$0 sm:$0xff] }
 0xebd   :  { %v1582_v45 = vsel %vm501_vm5, %v1580_v42, %v4294_v37  ;;  %v1583_v57 = vsel %vm501_vm5, %v1581_v38, %v4295_v36  ;;  %4093 = vmatprep.subr.bf16.mxu0 %v4556_v2 }
 0xec0   :  { %v4298_v39 = vpop.permute.xlu0 %4297 }
 0xec1   :  { %v4300_v43 = vunpack.i.h.bf16 %v4298_v39  ;;  %v4299_v44 = vunpack.i.l.bf16 %v4298_v39 }
 0xec3   :  { %v1585_v5 = vsel %vm810_vm6, %v1583_v57, %v4300_v43  ;;  %v1584_v47 = vsel %vm810_vm6, %v1582_v45, %v4299_v44 }
 0xec4   :  { %v1586_v50 = vpack.c.bf16 %v1585_v5, %v1584_v47  ;;  %v3714_v5 = vld [vmem:[%s5548_s21] ss:$0 sm:$0xff] }
 0xec6   :  { %4070 = vmatmul.mubr.msk.bf16.vlgmr.msra.gmra.mrb[40].mxu1 %vm119_vm3, %v1586_v50 }
 0xec7   :  { %4089 = vmatprep.mubr.msk.bf16.mxu1 %vm4557_vm0, %v4556_v2  ;;  %4082 = vmatpush3.bf16.msra.mxu1 %v4345_v10 }
 0xec8   :  { %4083 = vmatprep.subr.bf16.mxu1 %v4556_v2 }
 0xecb   :  { %4084 = vmatpush3.bf16.msra.mxu1 %v4346_v18 }
 0xecc   :  { %4085 = vmatprep.subr.bf16.mxu1 %v4556_v2 }
 0xecf   :  { %4086 = vmatpush3.bf16.msra.mxu1 %v4347_v33 }
 0xed0   :  { %4087 = vmatprep.subr.bf16.mxu1 %v4556_v2 }
 0xed3   :  { %4088 = vmatpush3.bf16.msra.mxu1 %v4348_v34 }
 0xed4   :  { %4107 = vmatprep.subr.bf16.mxu1 %v4556_v2 }
 0xf99   :  { %v1647_v49 = vpop.f32.mrb[40].mxu1 }
 0xf9a   :  { %v1648_v51 = vadd.f32 %v3706_v48, %v1647_v49  ;;  %v4071_v52 = vpop.f32.mrb[41].mxu1 }
 0xf9b   :  { %v1650_v53 = vpop.f32.mrb[42].mxu1 }
 0xf9c   :  { %v5060_v0 = vadd.f32 %v1648_v51, %v4892_v59  ;;  %v1651_v54 = vadd.f32 %v3706_v48, %v1650_v53  ;;  %v4072_v1 = vpop.f32.mrb[43].mxu1 }
 0xf9e   :  { %v5063_v55 = vadd.f32 %v1651_v54, %v4895_v3  ;;  %v1656_v56 = vsel %vm119_vm3, %v5060_v0, 0.0 }
 0xf9f   :  { %1657 = vadd.xlane.f32.xlu1 %v1656_v56 }
 0xfa0   :  { %v1659_v58 = vsel %vm119_vm3, %v5063_v55, 0.0 }
 0xfa1   :  { %1660 = vadd.xlane.f32.xlu0 %v1659_v58 }
0x102c   :  { %v1658_v60 = vpop.xlane.xlu1 %1657 }
0x102d   :  { %v1662_v61 = vmul.f32 0.03125, %v1658_v60 }
0x102e   :  { %v1661_v4 = vpop.xlane.xlu0 %1660 }
0x102f   :  { %v1664_v6 = vsub.f32 %v5060_v0, %v1662_v61  ;;  %v1663_v59 = vmul.f32 0.03125, %v1661_v4 }
0x1031   :  { %v1665_v7 = vsub.f32 %v5063_v55, %v1663_v59  ;;  %v1666_v8 = vmul.f32 %v1664_v6, %v1664_v6 }
0x1033   :  { %v1668_v3 = vsel %vm119_vm3, %v1666_v8, 0.0  ;;  %v1667_v9 = vmul.f32 %v1665_v7, %v1665_v7 }
0x1034   :  { %1669 = vadd.xlane.f32.xlu0 %v1668_v3  ;;  %v4349_v3 = vld [vmem:[%s5606_s27 + $0x10] sm:$0xff]  }
0x1035   :  { %v1671_v15 = vsel %vm119_vm3, %v1667_v9, 0.0  ;;  %v4350_v9 = vld [vmem:[%s5606_s27 + $0x18] sm:$0xff]   ;;  %s5622_s27 = sld [smem:[#allocation16_spill]] }
0x1036   :  { %1672 = vadd.xlane.f32.xlu1 %v1671_v15 }
0x10c1   :  { %v1670_v11 = vpop.xlane.xlu0 %1669 }
0x10c2   :  { %v1674_v62 = vmul.f32 0.03125, %v1670_v11 }
0x10c3   :  { %v1673_v12 = vpop.xlane.xlu1 %1672 }
0x10c4   :  { %v1676_v13 = vadd.f32 1e-05, %v1674_v62  ;;  %v1675_v14 = vmul.f32 0.03125, %v1673_v12  ;;  %v5145_v62 = vld [vmem:[%s5607_s4 + $0x4] sm:$0x7] }
0x10c5   :  { %v1884_v12 = vrot.slane %v5145_v62, %v4754_v41 }
0x10c6   :  { %4439 = vrsqrt.f32 %v1676_v13  ;;  %v1677_v16 = vadd.f32 1e-05, %v1675_v14  ;;  %v5152_v14 = vld [vmem:[%s5608_s9 + $0x4] sm:$0x7] }
0x10c8   :  { %4441 = vrsqrt.f32 %v1677_v16 }
0x10d0   :  { %v4440_v22 = vpop.eup %4439 }
0x10d1   :  { %v1680_v23 = vmul.f32 %v4440_v22, %v1664_v6 }
0x10d2   :  { %v4442_v24 = vpop.eup %4441 }
0x10d3   :  { %v1686_v25 = vmul.f32 %v1685_v21, %v1680_v23  ;;  %v1681_v26 = vmul.f32 %v4442_v24, %v1665_v7  ;;  %v1890_v23 = vrot.slane %v5152_v14, %v4754_v41 }
0x10d5   :  { %v1687_v30 = vmul.f32 %v1685_v21, %v1681_v26  ;;  %v1692_v40 = vadd.f32 %v1691_v29, %v1686_v25 }
0x10d7   :  { %v1693_v31 = vadd.f32 %v1691_v29, %v1687_v30  ;;  %v3727_v29 = vld [vmem:[%s5609_s5 + $0x1] ss:$0 sm:$0xff] }
0x10d9   :  { %v1694_v32 = vpack.c.bf16 %v1693_v31, %v1692_v40 }
0x10db   :  { %4078 = vmatmul.mubr.msk.bf16.vlgmr.msra.gmra.mrb[44].mxu0 %vm119_vm3, %v1694_v32 }
0x10dc   :  { %4097 = vmatprep.mubr.msk.bf16.mxu0 %vm4557_vm0, %v4556_v2  ;;  %4094 = vmatpush3.bf16.msra.mxu0 %v4349_v3 }
0x10dd   :  { %4095 = vmatprep.subr.bf16.mxu0 %v4556_v2 }
0x10e0   :  { %4096 = vmatpush3.bf16.msra.mxu0 %v4350_v9 }
0x10e1   :  { %4101 = vmatprep.subr.bf16.mxu0 %v4556_v2 }
0x11ae   :  { %v1755_v36 = vpop.f32.mrb[44].mxu0 }
0x11af   :  { %v1756_v37 = vadd.f32 %v3710_v35, %v1755_v36  ;;  %v4079_v38 = vpop.f32.mrb[45].mxu0 }
0x11b0   :  { %v1758_v42 = vpop.f32.mrb[46].mxu0 }
0x11b1   :  { %v1759_v39 = vadd.f32 %v3710_v35, %v1758_v42  ;;  %v4080_v43 = vpop.f32.mrb[47].mxu0  ;;  %v1762_v44 = vmax.f32 %v1756_v37, 0.0 }
0x11b3   :  { %v1763_v45 = vmax.f32 %v1759_v39, 0.0 }
0x11b5   :  { %v1764_v57 = vpack.c.bf16 %v1763_v45, %v1762_v44 }
0x11b7   :  { %4090 = vmatmul.mubr.msk.bf16.vlgmr.msra.gmra.mrb[44].mxu1 %vm1804_vm7, %v1764_v57 }
0x11b8   :  { %4109 = vmatprep.mubr.msk.bf16.mxu1 %vm4557_vm0, %v4556_v2 }
0x128a   :  { %v1842_v47 = vpop.f32.mrb[44].mxu1 }
0x128b   :  { %v1843_v50 = vadd.f32 %v3714_v5, %v1842_v47  ;;  %v4091_v48 = vpop.f32.mrb[45].mxu1 }
0x128c   :  { %v1845_v49 = vpop.f32.mrb[46].mxu1 }
0x128d   :  { %v5121_v51 = vadd.f32 %v1843_v50, %v5060_v0  ;;  %v1846_v52 = vadd.f32 %v3714_v5, %v1845_v49  ;;  %v4092_v53 = vpop.f32.mrb[47].mxu1 }
0x128f   :  { %v5124_v54 = vadd.f32 %v1846_v52, %v5063_v55  ;;  %v1855_v1 = vsel %vm119_vm3, %v5121_v51, 0.0 }
0x1290   :  { %1856 = vadd.xlane.f32.xlu0 %v1855_v1  ;;  %v4525_v1 = vld [vmem:[%s5610_s8] sm:$0xff] }
0x1291   :  { %v1858_v56 = vsel %vm119_vm3, %v5124_v54, 0.0 }
0x1292   :  { %1859 = vadd.xlane.f32.xlu1 %v1858_v56 }
0x131d   :  { %v1857_v58 = vpop.xlane.xlu0 %1856 }
0x131e   :  { %v1861_v60 = vmul.f32 0.03125, %v1857_v58 }
0x131f   :  { %v1860_v61 = vpop.xlane.xlu1 %1859 }
0x1320   :  { %v1863_v4 = vsub.f32 %v5121_v51, %v1861_v60  ;;  %v1862_v0 = vmul.f32 0.03125, %v1860_v61  ;;  %v4526_v60 = vld [vmem:[%s5610_s8 + $0x8] sm:$0xff]  ;;  %s5621_s8 = smov 64  }
0x1322   :  { %v1864_v6 = vsub.f32 %v5124_v54, %v1862_v0  ;;  %v1865_v59 = vmul.f32 %v1863_v4, %v1863_v4 }
0x1324   :  { %v1867_v55 = vsel %vm119_vm3, %v1865_v59, 0.0  ;;  %v1866_v7 = vmul.f32 %v1864_v6, %v1864_v6 }
0x1325   :  { %1868 = vadd.xlane.f32.xlu0 %v1867_v55 }
0x1326   :  { %v1870_v8 = vsel %vm119_vm3, %v1866_v7, 0.0 }
0x1327   :  { %1871 = vadd.xlane.f32.xlu1 %v1870_v8 }
0x13b2   :  { %v1869_v15 = vpop.xlane.xlu0 %1868 }
0x13b3   :  { %v1873_v46 = vmul.f32 0.03125, %v1869_v15 }
0x13b4   :  { %v1872_v63 = vpop.xlane.xlu1 %1871 }
0x13b5   :  { %v1875_v10 = vadd.f32 1e-05, %v1873_v46  ;;  %v1874_v18 = vmul.f32 0.03125, %v1872_v63 }
0x13b7   :  { %4443 = vrsqrt.f32 %v1875_v10  ;;  %v1876_v11 = vadd.f32 1e-05, %v1874_v18 }
0x13b9   :  { %4445 = vrsqrt.f32 %v1876_v11 }
0x13c1   :  { %v4444_v13 = vpop.eup %4443 }
0x13c2   :  { %v1879_v16 = vmul.f32 %v4444_v13, %v1863_v4 }
0x13c3   :  { %v4446_v20 = vpop.eup %4445 }
0x13c4   :  { %v1885_v21 = vmul.f32 %v1884_v12, %v1879_v16  ;;  %v1880_v22 = vmul.f32 %v4446_v20, %v1864_v6 }
0x13c6   :  { %v1886_v24 = vmul.f32 %v1884_v12, %v1880_v22  ;;  %v1891_v25 = vadd.f32 %v1890_v23, %v1885_v21 }
0x13c8   :  { %v1892_v26 = vadd.f32 %v1890_v23, %v1886_v24 }
0x13ca   :  { %v1893_v28 = vpack.c.bf16 %v1892_v26, %v1891_v25 }
0x13cc   :  { %4098 = vmatmul.mubr.msk.bf16.vlgmr.msra.gmra.mrb[48].mxu0 %vm119_vm3, %v1893_v28 }
0x13cd   :  { %4103 = vmatprep.mubr.msk.bf16.mxu0 %vm4557_vm0, %v4556_v2 }
0x149f   :  { %v1956_v30 = vpop.f32.mrb[48].mxu0 }
0x14a0   :  { %v4099_v40 = vpop.f32.mrb[49].mxu0  ;;  %v1957_v32 = vadd.f32 %v3727_v29, %v1956_v30 }
0x14a1   :  { %v1959_v31 = vpop.f32.mrb[50].mxu0 }
0x14a2   :  { %v1960_v33 = vadd.f32 %v3727_v29, %v1959_v31  ;;  %v4100_v34 = vpop.f32.mrb[51].mxu0 }
0x14a4   :  { %v5162_v41 = vpack.c.bf16 %v1960_v33, %v1957_v32 }
0x14a6   :  { %1967 = vrot.lane.b32.xlu1 %v5162_v41, %s5613_s1  ;;  %1965 = vrot.lane.b32.xlu0 %v5162_v41, %s5614_s2 }
0x14aa   :  { %1969 = vrot.lane.b32.xlu1 %v5162_v41, %s5615_s0  ;;  %1971 = vrot.lane.b32.xlu0 %v5162_v41, %s5617_s29 }
0x1518   :  { %v5172_v35 = vpop.permute.xlu1 %1967  ;;  %v5174_v36 = vpop.permute.xlu0 %1965 }
0x1519   :  { %2069 = vrot.lane.b32.xlu0 %v5172_v35, %s5617_s29  ;;  %2020 = vrot.lane.b32.xlu1 %v5174_v36, %s5617_s29 }
0x151c   :  { %v5180_v37 = vpop.permute.xlu1 %1969  ;;  %v1972_v38 = vpop.permute.xlu0 %1971 }
0x151d   :  { %v1977_v42 = vsel %vm290_vm4, %v1972_v38, 0  ;;  %2118 = vrot.lane.b32.xlu1 %v5180_v37, %s5617_s29 }
0x151e   :  { %4102 = vmatpush3.bf16.xpose.msra.mxu0 %v1977_v42 }
0x151f   :  { %4113 = vmatprep.subr.bf16.mxu0 %v4556_v2 }
0x1525   :  { %4104 = vmatmul.mubr.msk.bf16.vlgmr.msra.gmra.mrb[52].mxu0 %vm290_vm4, %v5162_v41 }
0x1526   :  { %4115 = vmatprep.mubr.msk.bf16.mxu0 %vm4557_vm0, %v4556_v2 }
0x158b   :  { %v2021_v39 = vpop.permute.xlu1 %2020  ;;  %v2070_v43 = vpop.permute.xlu0 %2069 }
0x158c   :  { %v2026_v44 = vsel %vm290_vm4, %v2021_v39, 0  ;;  %v2075_v45 = vsel %vm290_vm4, %v2070_v43, 0 }
0x158d   :  { %4108 = vmatpush3.bf16.xpose.msra.mxu1 %v2026_v44  ;;  %4114 = vmatpush3.bf16.xpose.msra.mxu0 %v2075_v45 }
0x158e   :  { %4119 = vmatprep.subr.bf16.mxu1 %v4556_v2  ;;  %4125 = vmatprep.subr.bf16.mxu0 %v4556_v2 }
0x158f   :  { %v2119_v57 = vpop.permute.xlu1 %2118 }
0x1590   :  { %v2124_v5 = vsel %vm290_vm4, %v2119_v57, 0 }
0x1594   :  { %4110 = vmatmul.mubr.msk.bf16.vlgmr.msra.gmra.mrb[48].mxu1 %vm290_vm4, %v5174_v36  ;;  %4116 = vmatmul.mubr.msk.bf16.vlgmr.msra.gmra.mrb[56].mxu0 %vm290_vm4, %v5172_v35 }
0x1595   :  { %4120 = vmatpush3.bf16.xpose.msra.mxu1 %v2124_v5  ;;  %4121 = vmatprep.mubr.msk.bf16.mxu1 %vm4557_vm0, %v4556_v2 }
0x1596   :  { %4127 = vmatprep.mubr.msk.bf16.mxu0 %vm4557_vm0, %v4556_v2  ;;  %4131 = vmatprep.subr.bf16.mxu1 %v4556_v2 }
0x159c   :  { %4122 = vmatmul.mubr.msk.bf16.vlgmr.msra.gmra.mrb[52].mxu1 %vm290_vm4, %v5180_v37 }
0x159d   :  { %4133 = vmatprep.mubr.msk.bf16.mxu1 %vm4557_vm0, %v4556_v2 }
0x15f8   :  { %v2013_v47 = vpop.f32.mrb[52].mxu0 }
0x15f9   :  { %v2167_v50 = vmul.f32 0.35355338, %v2013_v47  ;;  %v4105_v48 = vpop.f32.mrb[53].mxu0 }
0x15fa   :  { %v2016_v49 = vpop.f32.mrb[54].mxu0 }
0x15fb   :  { %v2168_v52 = vmul.f32 0.35355338, %v2016_v49  ;;  %v4106_v53 = vpop.f32.mrb[55].mxu0  ;;  %v2175_v56 = vadd.f32 %v4525_v1, %v2167_v50 }
0x15fd   :  { %v2183_v58 = vsel %vm501_vm5, %v2175_v56, -inf  ;;  %v2176_v61 = vadd.f32 %v4526_v60, %v2168_v52 }
0x15fe   :  { %2184 = vmax.xlane.f32.xlu0 %v2183_v58 }
0x15ff   :  { %v2186_v4 = vsel %vm501_vm5, %v2176_v61, -inf }
0x1600   :  { %2187 = vmax.xlane.f32.xlu1 %v2186_v4 }
0x1667   :  { %v2062_v0 = vpop.f32.mrb[48].mxu1  ;;  %v2111_v6 = vpop.f32.mrb[56].mxu0 }
0x1668   :  { %v2169_v59 = vmul.f32 0.35355338, %v2062_v0  ;;  %v2171_v55 = vmul.f32 0.35355338, %v2111_v6  ;;  %v4111_v7 = vpop.f32.mrb[49].mxu1  ;;  %v4117_v8 = vpop.f32.mrb[57].mxu0 }
0x1669   :  { %v2065_v3 = vpop.f32.mrb[50].mxu1  ;;  %v2114_v9 = vpop.f32.mrb[58].mxu0 }
0x166a   :  { %v2170_v15 = vmul.f32 0.35355338, %v2065_v3  ;;  %v4112_v46 = vpop.f32.mrb[51].mxu1  ;;  %v4118_v63 = vpop.f32.mrb[59].mxu0  ;;  %v2177_v10 = vadd.f32 %v4525_v1, %v2169_v59  ;;  %v2179_v18 = vadd.f32 %v4525_v1, %v2171_v55  ;;  %v2172_v11 = vmul.f32 0.35355338, %v2114_v9 }
0x166c   :  { %v2189_v12 = vsel %vm501_vm5, %v2177_v10, -inf  ;;  %v2195_v13 = vsel %vm501_vm5, %v2179_v18, -inf  ;;  %v2178_v16 = vadd.f32 %v4526_v60, %v2170_v15  ;;  %v2180_v24 = vadd.f32 %v4526_v60, %v2172_v11 }
0x166d   :  { %2190 = vmax.xlane.f32.xlu0 %v2189_v12  ;;  %2196 = vmax.xlane.f32.xlu1 %v2195_v13 }
0x166e   :  { %v2192_v23 = vsel %vm501_vm5, %v2178_v16, -inf  ;;  %v2198_v40 = vsel %vm501_vm5, %v2180_v24, -inf }
0x166f   :  { %v2160_v20 = vpop.f32.mrb[52].mxu1 }
0x1670   :  { %v2173_v21 = vmul.f32 0.35355338, %v2160_v20  ;;  %v4123_v22 = vpop.f32.mrb[53].mxu1 }
0x1671   :  { %v2163_v25 = vpop.f32.mrb[54].mxu1  ;;  %2193 = vmax.xlane.f32.xlu0 %v2192_v23 }
0x1672   :  { %v2174_v26 = vmul.f32 0.35355338, %v2163_v25  ;;  %v4124_v28 = vpop.f32.mrb[55].mxu1  ;;  %v2181_v29 = vadd.f32 %v4525_v1, %v2173_v21 }
0x1674   :  { %v2201_v30 = vsel %vm501_vm5, %v2181_v29, -inf  ;;  %v2182_v31 = vadd.f32 %v4526_v60, %v2174_v26 }
0x1675   :  { %2202 = vmax.xlane.f32.xlu1 %v2201_v30  ;;  %2199 = vmax.xlane.f32.xlu0 %v2198_v40 }
0x1676   :  { %v2204_v32 = vsel %vm501_vm5, %v2182_v31, -inf }
0x1679   :  { %2205 = vmax.xlane.f32.xlu0 %v2204_v32 }
0x1686   :  { %2275 = vrot.lane.b32.xlu1 %v5162_v41, %s5621_s8 }
0x168b   :  { %v2185_v42 = vpop.xlane.xlu0 %2184 }
0x168c   :  { %v2207_v39 = vsub.f32 %v2175_v56, %v2185_v42 }
0x168d   :  { %v2188_v33 = vpop.xlane.xlu1 %2187 }
0x168e   :  { %v2208_v34 = vsub.f32 %v2176_v61, %v2188_v33  ;;  %v2215_v43 = vmul.f32 1.442695, %v2207_v39 }
0x1690   :  { %v2217_v38 = vmul.f32 1.442695, %v2208_v34 }
0x1692   :  { %4447 = vpow2.f32 %v2217_v38 }
0x1693   :  { %4449 = vpow2.f32 %v2215_v43 }
0x169c   :  { %v4448_v44 = vpop.eup %4447 }
0x169d   :  { %v2234_v45 = vsel %vm501_vm5, %v4448_v44, 0.0  ;;  %v4450_v57 = vpop.eup %4449 }
0x169e   :  { %2235 = vadd.xlane.f32.xlu0 %v2234_v45  ;;  %v2231_v5 = vsel %vm501_vm5, %v4450_v57, 0.0 }
0x16aa   :  { %2232 = vadd.xlane.f32.xlu1 %v2231_v5 }
0x16fa   :  { %v2191_v47 = vpop.xlane.xlu0 %2190  ;;  %v2197_v50 = vpop.xlane.xlu1 %2196 }
0x16fb   :  { %v2209_v48 = vsub.f32 %v2177_v10, %v2191_v47  ;;  %v2211_v41 = vsub.f32 %v2179_v18, %v2197_v50 }
0x16fd   :  { %v2219_v49 = vmul.f32 1.442695, %v2209_v48  ;;  %v2223_v52 = vmul.f32 1.442695, %v2211_v41 }
0x16fe   :  { %v2194_v53 = vpop.xlane.xlu0 %2193 }
0x16ff   :  { %4451 = vpow2.f32 %v2219_v49  ;;  %v2210_v1 = vsub.f32 %v2178_v16, %v2194_v53 }
0x1700   :  { %4453 = vpow2.f32 %v2223_v52 }
0x1701   :  { %v2221_v56 = vmul.f32 1.442695, %v2210_v1 }
0x1702   :  { %v2203_v58 = vpop.xlane.xlu1 %2202  ;;  %v2200_v60 = vpop.xlane.xlu0 %2199 }
0x1703   :  { %4455 = vpow2.f32 %v2221_v56  ;;  %v2213_v61 = vsub.f32 %v2181_v29, %v2203_v58  ;;  %v2212_v4 = vsub.f32 %v2180_v24, %v2200_v60  ;;  %v4351_v60 = vld [vmem:[%s5611_s28 + $0x10] sm:$0xff]  }
0x1705   :  { %v2227_v0 = vmul.f32 1.442695, %v2213_v61  ;;  %v2225_v6 = vmul.f32 1.442695, %v2212_v4  ;;  %v4352_v4 = vld [vmem:[%s5611_s28 + $0x18] sm:$0xff]  }
0x1706   :  { %v2276_v59 = vpop.permute.xlu1 %2275  ;;  %v2206_v55 = vpop.xlane.xlu0 %2205 }
0x1707   :  { %4457 = vpow2.f32 %v2227_v0  ;;  %v2214_v7 = vsub.f32 %v2182_v31, %v2206_v55  ;;  %4126 = vmatpush3.bf16.msra.mxu0 %v2276_v59 }
0x1708   :  { %4459 = vpow2.f32 %v2225_v6  ;;  %4137 = vmatprep.subr.bf16.mxu0 %v4556_v2 }
0x1709   :  { %v4452_v8 = vpop.eup %4451  ;;  %v2229_v3 = vmul.f32 1.442695, %v2214_v7 }
0x170a   :  { %v2237_v9 = vsel %vm501_vm5, %v4452_v8, 0.0  ;;  %v4454_v15 = vpop.eup %4453 }
0x170b   :  { %4461 = vpow2.f32 %v2229_v3  ;;  %2238 = vadd.xlane.f32.xlu1 %v2237_v9  ;;  %v2243_v63 = vsel %vm501_vm5, %v4454_v15, 0.0 }
0x170d   :  { %v4456_v46 = vpop.eup %4455 }
0x170e   :  { %v2240_v10 = vsel %vm501_vm5, %v4456_v46, 0.0 }
0x170f   :  { %2244 = vadd.xlane.f32.xlu1 %v2243_v63  ;;  %2241 = vadd.xlane.f32.xlu0 %v2240_v10 }
0x1711   :  { %v4458_v18 = vpop.eup %4457 }
0x1712   :  { %v4460_v11 = vpop.eup %4459  ;;  %v2249_v12 = vsel %vm501_vm5, %v4458_v18, 0.0 }
0x1713   :  { %2250 = vadd.xlane.f32.xlu1 %v2249_v12  ;;  %v2246_v13 = vsel %vm501_vm5, %v4460_v11, 0.0 }
0x1714   :  { %2247 = vadd.xlane.f32.xlu0 %v2246_v13 }
0x1715   :  { %v4462_v16 = vpop.eup %4461 }
0x1716   :  { %v2252_v20 = vsel %vm501_vm5, %v4462_v16, 0.0 }
0x1718   :  { %2253 = vadd.xlane.f32.xlu0 %v2252_v20 }
0x1724   :  { %2369 = vrot.lane.b32.xlu1 %v5172_v35, %s5621_s8 }
0x1728   :  { %2416 = vrot.lane.b32.xlu1 %v5180_v37, %s5621_s8 }
0x172b   :  { %v2236_v21 = vpop.xlane.xlu0 %2235 }
0x172c   :  { %4463 = vrcp.f32 %v2236_v21 }
0x172e   :  { %2322 = vrot.lane.b32.xlu0 %v5174_v36, %s5621_s8  ;;  %s4531_s8 = scalar_lea.vmem %s3659_s7, 256 }
0x172f   :  { %p4532_p0 = scmp.ne.s32.totalorder %s3659_s7, %s4531_s8  ;;  %p4537_p2 = scmp.lt.s32.totalorder %s4531_s8, %s4531_s8 }
0x1731   :  { %p4538_p3 = por %p4537_p2, %p4536_p1 }
0x1733   :  { %p4539_p4 = pnand %p4538_p3, %p4532_p0 }
0x1736   :  { %v4464_v23 = vpop.eup %4463 }
0x1737   :  { %v2233_v22 = vpop.xlane.xlu1 %2232  ;;  %v2264_v25 = vmul.f32 %v4464_v23, %v4448_v44 }
0x1738   :  { %4465 = vrcp.f32 %v2233_v22 }
0x1742   :  { %v4466_v24 = vpop.eup %4465 }
0x1743   :  { %v2263_v26 = vmul.f32 %v4466_v24, %v4450_v57 }
0x1745   :  { %v2271_v28 = vpack.c.bf16 %v2264_v25, %v2263_v26 }
0x1747   :  { %4128 = vmatmul.mubr.msk.bf16.vlgmr.msra.gmra.mrb[60].mxu0 %vm501_vm5, %v2271_v28 }
0x1748   :  { %4139 = vmatprep.mubr.msk.bf16.mxu0 %vm4557_vm0, %v4556_v2 }
0x1798   :  { %v2239_v35 = vpop.xlane.xlu1 %2238 }
0x1799   :  { %4467 = vrcp.f32 %v2239_v35 }
0x179c   :  { %v2245_v37 = vpop.xlane.xlu1 %2244  ;;  %v2242_v29 = vpop.xlane.xlu0 %2241 }
0x179d   :  { %4469 = vrcp.f32 %v2242_v29 }
0x179e   :  { %4471 = vrcp.f32 %v2245_v37 }
0x17a0   :  { %v2251_v36 = vpop.xlane.xlu1 %2250 }
0x17a1   :  { %v2248_v30 = vpop.xlane.xlu0 %2247 }
0x17a2   :  { %4473 = vrcp.f32 %v2248_v30 }
0x17a3   :  { %4475 = vrcp.f32 %v2251_v36  ;;  %v4468_v32 = vpop.eup %4467 }
0x17a4   :  { %v2370_v40 = vpop.permute.xlu1 %2369  ;;  %v2265_v34 = vmul.f32 %v4468_v32, %v4452_v8 }
0x17a5   :  { %v2254_v31 = vpop.xlane.xlu0 %2253  ;;  %4138 = vmatpush3.bf16.msra.mxu0 %v2370_v40  ;;  %v3744_v40 = vld [vmem:[%s5538_s11 + $0x1] ss:$0 sm:$0xff]  ;;  %s5626_s11 = sld [smem:[#allocation20_spill]] }
0x17a6   :  { %4477 = vrcp.f32 %v2254_v31  ;;  %4149 = vmatprep.subr.bf16.mxu0 %v4556_v2 }
0x17a7   :  { %v4470_v33 = vpop.eup %4469 }
0x17a8   :  { %v2266_v38 = vmul.f32 %v4470_v33, %v4456_v46  ;;  %v4472_v39 = vpop.eup %4471  ;;  %v2417_v5 = vpop.permute.xlu1 %2416 }
0x17a9   :  { %v2323_v42 = vpop.permute.xlu0 %2322  ;;  %v2267_v45 = vmul.f32 %v4472_v39, %v4454_v15 }
0x17aa   :  { %4132 = vmatpush3.bf16.msra.mxu1 %v2323_v42  ;;  %v2272_v43 = vpack.c.bf16 %v2266_v38, %v2265_v34 }
0x17ab   :  { %4143 = vmatprep.subr.bf16.mxu1 %v4556_v2 }
0x17ac   :  { %v4474_v44 = vpop.eup %4473 }
0x17ad   :  { %v2268_v57 = vmul.f32 %v4474_v44, %v4460_v11  ;;  %4134 = vmatmul.mubr.msk.bf16.vlgmr.msra.gmra.mrb[56].mxu1 %vm501_vm5, %v2272_v43  ;;  %v4476_v47 = vpop.eup %4475 }
0x17ae   :  { %4144 = vmatpush3.bf16.msra.mxu1 %v2417_v5  ;;  %4145 = vmatprep.mubr.msk.bf16.mxu1 %vm4557_vm0, %v4556_v2  ;;  %v2269_v41 = vmul.f32 %v4476_v47, %v4458_v18 }
0x17af   :  { %v2273_v50 = vpack.c.bf16 %v2268_v57, %v2267_v45  ;;  %4157 = vmatprep.subr.bf16.mxu1 %v4556_v2 }
0x17b0   :  { %v4478_v48 = vpop.eup %4477 }
0x17b1   :  { %v2270_v49 = vmul.f32 %v4478_v48, %v4462_v16  ;;  %4140 = vmatmul.mubr.msk.bf16.vlgmr.msra.gmra.mrb[64].mxu0 %vm501_vm5, %v2273_v50 }
0x17b2   :  { %4153 = vmatprep.mubr.msk.bf16.mxu0 %vm4557_vm0, %v4556_v2  ;;  %4150 = vmatpush3.bf16.msra.mxu0 %v4351_v60 }
0x17b3   :  { %v2274_v52 = vpack.c.bf16 %v2270_v49, %v2269_v41  ;;  %4151 = vmatprep.subr.bf16.mxu0 %v4556_v2 }
0x17b5   :  { %4146 = vmatmul.mubr.msk.bf16.vlgmr.msra.gmra.mrb[60].mxu1 %vm501_vm5, %v2274_v52 }
0x17b6   :  { %4161 = vmatprep.mubr.msk.bf16.mxu1 %vm4557_vm0, %v4556_v2  ;;  %4152 = vmatpush3.bf16.msra.mxu0 %v4352_v4 }
0x17b7   :  { %4165 = vmatprep.subr.bf16.mxu0 %v4556_v2 }
0x181a   :  { %v2315_v53 = vpop.f32.mrb[60].mxu0 }
0x181b   :  { %v4129_v1 = vpop.f32.mrb[61].mxu0 }
0x181c   :  { %v2318_v56 = vpop.f32.mrb[62].mxu0  ;;  %v4354_v1 = vld [vmem:[%s5541_s14 + $0x18] sm:$0xff]  }
0x181d   :  { %v4130_v58 = vpop.f32.mrb[63].mxu0 }
0x181e   :  { %v4356_v58 = vld [vmem:[%s5539_s12 + $0x18] sm:$0xff]  }
0x1880   :  { %v2362_v61 = vpop.f32.mrb[56].mxu1 }
0x1881   :  { %v4135_v0 = vpop.f32.mrb[57].mxu1 }
0x1882   :  { %v2365_v6 = vpop.f32.mrb[58].mxu1 }
0x1883   :  { %v4301_v59 = vpack.i.bf16 %v2365_v6, %v2362_v61  ;;  %v4136_v55 = vpop.f32.mrb[59].mxu1 }
0x1884   :  { %v2409_v7 = vpop.f32.mrb[64].mxu0 }
0x1885   :  { %4302 = vrot.lane.b32.xlu0 %v4301_v59, %s5618_s3  ;;  %v4141_v8 = vpop.f32.mrb[65].mxu0  ;;  %v2594_v59 = vrot.slane %v5145_v62, %v4934_v27  ;;  %v3762_v62 = vld [vmem:[%s5542_s15 + $0x1] ss:$0 sm:$0xff] }
0x1886   :  { %v2412_v3 = vpop.f32.mrb[66].mxu0 }
0x1887   :  { %v4306_v9 = vpack.i.bf16 %v2412_v3, %v2409_v7  ;;  %v4142_v15 = vpop.f32.mrb[67].mxu0 }
0x1888   :  { %v2456_v46 = vpop.f32.mrb[60].mxu1  ;;  %v2600_v15 = vrot.slane %v5152_v14, %v4934_v27 }
0x1889   :  { %v4147_v63 = vpop.f32.mrb[61].mxu1  ;;  %4307 = vrot.lane.b32.xlu1 %v4306_v9, %s5619_s30 }
0x188a   :  { %v2459_v10 = vpop.f32.mrb[62].mxu1 }
0x188b   :  { %v4311_v18 = vpack.i.bf16 %v2459_v10, %v2456_v46  ;;  %v4148_v11 = vpop.f32.mrb[63].mxu1 }
0x188d   :  { %4312 = vrot.lane.b32.xlu0 %v4311_v18, %s5620_s6 }
0x18f7   :  { %v4303_v12 = vpop.permute.xlu0 %4302 }
0x18f8   :  { %v4305_v16 = vunpack.i.h.bf16 %v4303_v12  ;;  %v4304_v20 = vunpack.i.l.bf16 %v4303_v12 }
0x18fa   :  { %v2487_v24 = vsel %vm290_vm4, %v2315_v53, %v4304_v20  ;;  %v2488_v25 = vsel %vm290_vm4, %v2318_v56, %v4305_v16  ;;  %v4353_v53 = vld [vmem:[%s5541_s14 + $0x10] sm:$0xff]  }
0x18fb   :  { %v4308_v13 = vpop.permute.xlu1 %4307  ;;  %v4355_v56 = vld [vmem:[%s5539_s12 + $0x10] sm:$0xff]  }
0x18fc   :  { %v4310_v21 = vunpack.i.h.bf16 %v4308_v13  ;;  %v4309_v22 = vunpack.i.l.bf16 %v4308_v13  ;;  %4158 = vmatpush3.bf16.msra.mxu1 %v4355_v56 }
0x18fd   :  { %4159 = vmatprep.subr.bf16.mxu1 %v4556_v2 }
0x18fe   :  { %v2490_v35 = vsel %vm501_vm5, %v2488_v25, %v4310_v21  ;;  %v2489_v37 = vsel %vm501_vm5, %v2487_v24, %v4309_v22  ;;  %v3753_v24 = vld [vmem:[%s5540_s13 + $0x1] ss:$0 sm:$0xff] }
0x18ff   :  { %v4313_v23 = vpop.permute.xlu0 %4312 }
0x1900   :  { %v4315_v26 = vunpack.i.h.bf16 %v4313_v23  ;;  %v4314_v28 = vunpack.i.l.bf16 %v4313_v23  ;;  %4160 = vmatpush3.bf16.msra.mxu1 %v4356_v58 }
0x1901   :  { %4173 = vmatprep.subr.bf16.mxu1 %v4556_v2 }
0x1902   :  { %v2491_v29 = vsel %vm810_vm6, %v2489_v37, %v4314_v28  ;;  %v2492_v36 = vsel %vm810_vm6, %v2490_v35, %v4315_v26 }
0x1903   :  { %v2493_v30 = vpack.c.bf16 %v2492_v36, %v2491_v29 }
0x1905   :  { %4154 = vmatmul.mubr.msk.bf16.vlgmr.msra.gmra.mrb[68].mxu0 %vm119_vm3, %v2493_v30 }
0x1906   :  { %4169 = vmatprep.mubr.msk.bf16.mxu0 %vm4557_vm0, %v4556_v2  ;;  %4166 = vmatpush3.bf16.msra.mxu0 %v4353_v53 }
0x1907   :  { %4167 = vmatprep.subr.bf16.mxu0 %v4556_v2 }
0x190a   :  { %4168 = vmatpush3.bf16.msra.mxu0 %v4354_v1 }
0x190b   :  { %4179 = vmatprep.subr.bf16.mxu0 %v4556_v2 }
0x190d   :  { %4170 = vmatmul.mubr.msk.bf16.vlgmr.msra.gmra.mrb[72].mxu0 %vm119_vm3, %v4918_v17 }
0x190e   :  { %4181 = vmatprep.mubr.msk.bf16.mxu0 %vm4557_vm0, %v4556_v2 }
0x19d8   :  { %v2556_v31 = vpop.f32.mrb[68].mxu0 }
0x19d9   :  { %v2557_v32 = vadd.f32 %v3744_v40, %v2556_v31  ;;  %v4155_v33 = vpop.f32.mrb[69].mxu0 }
0x19da   :  { %v2559_v34 = vpop.f32.mrb[70].mxu0 }
0x19db   :  { %v5278_v38 = vadd.f32 %v2557_v32, %v5121_v51  ;;  %v2560_v42 = vadd.f32 %v3744_v40, %v2559_v34  ;;  %v4156_v39 = vpop.f32.mrb[71].mxu0 }
0x19dd   :  { %v5281_v43 = vadd.f32 %v2560_v42, %v5124_v54  ;;  %v2565_v44 = vsel %vm119_vm3, %v5278_v38, 0.0 }
0x19de   :  { %2566 = vadd.xlane.f32.xlu1 %v2565_v44 }
0x19df   :  { %v2568_v45 = vsel %vm119_vm3, %v5281_v43, 0.0 }
0x19e0   :  { %2569 = vadd.xlane.f32.xlu0 %v2568_v45  ;;  %v2732_v11 = vpop.f32.mrb[72].mxu0 }
0x19e1   :  { %v2733_v12 = vadd.f32 %v3762_v62, %v2732_v11  ;;  %v4171_v13 = vpop.f32.mrb[73].mxu0 }
0x19e2   :  { %v2735_v16 = vpop.f32.mrb[74].mxu0 }
0x19e3   :  { %v2736_v20 = vadd.f32 %v3762_v62, %v2735_v16  ;;  %v4172_v21 = vpop.f32.mrb[75].mxu0 }
0x19e5   :  { %v5321_v27 = vpack.c.bf16 %v2736_v20, %v2733_v12 }
0x19e7   :  { %v2759_v14 = vsel %vm290_vm4, %v5321_v27, 0 }
0x1a6b   :  { %v2567_v57 = vpop.xlane.xlu1 %2566 }
0x1a6c   :  { %v2571_v5 = vmul.f32 0.03125, %v2567_v57 }
0x1a6d   :  { %v2570_v47 = vpop.xlane.xlu0 %2569 }
0x1a6e   :  { %v2573_v50 = vsub.f32 %v5278_v38, %v2571_v5  ;;  %v2572_v51 = vmul.f32 0.03125, %v2570_v47  ;;  %v4527_v5 = vld [vmem:[%s5616_s10] sm:$0xff] }
0x1a70   :  { %v2574_v48 = vsub.f32 %v5281_v43, %v2572_v51  ;;  %v2575_v41 = vmul.f32 %v2573_v50, %v2573_v50 }
0x1a72   :  { %v2577_v54 = vsel %vm119_vm3, %v2575_v41, 0.0  ;;  %v2576_v49 = vmul.f32 %v2574_v48, %v2574_v48 }
0x1a73   :  { %2578 = vadd.xlane.f32.xlu0 %v2577_v54 }
0x1a74   :  { %v2580_v52 = vsel %vm119_vm3, %v2576_v49, 0.0 }
0x1a75   :  { %2581 = vadd.xlane.f32.xlu1 %v2580_v52 }
0x1a86   :  { %2751 = vrot.lane.b32.xlu1 %v5321_v27, %s5613_s1 }
0x1a89   :  { %2749 = vrot.lane.b32.xlu0 %v5321_v27, %s5614_s2 }
0x1a8d   :  { %2753 = vrot.lane.b32.xlu0 %v5321_v27, %s5615_s0 }
0x1b00   :  { %v2579_v60 = vpop.xlane.xlu0 %2578 }
0x1b01   :  { %v2583_v61 = vmul.f32 0.03125, %v2579_v60 }
0x1b02   :  { %v2582_v17 = vpop.xlane.xlu1 %2581 }
0x1b03   :  { %v2585_v4 = vadd.f32 1e-05, %v2583_v61  ;;  %v2584_v0 = vmul.f32 0.03125, %v2582_v17 }
0x1b04   :  { %v5332_v22 = vpop.permute.xlu0 %2749 }
0x1b05   :  { %4479 = vrsqrt.f32 %v2585_v4  ;;  %v2586_v6 = vadd.f32 1e-05, %v2584_v0  ;;  %v2806_v23 = vsel %vm290_vm4, %v5332_v22, 0 }
0x1b06   :  { %4180 = vmatpush3.bf16.xpose.msra.mxu0 %v2806_v23  ;;  %v5340_v36 = vpop.permute.xlu1 %2751 }
0x1b07   :  { %4481 = vrsqrt.f32 %v2586_v6  ;;  %4191 = vmatprep.subr.bf16.mxu0 %v4556_v2  ;;  %v2853_v40 = vsel %vm290_vm4, %v5340_v36, 0 }
0x1b08   :  { %v5351_v31 = vpop.permute.xlu0 %2753 }
0x1b09   :  { %v2900_v33 = vsel %vm290_vm4, %v5351_v31, 0 }
0x1b0f   :  { %v4480_v55 = vpop.eup %4479 }
0x1b10   :  { %v2589_v7 = vmul.f32 %v4480_v55, %v2573_v50 }
0x1b11   :  { %v4482_v8 = vpop.eup %4481 }
0x1b12   :  { %v2595_v3 = vmul.f32 %v2594_v59, %v2589_v7  ;;  %v2590_v9 = vmul.f32 %v4482_v8, %v2574_v48  ;;  %v4528_v48 = vld [vmem:[%s5616_s10 + $0x8] sm:$0xff] }
0x1b14   :  { %v2596_v46 = vmul.f32 %v2594_v59, %v2590_v9  ;;  %v2601_v63 = vadd.f32 %v2600_v15, %v2595_v3 }
0x1b16   :  { %v2602_v10 = vadd.f32 %v2600_v15, %v2596_v46 }
0x1b18   :  { %v2603_v18 = vpack.c.bf16 %v2602_v10, %v2601_v63 }
0x1b1a   :  { %4162 = vmatmul.mubr.msk.bf16.vlgmr.msra.gmra.mrb[64].mxu1 %vm119_vm3, %v2603_v18 }
0x1b1b   :  { %4175 = vmatprep.mubr.msk.bf16.mxu1 %vm4557_vm0, %v4556_v2  ;;  %4174 = vmatpush3.bf16.xpose.msra.mxu1 %v2759_v14 }
0x1b1c   :  { %4185 = vmatprep.subr.bf16.mxu1 %v4556_v2 }
0x1bed   :  { %v2666_v25 = vpop.f32.mrb[64].mxu1 }
0x1bee   :  { %v4163_v26 = vpop.f32.mrb[65].mxu1  ;;  %v2667_v35 = vadd.f32 %v3753_v24, %v2666_v25 }
0x1bef   :  { %v2669_v28 = vpop.f32.mrb[66].mxu1 }
0x1bf0   :  { %v2670_v37 = vadd.f32 %v3753_v24, %v2669_v28  ;;  %v4164_v29 = vpop.f32.mrb[67].mxu1 }
0x1bf2   :  { %v2739_v30 = vpack.c.bf16 %v2670_v37, %v2667_v35 }
0x1bf4   :  { %2741 = vrot.lane.b32.xlu1 %v2739_v30, %s5614_s2  ;;  %2745 = vrot.lane.b32.xlu0 %v2739_v30, %s5615_s0 }
0x1bf5   :  { %4176 = vmatmul.mubr.msk.bf16.vlgmr.msra.gmra.mrb[68].mxu1 %vm290_vm4, %v2739_v30 }
0x1bf6   :  { %4186 = vmatpush3.bf16.xpose.msra.mxu1 %v2853_v40  ;;  %4187 = vmatprep.mubr.msk.bf16.mxu1 %vm4557_vm0, %v4556_v2 }
0x1bf7   :  { %4197 = vmatprep.subr.bf16.mxu1 %v4556_v2 }
0x1bf8   :  { %2743 = vrot.lane.b32.xlu1 %v2739_v30, %s5613_s1 }
0x1c66   :  { %v2742_v32 = vpop.permute.xlu1 %2741  ;;  %v2746_v42 = vpop.permute.xlu0 %2745 }
0x1c67   :  { %4182 = vmatmul.mubr.msk.bf16.vlgmr.msra.gmra.mrb[76].mxu0 %vm290_vm4, %v2742_v32 }
0x1c68   :  { %4192 = vmatpush3.bf16.xpose.msra.mxu0 %v2900_v33  ;;  %4193 = vmatprep.mubr.msk.bf16.mxu0 %vm4557_vm0, %v4556_v2 }
0x1c69   :  { %4203 = vmatprep.subr.bf16.mxu0 %v4556_v2 }
0x1c6a   :  { %v2744_v34 = vpop.permute.xlu1 %2743 }
0x1c6b   :  { %4188 = vmatmul.mubr.msk.bf16.vlgmr.msra.gmra.mrb[72].mxu1 %vm290_vm4, %v2744_v34 }
0x1c6c   :  { %4199 = vmatprep.mubr.msk.bf16.mxu1 %vm4557_vm0, %v4556_v2 }
0x1c6f   :  { %4194 = vmatmul.mubr.msk.bf16.vlgmr.msra.gmra.mrb[80].mxu0 %vm290_vm4, %v2746_v42 }
0x1c70   :  { %4205 = vmatprep.mubr.msk.bf16.mxu0 %vm4557_vm0, %v4556_v2 }
0x1cc8   :  { %v2795_v39 = vpop.f32.mrb[68].mxu1 }
0x1cc9   :  { %v2943_v44 = vmul.f32 0.35355338, %v2795_v39  ;;  %v4177_v45 = vpop.f32.mrb[69].mxu1 }
0x1cca   :  { %v2798_v57 = vpop.f32.mrb[70].mxu1 }
0x1ccb   :  { %v2951_v47 = vadd.f32 %v4527_v5, %v2943_v44  ;;  %v2944_v50 = vmul.f32 0.35355338, %v2798_v57  ;;  %v4178_v51 = vpop.f32.mrb[71].mxu1 }
0x1ccd   :  { %v2952_v41 = vadd.f32 %v4528_v48, %v2944_v50  ;;  %v2959_v54 = vsel %vm501_vm5, %v2951_v47, -inf }
0x1cce   :  { %2960 = vmax.xlane.f32.xlu1 %v2959_v54 }
0x1ccf   :  { %v2962_v49 = vsel %vm501_vm5, %v2952_v41, -inf }
0x1cd0   :  { %2963 = vmax.xlane.f32.xlu0 %v2962_v49 }
0x1d3a   :  { %v2842_v52 = vpop.f32.mrb[76].mxu0 }
0x1d3b   :  { %v2945_v53 = vmul.f32 0.35355338, %v2842_v52  ;;  %v4183_v1 = vpop.f32.mrb[77].mxu0 }
0x1d3c   :  { %v2845_v56 = vpop.f32.mrb[78].mxu0 }
0x1d3d   :  { %v2953_v58 = vadd.f32 %v4527_v5, %v2945_v53  ;;  %v2946_v60 = vmul.f32 0.35355338, %v2845_v56  ;;  %v4184_v61 = vpop.f32.mrb[79].mxu0 }
0x1d3e   :  { %v2889_v17 = vpop.f32.mrb[72].mxu1 }
0x1d3f   :  { %v2954_v4 = vadd.f32 %v4528_v48, %v2946_v60  ;;  %v2947_v0 = vmul.f32 0.35355338, %v2889_v17  ;;  %v4189_v6 = vpop.f32.mrb[73].mxu1  ;;  %v2965_v59 = vsel %vm501_vm5, %v2953_v58, -inf }
0x1d40   :  { %v2892_v55 = vpop.f32.mrb[74].mxu1  ;;  %2966 = vmax.xlane.f32.xlu0 %v2965_v59 }
0x1d41   :  { %v2955_v7 = vadd.f32 %v4527_v5, %v2947_v0  ;;  %v2948_v8 = vmul.f32 0.35355338, %v2892_v55  ;;  %v4190_v3 = vpop.f32.mrb[75].mxu1  ;;  %v2968_v9 = vsel %vm501_vm5, %v2954_v4, -inf }
0x1d42   :  { %2969 = vmax.xlane.f32.xlu1 %v2968_v9  ;;  %v2936_v15 = vpop.f32.mrb[80].mxu0 }
0x1d43   :  { %v2956_v46 = vadd.f32 %v4528_v48, %v2948_v8  ;;  %v2949_v63 = vmul.f32 0.35355338, %v2936_v15  ;;  %v4195_v10 = vpop.f32.mrb[81].mxu0  ;;  %v2971_v18 = vsel %vm501_vm5, %v2955_v7, -inf }
0x1d44   :  { %2972 = vmax.xlane.f32.xlu0 %v2971_v18  ;;  %v2939_v62 = vpop.f32.mrb[82].mxu0 }
0x1d45   :  { %v2957_v11 = vadd.f32 %v4527_v5, %v2949_v63  ;;  %v2950_v12 = vmul.f32 0.35355338, %v2939_v62  ;;  %v4196_v13 = vpop.f32.mrb[83].mxu0  ;;  %v2974_v16 = vsel %vm501_vm5, %v2956_v46, -inf }
0x1d46   :  { %2975 = vmax.xlane.f32.xlu1 %v2974_v16 }
0x1d47   :  { %v2958_v20 = vadd.f32 %v4528_v48, %v2950_v12  ;;  %v2977_v21 = vsel %vm501_vm5, %v2957_v11, -inf }
0x1d48   :  { %2978 = vmax.xlane.f32.xlu0 %v2977_v21 }
0x1d49   :  { %v2980_v14 = vsel %vm501_vm5, %v2958_v20, -inf }
0x1d4a   :  { %2981 = vmax.xlane.f32.xlu1 %v2980_v14 }
0x1d5b   :  { %3098 = vrot.lane.b32.xlu1 %v5332_v22, %s5617_s29  ;;  %v2961_v23 = vpop.xlane.xlu1 %2960 }
0x1d5c   :  { %v2983_v25 = vsub.f32 %v2951_v47, %v2961_v23 }
0x1d5d   :  { %v2964_v24 = vpop.xlane.xlu0 %2963 }
0x1d5e   :  { %3051 = vrot.lane.b32.xlu0 %v5321_v27, %s5617_s29  ;;  %v2984_v26 = vsub.f32 %v2952_v41, %v2964_v24  ;;  %v2991_v28 = vmul.f32 1.442695, %v2983_v25 }
0x1d60   :  { %v2993_v35 = vmul.f32 1.442695, %v2984_v26  ;;  %4483 = vpow2.f32 %v2991_v28 }
0x1d62   :  { %4485 = vpow2.f32 %v2993_v35 }
0x1d6a   :  { %v4484_v37 = vpop.eup %4483 }
0x1d6b   :  { %v3007_v30 = vsel %vm501_vm5, %v4484_v37, 0.0 }
0x1d6c   :  { %v4486_v29 = vpop.eup %4485 }
0x1d6d   :  { %v3010_v40 = vsel %vm501_vm5, %v4486_v29, 0.0 }
0x1d7d   :  { %3008 = vadd.xlane.f32.xlu0 %v3007_v30 }
0x1d7f   :  { %3011 = vadd.xlane.f32.xlu1 %v3010_v40 }
0x1dcd   :  { %v2967_v22 = vpop.xlane.xlu0 %2966 }
0x1dce   :  { %v2985_v32 = vsub.f32 %v2953_v58, %v2967_v22 }
0x1dcf   :  { %v2970_v33 = vpop.xlane.xlu1 %2969 }
0x1dd0   :  { %v2995_v27 = vmul.f32 1.442695, %v2985_v32  ;;  %v2986_v34 = vsub.f32 %v2954_v4, %v2970_v33 }
0x1dd1   :  { %v2973_v42 = vpop.xlane.xlu0 %2972 }
0x1dd2   :  { %4487 = vpow2.f32 %v2995_v27  ;;  %v2997_v39 = vmul.f32 1.442695, %v2986_v34  ;;  %v2987_v44 = vsub.f32 %v2955_v7, %v2973_v42 }
0x1dd3   :  { %v2976_v45 = vpop.xlane.xlu1 %2975 }
0x1dd4   :  { %4489 = vpow2.f32 %v2997_v39  ;;  %v2999_v57 = vmul.f32 1.442695, %v2987_v44  ;;  %v2988_v5 = vsub.f32 %v2956_v46, %v2976_v45  ;;  %v4357_v39 = vld [vmem:[%s5622_s27 + $0x10] sm:$0xff]  }
0x1dd5   :  { %v2979_v47 = vpop.xlane.xlu0 %2978 }
0x1dd6   :  { %4491 = vpow2.f32 %v2999_v57  ;;  %v3001_v50 = vmul.f32 1.442695, %v2988_v5  ;;  %v2989_v51 = vsub.f32 %v2957_v11, %v2979_v47  ;;  %v4358_v57 = vld [vmem:[%s5622_s27 + $0x18] sm:$0xff]  }
0x1dd7   :  { %v2982_v48 = vpop.xlane.xlu1 %2981 }
0x1dd8   :  { %4493 = vpow2.f32 %v3001_v50  ;;  %v3003_v41 = vmul.f32 1.442695, %v2989_v51  ;;  %v2990_v54 = vsub.f32 %v2958_v20, %v2982_v48 }
0x1dd9   :  { %v3052_v49 = vpop.permute.xlu0 %3051 }
0x1dda   :  { %4495 = vpow2.f32 %v3003_v41  ;;  %v3005_v52 = vmul.f32 1.442695, %v2990_v54  ;;  %4198 = vmatpush3.bf16.msra.mxu1 %v3052_v49 }
0x1ddb   :  { %v3099_v53 = vpop.permute.xlu1 %3098  ;;  %4209 = vmatprep.subr.bf16.mxu1 %v4556_v2 }
0x1ddc   :  { %v4488_v1 = vpop.eup %4487  ;;  %4497 = vpow2.f32 %v3005_v52  ;;  %4204 = vmatpush3.bf16.msra.mxu0 %v3099_v53 }
0x1ddd   :  { %v3013_v56 = vsel %vm501_vm5, %v4488_v1, 0.0  ;;  %4215 = vmatprep.subr.bf16.mxu0 %v4556_v2 }
0x1dde   :  { %v4490_v58 = vpop.eup %4489  ;;  %3014 = vadd.xlane.f32.xlu0 %v3013_v56 }
0x1ddf   :  { %v3016_v60 = vsel %vm501_vm5, %v4490_v58, 0.0 }
0x1de0   :  { %v4492_v61 = vpop.eup %4491  ;;  %3017 = vadd.xlane.f32.xlu1 %v3016_v60 }
0x1de1   :  { %v3019_v17 = vsel %vm501_vm5, %v4492_v61, 0.0 }
0x1de2   :  { %v4494_v4 = vpop.eup %4493  ;;  %3020 = vadd.xlane.f32.xlu0 %v3019_v17 }
0x1de3   :  { %v3022_v0 = vsel %vm501_vm5, %v4494_v4, 0.0 }
0x1de4   :  { %v4496_v6 = vpop.eup %4495  ;;  %3023 = vadd.xlane.f32.xlu1 %v3022_v0 }
0x1de5   :  { %v3025_v59 = vsel %vm501_vm5, %v4496_v6, 0.0 }
0x1de6   :  { %v4498_v55 = vpop.eup %4497  ;;  %3026 = vadd.xlane.f32.xlu0 %v3025_v59 }
0x1de7   :  { %v3028_v7 = vsel %vm501_vm5, %v4498_v55, 0.0 }
0x1de8   :  { %3029 = vadd.xlane.f32.xlu1 %v3028_v7 }
0x1df9   :  { %3145 = vrot.lane.b32.xlu1 %v5340_v36, %s5617_s29 }
0x1dfc   :  { %3192 = vrot.lane.b32.xlu0 %v5351_v31, %s5617_s29  ;;  %s5624_s29 = sld [smem:[#allocation18_spill]] }
0x1e0a   :  { %v3009_v8 = vpop.xlane.xlu0 %3008 }
0x1e0b   :  { %4499 = vrcp.f32 %v3009_v8 }
0x1e0c   :  { %v3012_v3 = vpop.xlane.xlu1 %3011 }
0x1e0d   :  { %4501 = vrcp.f32 %v3012_v3 }
0x1e15   :  { %v4500_v9 = vpop.eup %4499 }
0x1e16   :  { %v3039_v46 = vmul.f32 %v4500_v9, %v4484_v37 }
0x1e17   :  { %v4502_v15 = vpop.eup %4501 }
0x1e18   :  { %v3040_v63 = vmul.f32 %v4502_v15, %v4486_v29 }
0x1e1a   :  { %v3047_v10 = vpack.c.bf16 %v3040_v63, %v3039_v46 }
0x1e1c   :  { %4200 = vmatmul.mubr.msk.bf16.vlgmr.msra.gmra.mrb[76].mxu1 %vm501_vm5, %v3047_v10 }
0x1e1d   :  { %4211 = vmatprep.mubr.msk.bf16.mxu1 %vm4557_vm0, %v4556_v2 }
0x1e6b   :  { %v3015_v18 = vpop.xlane.xlu0 %3014 }
0x1e6c   :  { %4503 = vrcp.f32 %v3015_v18  ;;  %v3779_v18 = vld [vmem:[%s5623_s17 + $0x1] ss:$0 sm:$0xff] }
0x1e6d   :  { %v3018_v36 = vpop.xlane.xlu1 %3017 }
0x1e6e   :  { %4505 = vrcp.f32 %v3018_v36 }
0x1e6f   :  { %v3021_v62 = vpop.xlane.xlu0 %3020 }
0x1e70   :  { %4507 = vrcp.f32 %v3021_v62 }
0x1e71   :  { %v3024_v31 = vpop.xlane.xlu1 %3023 }
0x1e72   :  { %4509 = vrcp.f32 %v3024_v31 }
0x1e73   :  { %v3027_v11 = vpop.xlane.xlu0 %3026 }
0x1e74   :  { %4511 = vrcp.f32 %v3027_v11 }
0x1e75   :  { %v3030_v12 = vpop.xlane.xlu1 %3029 }
0x1e76   :  { %v4504_v13 = vpop.eup %4503  ;;  %4513 = vrcp.f32 %v3030_v12 }
0x1e77   :  { %v3041_v20 = vmul.f32 %v4504_v13, %v4488_v1  ;;  %v3193_v35 = vpop.permute.xlu0 %3192 }
0x1e78   :  { %v4506_v16 = vpop.eup %4505 }
0x1e79   :  { %v3042_v21 = vmul.f32 %v4506_v16, %v4490_v58  ;;  %v3146_v14 = vpop.permute.xlu1 %3145 }
0x1e7a   :  { %v4508_v23 = vpop.eup %4507  ;;  %4210 = vmatpush3.bf16.msra.mxu1 %v3146_v14 }
0x1e7b   :  { %v3048_v24 = vpack.c.bf16 %v3042_v21, %v3041_v20  ;;  %4221 = vmatprep.subr.bf16.mxu1 %v4556_v2  ;;  %v3043_v26 = vmul.f32 %v4508_v23, %v4492_v61 }
0x1e7c   :  { %v4510_v25 = vpop.eup %4509 }
0x1e7d   :  { %v3044_v28 = vmul.f32 %v4510_v25, %v4494_v4  ;;  %4206 = vmatmul.mubr.msk.bf16.vlgmr.msra.gmra.mrb[84].mxu0 %vm501_vm5, %v3048_v24 }
0x1e7e   :  { %v4512_v37 = vpop.eup %4511  ;;  %4216 = vmatpush3.bf16.msra.mxu0 %v3193_v35  ;;  %4217 = vmatprep.mubr.msk.bf16.mxu0 %vm4557_vm0, %v4556_v2 }
0x1e7f   :  { %v3049_v29 = vpack.c.bf16 %v3044_v28, %v3043_v26  ;;  %4229 = vmatprep.subr.bf16.mxu0 %v4556_v2  ;;  %v3045_v40 = vmul.f32 %v4512_v37, %v4496_v6 }
0x1e80   :  { %v4514_v30 = vpop.eup %4513 }
0x1e81   :  { %v3046_v22 = vmul.f32 %v4514_v30, %v4498_v55  ;;  %4212 = vmatmul.mubr.msk.bf16.vlgmr.msra.gmra.mrb[80].mxu1 %vm501_vm5, %v3049_v29  ;;  %v4359_v30 = vld [vmem:[%s5545_s18 + $0x10] sm:$0xff]  }
0x1e82   :  { %4225 = vmatprep.mubr.msk.bf16.mxu1 %vm4557_vm0, %v4556_v2  ;;  %4222 = vmatpush3.bf16.msra.mxu1 %v4357_v39 }
0x1e83   :  { %v3050_v32 = vpack.c.bf16 %v3046_v22, %v3045_v40  ;;  %4223 = vmatprep.subr.bf16.mxu1 %v4556_v2  ;;  %v4360_v40 = vld [vmem:[%s5545_s18 + $0x18] sm:$0xff]   ;;  %v4361_v22 = vld [vmem:[%s5547_s20 + $0x20] sm:$0xff]  }
0x1e85   :  { %4218 = vmatmul.mubr.msk.bf16.vlgmr.msra.gmra.mrb[88].mxu0 %vm501_vm5, %v3050_v32  ;;  %v4362_v32 = vld [vmem:[%s5547_s20 + $0x28] sm:$0xff]  }
0x1e86   :  { %4233 = vmatprep.mubr.msk.bf16.mxu0 %vm4557_vm0, %v4556_v2  ;;  %4224 = vmatpush3.bf16.msra.mxu1 %v4358_v57  ;;  %v4529_v57 = vld [vmem:[%s5607_s4 + $0x4] sm:$0x7] }
0x1e87   :  { %4237 = vmatprep.subr.bf16.mxu1 %v4556_v2  ;;  %4230 = vmatpush3.bf16.msra.mxu0 %v4359_v30 }
0x1e88   :  { %4231 = vmatprep.subr.bf16.mxu0 %v4556_v2 }
0x1e8b   :  { %4232 = vmatpush3.bf16.msra.mxu0 %v4360_v40 }
0x1e8c   :  { %4249 = vmatprep.subr.bf16.mxu0 %v4556_v2 }
0x1eef   :  { %v3091_v33 = vpop.f32.mrb[76].mxu1 }
0x1ef0   :  { %v4201_v27 = vpop.f32.mrb[77].mxu1 }
0x1ef1   :  { %v3094_v34 = vpop.f32.mrb[78].mxu1 }
0x1ef2   :  { %v4202_v42 = vpop.f32.mrb[79].mxu1 }
0x1f50   :  { %v3138_v44 = vpop.f32.mrb[84].mxu0 }
0x1f51   :  { %v4207_v45 = vpop.f32.mrb[85].mxu0 }
0x1f52   :  { %v3141_v5 = vpop.f32.mrb[86].mxu0 }
0x1f53   :  { %v4316_v47 = vpack.i.bf16 %v3141_v5, %v3138_v44  ;;  %v4208_v50 = vpop.f32.mrb[87].mxu0  ;;  %v3370_v5 = vrot.slane %v4529_v57, %v5090_v19 }
0x1f54   :  { %v3185_v51 = vpop.f32.mrb[80].mxu1 }
0x1f55   :  { %v4213_v48 = vpop.f32.mrb[81].mxu1  ;;  %4317 = vrot.lane.b32.xlu1 %v4316_v47, %s5618_s3 }
0x1f56   :  { %v3188_v41 = vpop.f32.mrb[82].mxu1 }
0x1f57   :  { %v4321_v54 = vpack.i.bf16 %v3188_v41, %v3185_v51  ;;  %v4214_v49 = vpop.f32.mrb[83].mxu1  ;;  %v4530_v41 = vld [vmem:[%s5608_s9 + $0x4] sm:$0x7] }
0x1f58   :  { %v3232_v52 = vpop.f32.mrb[88].mxu0 }
0x1f59   :  { %4322 = vrot.lane.b32.xlu0 %v4321_v54, %s5619_s30  ;;  %v4219_v53 = vpop.f32.mrb[89].mxu0  ;;  %v3376_v54 = vrot.slane %v4530_v41, %v5090_v19  ;;  %v4364_v19 = vld [vmem:[%s5547_s20 + $0x38] sm:$0xff]  }
0x1f5a   :  { %v3235_v1 = vpop.f32.mrb[90].mxu0 }
0x1f5b   :  { %v4326_v56 = vpack.i.bf16 %v3235_v1, %v3232_v52  ;;  %v4220_v58 = vpop.f32.mrb[91].mxu0 }
0x1f5c   :  { %v3788_v58 = vld [vmem:[%s5546_s19 + $0x1] ss:$0 sm:$0xff] }
0x1f5d   :  { %4327 = vrot.lane.b32.xlu1 %v4326_v56, %s5620_s6  ;;  %v4363_v56 = vld [vmem:[%s5547_s20 + $0x30] sm:$0xff]   ;;  %s5625_s6 = sld [smem:[#allocation19_spill]] }
0x1fc7   :  { %v4318_v60 = vpop.permute.xlu1 %4317 }
0x1fc8   :  { %v4320_v17 = vunpack.i.h.bf16 %v4318_v60  ;;  %v4319_v4 = vunpack.i.l.bf16 %v4318_v60 }
0x1fca   :  { %v3264_v55 = vsel %vm290_vm4, %v3094_v34, %v4320_v17  ;;  %v3263_v7 = vsel %vm290_vm4, %v3091_v33, %v4319_v4 }
0x1fcb   :  { %v4323_v61 = vpop.permute.xlu0 %4322 }
0x1fcc   :  { %v4325_v0 = vunpack.i.h.bf16 %v4323_v61  ;;  %v4324_v6 = vunpack.i.l.bf16 %v4323_v61 }
0x1fce   :  { %v3265_v9 = vsel %vm501_vm5, %v3263_v7, %v4324_v6  ;;  %v3266_v15 = vsel %vm501_vm5, %v3264_v55, %v4325_v0 }
0x1fcf   :  { %v4328_v59 = vpop.permute.xlu1 %4327 }
0x1fd0   :  { %v4330_v8 = vunpack.i.h.bf16 %v4328_v59  ;;  %v4329_v3 = vunpack.i.l.bf16 %v4328_v59 }
0x1fd2   :  { %v3268_v46 = vsel %vm810_vm6, %v3266_v15, %v4330_v8  ;;  %v3267_v63 = vsel %vm810_vm6, %v3265_v9, %v4329_v3  ;;  %v4365_v8 = vld [vmem:[%s5624_s29] sm:$0xff]   ;;  %v4366_v3 = vld [vmem:[%s5624_s29 + $0x8] sm:$0xff]  }
0x1fd3   :  { %v3269_v10 = vpack.c.bf16 %v3268_v46, %v3267_v63  ;;  %v3801_v9 = vld [vmem:[%s5548_s21 + $0x1] ss:$0 sm:$0xff] }
0x1fd5   :  { %4226 = vmatmul.mubr.msk.bf16.vlgmr.msra.gmra.mrb[84].mxu1 %vm119_vm3, %v3269_v10 }
0x1fd6   :  { %4245 = vmatprep.mubr.msk.bf16.mxu1 %vm4557_vm0, %v4556_v2  ;;  %4238 = vmatpush3.bf16.msra.mxu1 %v4361_v22 }
0x1fd7   :  { %4239 = vmatprep.subr.bf16.mxu1 %v4556_v2 }
0x1fda   :  { %4240 = vmatpush3.bf16.msra.mxu1 %v4362_v32 }
0x1fdb   :  { %4241 = vmatprep.subr.bf16.mxu1 %v4556_v2 }
0x1fde   :  { %4242 = vmatpush3.bf16.msra.mxu1 %v4363_v56 }
0x1fdf   :  { %4243 = vmatprep.subr.bf16.mxu1 %v4556_v2 }
0x1fe2   :  { %4244 = vmatpush3.bf16.msra.mxu1 %v4364_v19 }
0x20a8   :  { %v3332_v36 = vpop.f32.mrb[84].mxu1 }
0x20a9   :  { %v3333_v62 = vadd.f32 %v3779_v18, %v3332_v36  ;;  %v4227_v31 = vpop.f32.mrb[85].mxu1 }
0x20aa   :  { %v3335_v11 = vpop.f32.mrb[86].mxu1 }
0x20ab   :  { %v5435_v12 = vadd.f32 %v3333_v62, %v5278_v38  ;;  %v3336_v13 = vadd.f32 %v3779_v18, %v3335_v11  ;;  %v4228_v16 = vpop.f32.mrb[87].mxu1  ;;  %v3807_v11 = vld [vmem:[%s5625_s6] ss:$0 sm:$0xff] }
0x20ad   :  { %v5438_v20 = vadd.f32 %v3336_v13, %v5281_v43  ;;  %v3341_v21 = vsel %vm119_vm3, %v5435_v12, 0.0 }
0x20ae   :  { %3342 = vadd.xlane.f32.xlu0 %v3341_v21 }
0x20af   :  { %v3344_v14 = vsel %vm119_vm3, %v5438_v20, 0.0 }
0x20b0   :  { %3345 = vadd.xlane.f32.xlu1 %v3344_v14 }
0x213b   :  { %v3343_v23 = vpop.xlane.xlu0 %3342 }
0x213c   :  { %v3347_v24 = vmul.f32 0.03125, %v3343_v23 }
0x213d   :  { %v3346_v25 = vpop.xlane.xlu1 %3345 }
0x213e   :  { %v3349_v26 = vsub.f32 %v5435_v12, %v3347_v24  ;;  %v3348_v38 = vmul.f32 0.03125, %v3346_v25 }
0x2140   :  { %v3350_v28 = vsub.f32 %v5438_v20, %v3348_v38  ;;  %v3351_v35 = vmul.f32 %v3349_v26, %v3349_v26 }
0x2142   :  { %v3353_v43 = vsel %vm119_vm3, %v3351_v35, 0.0  ;;  %v3352_v37 = vmul.f32 %v3350_v28, %v3350_v28 }
0x2143   :  { %3354 = vadd.xlane.f32.xlu0 %v3353_v43 }
0x2144   :  { %v3356_v29 = vsel %vm119_vm3, %v3352_v37, 0.0 }
0x2147   :  { %3357 = vadd.xlane.f32.xlu0 %v3356_v29 }
0x21d0   :  { %v3355_v33 = vpop.xlane.xlu0 %3354 }
0x21d1   :  { %v3359_v27 = vmul.f32 0.03125, %v3355_v33 }
0x21d3   :  { %v3361_v34 = vadd.f32 1e-05, %v3359_v27 }
0x21d4   :  { %v3358_v42 = vpop.xlane.xlu0 %3357 }
0x21d5   :  { %4515 = vrsqrt.f32 %v3361_v34  ;;  %v3360_v39 = vmul.f32 0.03125, %v3358_v42 }
0x21d7   :  { %v3362_v44 = vadd.f32 1e-05, %v3360_v39 }
0x21d9   :  { %4517 = vrsqrt.f32 %v3362_v44  ;;  %v3811_v44 = vld [vmem:[%s5626_s11] ss:$0 sm:$0xff] }
0x21df   :  { %v4516_v45 = vpop.eup %4515 }
0x21e0   :  { %v3365_v47 = vmul.f32 %v4516_v45, %v3349_v26 }
0x21e2   :  { %v3371_v51 = vmul.f32 %v3370_v5, %v3365_v47 }
0x21e3   :  { %v4518_v50 = vpop.eup %4517 }
0x21e4   :  { %v3366_v48 = vmul.f32 %v4518_v50, %v3350_v28  ;;  %v3377_v52 = vadd.f32 %v3376_v54, %v3371_v51 }
0x21e6   :  { %v3372_v49 = vmul.f32 %v3370_v5, %v3366_v48  ;;  %v3812_v5 = vld [vmem:[%s5627_s25] ss:$0 sm:$0xff] }
0x21e8   :  { %v3378_v53 = vadd.f32 %v3376_v54, %v3372_v49 }
0x21ea   :  { %v3379_v1 = vpack.c.bf16 %v3378_v53, %v3377_v52 }
0x21ec   :  { %4234 = vmatmul.mubr.msk.bf16.vlgmr.msra.gmra.mrb[92].mxu0 %vm119_vm3, %v3379_v1 }
0x21ed   :  { %4253 = vmatprep.mubr.msk.bf16.mxu0 %vm4557_vm0, %v4556_v2  ;;  %4250 = vmatpush3.bf16.msra.mxu0 %v4365_v8 }
0x21ee   :  { %4251 = vmatprep.subr.bf16.mxu0 %v4556_v2 }
0x21f1   :  { %4252 = vmatpush3.bf16.msra.mxu0 %v4366_v3 }
0x22bf   :  { %v3442_v60 = vpop.f32.mrb[92].mxu0 }
0x22c0   :  { %v3443_v61 = vadd.f32 %v3788_v58, %v3442_v60  ;;  %v4235_v17 = vpop.f32.mrb[93].mxu0 }
0x22c1   :  { %v3445_v4 = vpop.f32.mrb[94].mxu0 }
0x22c2   :  { %v3446_v0 = vadd.f32 %v3788_v58, %v3445_v4  ;;  %v4236_v6 = vpop.f32.mrb[95].mxu0  ;;  %v3449_v59 = vmax.f32 %v3443_v61, 0.0 }
0x22c4   :  { %v3450_v55 = vmax.f32 %v3446_v0, 0.0 }
0x22c6   :  { %v3451_v7 = vpack.c.bf16 %v3450_v55, %v3449_v59 }
0x22c8   :  { %4246 = vmatmul.mubr.msk.bf16.vlgmr.msra.gmra.mrb[88].mxu1 %vm1804_vm7, %v3451_v7 }
0x239b   :  { %v3530_v15 = vpop.f32.mrb[88].mxu1 }
0x239c   :  { %v3531_v46 = vadd.f32 %v3801_v9, %v3530_v15  ;;  %v4247_v63 = vpop.f32.mrb[89].mxu1 }
0x239d   :  { %v3533_v10 = vpop.f32.mrb[90].mxu1 }
0x239e   :  { %v3534_v18 = vadd.f32 %v3801_v9, %v3533_v10  ;;  %v4248_v36 = vpop.f32.mrb[91].mxu1  ;;  %v3537_v62 = vadd.f32 %v3531_v46, %v5435_v12 }
0x23a0   :  { %v3538_v31 = vadd.f32 %v3534_v18, %v5438_v20 }
0x23a2   :  { %v3539_v2 = vpack.c.bf16 %v3538_v31, %v3537_v62 }
0x23a4   :  { %4254 = vmatmul.mubr.msk.bf16.vlgmr.msra.gmra.mrb[96].mxu0 %vm119_vm3, %v3539_v2 }
0x2477   :  { %v3600_v13 = vpop.f32.mrb[96].mxu0 }
0x2478   :  { %v3601_v16 = vadd.f32 %v3807_v11, %v3600_v13  ;;  %v4255_v21 = vpop.f32.mrb[97].mxu0 }
0x2479   :  { %v3603_v14 = vpop.f32.mrb[98].mxu0 }
0x247a   :  { %v3604_v23 = vadd.f32 %v3807_v11, %v3603_v14  ;;  %v4256_v24 = vpop.f32.mrb[99].mxu0  ;;  %v3609_v25 = vsel %vm119_vm3, %v3601_v16, 0.0 }
0x247b   :  { %3610 = vadd.xlane.f32.xlu1 %v3609_v25 }
0x247c   :  { %v3612_v12 = vsel %vm119_vm3, %v3604_v23, 0.0 }
0x247d   :  { %3613 = vadd.xlane.f32.xlu0 %v3612_v12 }
0x2508   :  { %v3611_v20 = vpop.xlane.xlu1 %3610 }
0x2509   :  { %v3615_v26 = vmul.f32 0.03125, %v3611_v20 }
0x250a   :  { %v3614_v38 = vpop.xlane.xlu0 %3613 }
0x250b   :  { %v3617_v28 = vsub.f32 %v3601_v16, %v3615_v26  ;;  %v3616_v35 = vmul.f32 0.03125, %v3614_v38 }
0x250d   :  { %v3618_v43 = vsub.f32 %v3604_v23, %v3616_v35  ;;  %v3619_v37 = vmul.f32 %v3617_v28, %v3617_v28 }
0x250f   :  { %v3621_v29 = vsel %vm119_vm3, %v3619_v37, 0.0  ;;  %v3620_v30 = vmul.f32 %v3618_v43, %v3618_v43 }
0x2510   :  { %3622 = vadd.xlane.f32.xlu1 %v3621_v29 }
0x2511   :  { %v3624_v40 = vsel %vm119_vm3, %v3620_v30, 0.0 }
0x2512   :  { %3625 = vadd.xlane.f32.xlu0 %v3624_v40 }
0x259d   :  { %v3623_v22 = vpop.xlane.xlu1 %3622 }
0x259e   :  { %v3627_v32 = vmul.f32 0.03125, %v3623_v22 }
0x259f   :  { %v3626_v33 = vpop.xlane.xlu0 %3625 }
0x25a0   :  { %v3629_v27 = vadd.f32 1e-05, %v3627_v32  ;;  %v3628_v34 = vmul.f32 0.03125, %v3626_v33 }
0x25a2   :  { %4519 = vrsqrt.f32 %v3629_v27  ;;  %v3630_v42 = vadd.f32 1e-05, %v3628_v34 }
0x25a4   :  { %4521 = vrsqrt.f32 %v3630_v42 }
0x25ac   :  { %v4520_v39 = vpop.eup %4519 }
0x25ad   :  { %v3633_v45 = vmul.f32 %v4520_v39, %v3617_v28 }
0x25ae   :  { %v4522_v57 = vpop.eup %4521 }
0x25af   :  { %v3634_v47 = vmul.f32 %v4522_v57, %v3618_v43  ;;  %v3641_v50 = vmul.f32 %v3811_v44, %v3633_v45 }
0x25b1   :  { %v3642_v51 = vmul.f32 %v3811_v44, %v3634_v47  ;;  %v3649_v48 = vadd.f32 %v3812_v5, %v3641_v50 }
0x25b3   :  { %v3650_v41 = vadd.f32 %v3812_v5, %v3642_v51  ;;  %3651 = vst.msk [vmem:[#allocation2] sm:$0xff] %vm119_vm3, %v3649_v48 }
0x25b5   :  { %3652 = vst.msk [vmem:[#allocation2 + $0x8] sm:$0xff] %vm119_vm3, %v3650_v41 }
0x25b6   :  { %4542 = shalt.err (!%p4539_p4)
}
0x25b7   :  { %s5628_s12 = sld [smem:[#allocation22_spill]] }
0x25bd   :  { %s4543_s14 = scalar_lea.hbm %s5628_s12, 256 }
0x25be   :  { %p4544_p5 = scmp.ne.s32.totalorder %s5628_s12, %s4543_s14  ;;  %p4547_p6 = scmp.lt.u32.totalorder %s4543_s14, %s5628_s12 }
0x25c0   :  { %p4549_p7 = pnand %p4547_p6, %p4544_p5 }
0x25c2   :  { %4552 = shalt.err (!%p4549_p7)
}
0x25c3   :  { %s4567_s9 = smov 128  }
0x25c4   :  { %3664 = dma.vmem_to_hbm [thread:$0]  %s3659_s7, 256, %s5628_s12, [#allocation3], %s4567_s9, %s4567_s9, %s5618_s3  }
0x25c5   :  { %4553 = dma.done.wait [#allocation3], 256  }
0x25c6   :  { %4554 = vsyncadd [#allocation3], 4294967040 }
0x25c7   :  { %3668 = vsyncpa [#allocation3], 1 }

</bundles_post_ra>
